<compile_context>
chip_gen: v7x
topology: tpu7x:2x2x1
jax: 0.10.0
libtpu: 0.0.40
codegen_flags: <defaults>
</compile_context>

<pallas_src>
import math

import jax
import jax.numpy as jnp
from jax.experimental import pallas as pl
from jax.experimental.pallas import tpu as pltpu


def _round_up(x, m):
    return ((x + m - 1) // m) * m


def _attention_kernel(x_ref, v_ref, len_ref, rep_ref, att_ref):
    """One B-tile of the attention pooling.

    x_ref   : (TB, Tp, Hp) f32  zero-padded input slab
    v_ref   : (1, 1, Hp)   f32  attention vector (pre-shaped, zero-padded)
    len_ref : (TB, 1)      i32  sequence lengths
    rep_ref : (TB, Hp)     f32  output representations
    att_ref : (TB, Tp)     f32  output attention weights
    """
    x = x_ref[...]
    v = v_ref[...]                          # (1, 1, Hp) — broadcasts over (TB, Tp)
    lengths = len_ref[...]                  # (TB, 1)
    TB, T, _H = x.shape

    # logits = <x_t, v> per timestep: VPU multiply + lane (XLU) reduce.
    # No reshapes, no N=1 MXU matvec.
    logits = jnp.sum(x * v, axis=-1)        # (TB, T)

    # Per-row max.  Any per-row constant cancels in the per-row normalization
    # below, so this matches the torch global-max formulation exactly (up to
    # low-order float bits) while decoupling batches.
    row_max = jnp.max(logits, axis=-1, keepdims=True)       # (TB, 1)
    unnorm = jnp.exp(logits - row_max)                       # (TB, T)

    # mask: timestep index < length (float mask, as in the torch code)
    idxes = jax.lax.broadcasted_iota(jnp.int32, (TB, T), 1)
    mask = (idxes < lengths).astype(jnp.float32)

    masked = unnorm * mask
    att_sums = jnp.sum(masked, axis=-1, keepdims=True)       # (TB, 1)
    inv_sums = pl.reciprocal(att_sums, approx=False)         # exact reciprocal
    attentions = masked * inv_sums                            # (TB, T)
    att_ref[...] = attentions

    # weighted sum over timesteps -> (TB, Hp)  (sublane reduce)
    rep_ref[...] = jnp.sum(x * attentions[:, :, None], axis=1)


def _choose_block_b(B, T_pad, H_pad, budget_bytes=20 * 1024 * 1024):
    """Largest B-tile (multiple of 8) whose double-buffered working set fits.

    Budget of ~20 MiB keeps 2x(x + att + rep + len) tiles under the scoped
    VMEM limit on every generation (v7x: 64 MiB physical / 32 MiB scoped)."""
    per_row_bytes = 4 * (T_pad * H_pad + T_pad + H_pad + 1)  # x + att + rep + len
    tb = budget_bytes // (2 * per_row_bytes)
    tb = max(8, (tb // 8) * 8)
    tb = min(tb, _round_up(B, 8))
    return int(tb)


def attention_forward(inputs, attention_vector, input_lengths):
    """inputs: (B, T, H); attention_vector: (H,); input_lengths: (B,) int.

    Returns (representations (B, H), attentions (B, T)), both float32."""
    B, T, H = inputs.shape

    # Lane-dense padding: outputs (B, T) / (B, H) become full-128-lane stores,
    # and the x slab tiles cleanly.  Zero padding is neutralized by the length
    # mask (attention = 0 on padded timesteps) and contributes zeros to rep.
    T_pad = _round_up(T, 128)
    H_pad = _round_up(H, 128)
    TB = _choose_block_b(B, T_pad, H_pad)
    B_pad = _round_up(B, TB)

    x = jnp.pad(
        inputs.astype(jnp.float32),
        ((0, B_pad - B), (0, T_pad - T), (0, H_pad - H)),
    )
    v = jnp.pad(attention_vector.astype(jnp.float32), (0, H_pad - H))
    v = v.reshape(1, 1, H_pad)  # pre-shaped: no in-kernel reshape of v
    # Padded (discarded) batch rows get length 1 so they never produce 0/0 NaN.
    lens = jnp.pad(
        input_lengths.astype(jnp.int32), (0, B_pad - B), constant_values=1
    ).reshape(B_pad, 1)

    # NOTE: for very large T an online (tiled-T) accumulation with scratch
    # running max/sum/rep would bound VMEM further; full-T-per-block is fine
    # for typical attention-pooling sequence lengths.
    grid = (B_pad // TB,)
    rep, att = pl.pallas_call(
        _attention_kernel,
        out_shape=(
            jax.ShapeDtypeStruct((B_pad, H_pad), jnp.float32),
            jax.ShapeDtypeStruct((B_pad, T_pad), jnp.float32),
        ),
        grid_spec=pltpu.PrefetchScalarGridSpec(
            num_scalar_prefetch=0,
            grid=grid,
            in_specs=[
                pl.BlockSpec((TB, T_pad, H_pad), lambda b: (b, 0, 0)),
                pl.BlockSpec((1, 1, H_pad), lambda b: (0, 0, 0)),
                pl.BlockSpec((TB, 1), lambda b: (b, 0)),
            ],
            out_specs=(
                pl.BlockSpec((TB, H_pad), lambda b: (b, 0)),
                pl.BlockSpec((TB, T_pad), lambda b: (b, 0)),
            ),
        ),
        compiler_params=pltpu.CompilerParams(
            dimension_semantics=("parallel",),
            vmem_limit_bytes=32 * 1024 * 1024,
        ),
    )(x, v, lens)

    return rep[:B, :H], att[:B, :T]


def _reference(inputs, attention_vector, input_lengths):
    """Pure-JAX reference mirroring the torch forward (global max, divide)."""
    logits = jnp.einsum("bth,h->bt", inputs, attention_vector)
    unnorm = jnp.exp(logits - jnp.max(logits))
    T = inputs.shape[1]
    idxes = jnp.arange(T)[None, :]
    mask = (idxes < input_lengths[:, None]).astype(jnp.float32)
    masked = unnorm * mask
    sums = jnp.sum(masked, axis=1, keepdims=True)
    att = masked / sums
    rep = jnp.sum(inputs * att[:, :, None], axis=1)
    return rep, att


if __name__ == "__main__":
    B, T, H = 2, 8, 32  # batch, seq-len, attention_size (hidden)
    key = jax.random.PRNGKey(0)
    k_x, k_v = jax.random.split(key)

    inputs = jax.random.normal(k_x, (B, T, H), dtype=jnp.float32)

    # Deterministic init matching reset_parameters(): uniform(-stdv, stdv)
    stdv = 1.0 / math.sqrt(H)
    attention_vector = jax.random.uniform(
        k_v, (H,), dtype=jnp.float32, minval=-stdv, maxval=stdv
    )

    input_lengths = jnp.array([8, 5], dtype=jnp.int32)

    rep, att = attention_forward(inputs, attention_vector, input_lengths)
    rep, att = jax.block_until_ready((rep, att))

    rep_ref, att_ref = _reference(inputs, attention_vector, input_lengths)

    assert rep.shape == (B, H) and att.shape == (B, T)
    assert jnp.allclose(rep, rep_ref, atol=1e-5, rtol=1e-5)
    assert jnp.allclose(att, att_ref, atol=1e-5, rtol=1e-5)
    # attention rows must sum to 1 over the valid region
    assert jnp.allclose(jnp.sum(att, axis=1), jnp.ones((B,)), atol=1e-5)

    print("KERNEL_OK")
</pallas_src>

<mosaic_0001>
module attributes {stable_mosaic.version = 11 : i64} {
  func.func @_attention_kernel(%arg0: i32, %arg1: memref<8x128x128xf32, #tpu.memory_space<vmem>>, %arg2: memref<1x1x128xf32, #tpu.memory_space<vmem>>, %arg3: memref<8x1xi32, #tpu.memory_space<vmem>>, %arg4: memref<8x128xf32, #tpu.memory_space<vmem>>, %arg5: memref<8x128xf32, #tpu.memory_space<vmem>>) attributes {dimension_semantics = [#tpu.dimension_semantics<parallel>], iteration_bounds = array<i64: 1>, scalar_prefetch = 0 : i64, scratch_operands = 0 : i64, tpu.core_type = #tpu.core_type<tc>, window_params = [{transform_indices = @transform_0, window_bounds = array<i64: 8, 128, 128>}, {pipeline_mode = #tpu.pipeline_mode<synchronous>, transform_indices = @transform_1, window_bounds = array<i64: 1, 1, 128>}, {transform_indices = @transform_2, window_bounds = array<i64: 8, 1>}, {transform_indices = @transform_3, window_bounds = array<i64: 8, 128>}, {transform_indices = @transform_4, window_bounds = array<i64: 8, 128>}]} {
    %c0 = arith.constant 0 : index
    %c0_0 = arith.constant 0 : index
    %c0_1 = arith.constant 0 : index
    %0 = vector.load %arg1[%c0, %c0_0, %c0_1] : memref<8x128x128xf32, #tpu.memory_space<vmem>>, vector<8x128x128xf32>
    %c0_2 = arith.constant 0 : index
    %c0_3 = arith.constant 0 : index
    %c0_4 = arith.constant 0 : index
    %1 = vector.load %arg2[%c0_2, %c0_3, %c0_4] : memref<1x1x128xf32, #tpu.memory_space<vmem>>, vector<1x1x128xf32>
    %c0_5 = arith.constant 0 : index
    %c0_6 = arith.constant 0 : index
    %2 = vector.load %arg3[%c0_5, %c0_6] : memref<8x1xi32, #tpu.memory_space<vmem>>, vector<8x1xi32>
    %3 = vector.broadcast %1 : vector<1x1x128xf32> to vector<8x128x128xf32>
    %4 = arith.mulf %0, %3 : vector<8x128x128xf32>
    %cst = arith.constant dense<0.000000e+00> : vector<8x128xf32>
    %5 = vector.multi_reduction <add>, %4, %cst [2] : vector<8x128x128xf32> to vector<8x128xf32>
    %cst_7 = arith.constant dense<0xFF800000> : vector<8xf32>
    %6 = vector.multi_reduction <maximumf>, %5, %cst_7 [1] : vector<8x128xf32> to vector<8xf32>
    %7 = vector.shape_cast %6 : vector<8xf32> to vector<8x1xf32>
    %8 = vector.broadcast %7 : vector<8x1xf32> to vector<8x128xf32>
    %9 = arith.subf %5, %8 : vector<8x128xf32>
    %10 = math.exp %9 : vector<8x128xf32>
    %11 = tpu.iota {dimensions = array<i32: 1>} : vector<8x128xi32>
    %12 = vector.broadcast %2 : vector<8x1xi32> to vector<8x128xi32>
    %13 = arith.cmpi slt, %11, %12 : vector<8x128xi32>
    %14 = arith.extui %13 : vector<8x128xi1> to vector<8x128xi32>
    %15 = arith.sitofp %14 : vector<8x128xi32> to vector<8x128xf32>
    %16 = arith.mulf %10, %15 : vector<8x128xf32>
    %cst_8 = arith.constant dense<0.000000e+00> : vector<8xf32>
    %17 = vector.multi_reduction <add>, %16, %cst_8 [1] : vector<8x128xf32> to vector<8xf32>
    %18 = vector.shape_cast %17 : vector<8xf32> to vector<8x1xf32>
    %19 = tpu.reciprocal %18 : vector<8x1xf32> -> vector<8x1xf32>
    %20 = vector.broadcast %19 : vector<8x1xf32> to vector<8x128xf32>
    %21 = arith.mulf %16, %20 : vector<8x128xf32>
    %c0_9 = arith.constant 0 : index
    %c0_10 = arith.constant 0 : index
    %22 = vector.load %arg5[%c0_9, %c0_10] : memref<8x128xf32, #tpu.memory_space<vmem>>, vector<8x128xf32>
    tpu.vector_store %arg5[%c0_9, %c0_10], %21 {strides = array<i32>} : memref<8x128xf32, #tpu.memory_space<vmem>>, vector<8x128xf32>,
    %23 = vector.shape_cast %21 : vector<8x128xf32> to vector<8x128x1xf32>
    %24 = vector.broadcast %23 : vector<8x128x1xf32> to vector<8x128x128xf32>
    %25 = arith.mulf %0, %24 : vector<8x128x128xf32>
    %cst_11 = arith.constant dense<0.000000e+00> : vector<8x128xf32>
    %26 = vector.multi_reduction <add>, %25, %cst_11 [1] : vector<8x128x128xf32> to vector<8x128xf32>
    %c0_12 = arith.constant 0 : index
    %c0_13 = arith.constant 0 : index
    %27 = vector.load %arg4[%c0_12, %c0_13] : memref<8x128xf32, #tpu.memory_space<vmem>>, vector<8x128xf32>
    tpu.vector_store %arg4[%c0_12, %c0_13], %26 {strides = array<i32>} : memref<8x128xf32, #tpu.memory_space<vmem>>, vector<8x128xf32>,
    return
  }
  func.func @transform_0(%arg0: i32) -> (i32, i32, i32) {
    %c0_i32 = arith.constant 0 : i32
    %c0_i32_0 = arith.constant 0 : i32
    %c0_i32_1 = arith.constant 0 : i32
    return %arg0, %c0_i32, %c0_i32_0 : i32, i32, i32
  }
  func.func @transform_1(%arg0: i32) -> (i32, i32, i32) {
    %c0_i32 = arith.constant 0 : i32
    %c0_i32_0 = arith.constant 0 : i32
    %c0_i32_1 = arith.constant 0 : i32
    %c0_i32_2 = arith.constant 0 : i32
    return %c0_i32, %c0_i32_0, %c0_i32_1 : i32, i32, i32
  }
  func.func @transform_2(%arg0: i32) -> (i32, i32) {
    %c0_i32 = arith.constant 0 : i32
    %c0_i32_0 = arith.constant 0 : i32
    return %arg0, %c0_i32 : i32, i32
  }
  func.func @transform_3(%arg0: i32) -> (i32, i32) {
    %c0_i32 = arith.constant 0 : i32
    %c0_i32_0 = arith.constant 0 : i32
    return %arg0, %c0_i32 : i32, i32
  }
  func.func @transform_4(%arg0: i32) -> (i32, i32) {
    %c0_i32 = arith.constant 0 : i32
    %c0_i32_0 = arith.constant 0 : i32
    return %arg0, %c0_i32 : i32, i32
  }
}

</mosaic_0001>

<bundles_post_ra>
// kernel: tpu_custom_call.1
= control target key start
LH: loop header
LB: loop body
LE: loop exit
PB: predicated region body
PF: predicated region fallthrough
CT: control target
= control target key end

     0   :  { %10 = vsyncpa [#allocation3], 0  ;;  %s9560_s0 = inlined_call_operand.hbm [shape: f32[8,128,128], index: 0, kind: input, shape index: {}]   ;;  %s9561_s1 = inlined_call_operand.vmem [shape: f32[1,1,128], index: 1, kind: input, shape index: {}]   ;;  %s9562_s2 = inlined_call_operand.vmem [shape: s32[8,1], index: 2, kind: input, shape index: {}]   ;;  %s9563_s3 = inlined_call_operand.hbm [shape: f32[8,128], index: 3, kind: output, shape index: {0}]   ;;  %s9564_s4 = inlined_call_operand.hbm [shape: f32[8,128], index: 4, kind: output, shape index: {1}]  }
   0x1   :  { %11 = vsyncpa [#allocation4], 0 }
   0x2   :  { %12 = vsyncpa [#allocation7], 0  ;;  %s6001_s15 = smov [#allocation2]   ;;  %s5929_s19 = scalar_lea.hbm %s9560_s0, 16384 }
   0x3   :  { %s18_s16 = sshll.u32 %s6001_s15, 4  ;;  %p5930_p0 = scmp.ne.s32.totalorder %s9560_s0, %s5929_s19  ;;  %s19_s16 = int_to_ptr.vmem [resolvable:$true] %s18_s16 }
   0x4   :  { %p5933_p1 = scmp.lt.u32.totalorder %s5929_s19, %s9560_s0 }
   0x6   :  { %p5935_p2 = pnand %p5933_p1, %p5930_p0 }
   0x8   :  { %5938 = shalt.err (!%p5935_p2)
}
   0x9   :  { %s5939_s24 = scalar_lea.vmem %s19_s16, 16384  ;;  %p5944_p4 = scmp.lt.s32.totalorder %s19_s16, %s19_s16 }
   0xa   :  { %p5940_p3 = scmp.ne.s32.totalorder %s19_s16, %s5939_s24  ;;  %p5945_p5 = scmp.lt.s32.totalorder %s5939_s24, %s5939_s24 }
   0xc   :  { %p5946_p6 = por %p5945_p5, %p5944_p4 }
   0xe   :  { %p5947_p7 = pnand %p5946_p6, %p5940_p3 }
  0x10   :  { %5950 = shalt.err (!%p5947_p7)
}
  0x11   :  { %s6002_s25 = smov 128   ;;  %s6003_s26 = smov 8  }
  0x12   :  { %24 = dma.hbm_to_vmem [thread:$0]  %s9560_s0, 16384, %s19_s16, [#allocation3], %s6002_s25, %s6002_s25, %s6003_s26  }
  0x13   :  { %5995 = dma.done.wait [#allocation3], 16384  }
  0x14   :  { %5996 = vsyncadd [#allocation3], 4294950912  ;;  %v34_v0 = vld [vmem:[#allocation2 + $0x10] sm:$0xff]  ;;  %v6048_v1 = vld [vmem:[%s9561_s1] ss:$0 sm:$0xff]  ;;  %vm691_vm0 = vcmask 130112  }
  0x15   :  { %v32_v2 = vld [vmem:[#allocation2] sm:$0xff]  ;;  %v170_v3 = vmul.f32 %v6048_v1, %v34_v0  ;;  %v35_v5 = vld [vmem:[#allocation2 + $0x18] sm:$0xff]  ;;  %v33_v6 = vld [vmem:[#allocation2 + $0x8] sm:$0xff]  ;;  %vm698_vm1 = vcmask 195712   ;;  %vm705_vm2 = vcmask 261312   ;;  %vm9873_vm3 = vcmask 326912  }
  0x16   :  { %v168_v4 = vmul.f32 %v6048_v1, %v32_v2  ;;  %v171_v7 = vmul.f32 %v6048_v1, %v35_v5  ;;  %v169_v8 = vmul.f32 %v6048_v1, %v33_v6  ;;  %v37_v9 = vld [vmem:[#allocation2 + $0x28] sm:$0xff]  ;;  %v36_v10 = vld [vmem:[#allocation2 + $0x20] sm:$0xff]  ;;  %v39_v13 = vld [vmem:[#allocation2 + $0x38] sm:$0xff]  ;;  %vm9687_vm4 = vcmask 392512  }
  0x17   :  { %300 = vadd.xlane.f32.xlu1 %v170_v3  ;;  %v173_v11 = vmul.f32 %v6048_v1, %v37_v9  ;;  %v172_v12 = vmul.f32 %v6048_v1, %v36_v10  ;;  %v38_v14 = vld [vmem:[#allocation2 + $0x30] sm:$0xff]  ;;  %v175_v15 = vmul.f32 %v6048_v1, %v39_v13  ;;  %v41_v17 = vld [vmem:[#allocation2 + $0x48] sm:$0xff]  ;;  %v40_v18 = vld [vmem:[#allocation2 + $0x40] sm:$0xff]  ;;  %vm9689_vm5 = vcmask 458112  }
  0x18   :  { %296 = vadd.xlane.f32.xlu0 %v168_v4  ;;  %v174_v16 = vmul.f32 %v6048_v1, %v38_v14  ;;  %v177_v19 = vmul.f32 %v6048_v1, %v41_v17  ;;  %v176_v20 = vmul.f32 %v6048_v1, %v40_v18  ;;  %v43_v21 = vld [vmem:[#allocation2 + $0x58] sm:$0xff]  ;;  %v42_v22 = vld [vmem:[#allocation2 + $0x50] sm:$0xff]  ;;  %v45_v25 = vld [vmem:[#allocation2 + $0x68] sm:$0xff]  ;;  %vm733_vm6 = vcmask 523712  }
  0x19   :  { %v179_v23 = vmul.f32 %v6048_v1, %v43_v21  ;;  %v178_v24 = vmul.f32 %v6048_v1, %v42_v22  ;;  %v44_v26 = vld [vmem:[#allocation2 + $0x60] sm:$0xff]  ;;  %v181_v27 = vmul.f32 %v6048_v1, %v45_v25  ;;  %v47_v29 = vld [vmem:[#allocation2 + $0x78] sm:$0xff]  ;;  %v46_v30 = vld [vmem:[#allocation2 + $0x70] sm:$0xff]  ;;  %vm9707_vm7 = vcmask 589312  }
  0x1a   :  { %v180_v28 = vmul.f32 %v6048_v1, %v44_v26  ;;  %v183_v31 = vmul.f32 %v6048_v1, %v47_v29  ;;  %v182_v32 = vmul.f32 %v6048_v1, %v46_v30  ;;  %v49_v33 = vld [vmem:[#allocation2 + $0x88] sm:$0xff]  ;;  %v48_v34 = vld [vmem:[#allocation2 + $0x80] sm:$0xff]  ;;  %v51_v37 = vld [vmem:[#allocation2 + $0x98] sm:$0xff]  ;;  %vm9706_vm8 = vcmask 654912  }
  0x1b   :  { %302 = vadd.xlane.f32.xlu1 %v171_v7  ;;  %v185_v35 = vmul.f32 %v6048_v1, %v49_v33  ;;  %v184_v36 = vmul.f32 %v6048_v1, %v48_v34  ;;  %v50_v38 = vld [vmem:[#allocation2 + $0x90] sm:$0xff]  ;;  %v187_v39 = vmul.f32 %v6048_v1, %v51_v37  ;;  %v53_v41 = vld [vmem:[#allocation2 + $0xa8] sm:$0xff]  ;;  %v52_v42 = vld [vmem:[#allocation2 + $0xa0] sm:$0xff]  ;;  %vm9705_vm9 = vcmask 720512  }
  0x1c   :  { %298 = vadd.xlane.f32.xlu0 %v169_v8  ;;  %v186_v40 = vmul.f32 %v6048_v1, %v50_v38  ;;  %v189_v43 = vmul.f32 %v6048_v1, %v53_v41  ;;  %v188_v44 = vmul.f32 %v6048_v1, %v52_v42  ;;  %v55_v45 = vld [vmem:[#allocation2 + $0xb8] sm:$0xff]  ;;  %v54_v46 = vld [vmem:[#allocation2 + $0xb0] sm:$0xff]  ;;  %v57_v49 = vld [vmem:[#allocation2 + $0xc8] sm:$0xff]  ;;  %vm761_vm10 = vcmask 786112  }
  0x1d   :  { %v191_v47 = vmul.f32 %v6048_v1, %v55_v45  ;;  %v190_v48 = vmul.f32 %v6048_v1, %v54_v46  ;;  %v56_v50 = vld [vmem:[#allocation2 + $0xc0] sm:$0xff]  ;;  %v193_v51 = vmul.f32 %v6048_v1, %v57_v49  ;;  %v59_v53 = vld [vmem:[#allocation2 + $0xd8] sm:$0xff]  ;;  %v58_v54 = vld [vmem:[#allocation2 + $0xd0] sm:$0xff]  ;;  %vm768_vm11 = vcmask 851712  }
  0x1e   :  { %v192_v52 = vmul.f32 %v6048_v1, %v56_v50  ;;  %v195_v55 = vmul.f32 %v6048_v1, %v59_v53  ;;  %v194_v56 = vmul.f32 %v6048_v1, %v58_v54  ;;  %v61_v57 = vld [vmem:[#allocation2 + $0xe8] sm:$0xff]  ;;  %v60_v58 = vld [vmem:[#allocation2 + $0xe0] sm:$0xff]  ;;  %v63_v61 = vld [vmem:[#allocation2 + $0xf8] sm:$0xff]  ;;  %vm775_vm12 = vcmask 917312  }
  0x1f   :  { %306 = vadd.xlane.f32.xlu1 %v173_v11  ;;  %v197_v59 = vmul.f32 %v6048_v1, %v61_v57  ;;  %v196_v60 = vmul.f32 %v6048_v1, %v60_v58  ;;  %v62_v62 = vld [vmem:[#allocation2 + $0xf0] sm:$0xff]  ;;  %v199_v63 = vmul.f32 %v6048_v1, %v63_v61  ;;  %v65_v2 = vld [vmem:[#allocation2 + $0x108] sm:$0xff]  ;;  %v64_v3 = vld [vmem:[#allocation2 + $0x100] sm:$0xff]  ;;  %vm782_vm13 = vcmask 982912  }
  0x20   :  { %304 = vadd.xlane.f32.xlu0 %v172_v12  ;;  %v198_v0 = vmul.f32 %v6048_v1, %v62_v62  ;;  %v201_v4 = vmul.f32 %v6048_v1, %v65_v2  ;;  %v200_v5 = vmul.f32 %v6048_v1, %v64_v3  ;;  %v67_v6 = vld [vmem:[#allocation2 + $0x118] sm:$0xff]  ;;  %v66_v7 = vld [vmem:[#allocation2 + $0x110] sm:$0xff]  ;;  %v69_v10 = vld [vmem:[#allocation2 + $0x128] sm:$0xff]  ;;  %vm789_vm14 = vcmask 1048512  }
  0x21   :  { %v203_v8 = vmul.f32 %v6048_v1, %v67_v6  ;;  %v202_v9 = vmul.f32 %v6048_v1, %v66_v7  ;;  %v68_v11 = vld [vmem:[#allocation2 + $0x120] sm:$0xff]  ;;  %v205_v12 = vmul.f32 %v6048_v1, %v69_v10  ;;  %v71_v14 = vld [vmem:[#allocation2 + $0x138] sm:$0xff]  ;;  %v73_v18 = vld [vmem:[#allocation2 + $0x148] sm:$0xff]  ;;  %vm9709_vm15 = vcmask 1041409  }
  0x22   :  { %v204_v13 = vmul.f32 %v6048_v1, %v68_v11  ;;  %v75_v22 = vld [vmem:[#allocation2 + $0x158] sm:$0xff]  ;;  %v77_v26 = vld [vmem:[#allocation2 + $0x168] sm:$0xff] }
  0x23   :  { %310 = vadd.xlane.f32.xlu1 %v175_v15  ;;  %v70_v15 = vld [vmem:[#allocation2 + $0x130] sm:$0xff]  ;;  %v79_v30 = vld [vmem:[#allocation2 + $0x178] sm:$0xff]  ;;  %v81_v34 = vld [vmem:[#allocation2 + $0x188] sm:$0xff] }
  0x24   :  { %308 = vadd.xlane.f32.xlu0 %v174_v16  ;;  %v207_v16 = vmul.f32 %v6048_v1, %v71_v14  ;;  %v206_v17 = vmul.f32 %v6048_v1, %v70_v15  ;;  %v83_v38 = vld [vmem:[#allocation2 + $0x198] sm:$0xff]  ;;  %v85_v42 = vld [vmem:[#allocation2 + $0x1a8] sm:$0xff] }
  0x25   :  { %v87_v46 = vld [vmem:[#allocation2 + $0x1b8] sm:$0xff]  ;;  %v89_v50 = vld [vmem:[#allocation2 + $0x1c8] sm:$0xff] }
  0x26   :  { %v91_v54 = vld [vmem:[#allocation2 + $0x1d8] sm:$0xff]  ;;  %v93_v58 = vld [vmem:[#allocation2 + $0x1e8] sm:$0xff] }
  0x27   :  { %314 = vadd.xlane.f32.xlu1 %v177_v19  ;;  %v72_v19 = vld [vmem:[#allocation2 + $0x140] sm:$0xff]  ;;  %v95_v62 = vld [vmem:[#allocation2 + $0x1f8] sm:$0xff]  ;;  %v97_v3 = vld [vmem:[#allocation2 + $0x208] sm:$0xff] }
  0x28   :  { %312 = vadd.xlane.f32.xlu0 %v176_v20  ;;  %v209_v20 = vmul.f32 %v6048_v1, %v73_v18  ;;  %v208_v21 = vmul.f32 %v6048_v1, %v72_v19  ;;  %v99_v7 = vld [vmem:[#allocation2 + $0x218] sm:$0xff]  ;;  %v101_v11 = vld [vmem:[#allocation2 + $0x228] sm:$0xff] }
  0x29   :  { %v103_v15 = vld [vmem:[#allocation2 + $0x238] sm:$0xff]  ;;  %v105_v19 = vld [vmem:[#allocation2 + $0x248] sm:$0xff] }
  0x2b   :  { %318 = vadd.xlane.f32.xlu1 %v179_v23  ;;  %v74_v23 = vld [vmem:[#allocation2 + $0x150] sm:$0xff] }
  0x2c   :  { %316 = vadd.xlane.f32.xlu0 %v178_v24  ;;  %v211_v24 = vmul.f32 %v6048_v1, %v75_v22  ;;  %v210_v25 = vmul.f32 %v6048_v1, %v74_v23 }
  0x2f   :  { %322 = vadd.xlane.f32.xlu1 %v181_v27  ;;  %v76_v27 = vld [vmem:[#allocation2 + $0x160] sm:$0xff] }
  0x30   :  { %320 = vadd.xlane.f32.xlu0 %v180_v28  ;;  %v213_v28 = vmul.f32 %v6048_v1, %v77_v26  ;;  %v212_v29 = vmul.f32 %v6048_v1, %v76_v27  ;;  %v106_v26 = vld [vmem:[#allocation2 + $0x250] sm:$0xff]  ;;  %v6004_v27 = vmov 0  }
  0x31   :  { %5541 = vset.pattern.permute.xlu1 %v6004_v27  ;;  %5542 = vset.pattern.permute.xlu0 %v6004_v27 }
  0x33   :  { %326 = vadd.xlane.f32.xlu1 %v183_v31  ;;  %v78_v31 = vld [vmem:[#allocation2 + $0x170] sm:$0xff] }
  0x34   :  { %324 = vadd.xlane.f32.xlu0 %v182_v32  ;;  %v215_v32 = vmul.f32 %v6048_v1, %v79_v30  ;;  %v214_v33 = vmul.f32 %v6048_v1, %v78_v31 }
  0x37   :  { %330 = vadd.xlane.f32.xlu1 %v185_v35  ;;  %v80_v35 = vld [vmem:[#allocation2 + $0x180] sm:$0xff] }
  0x38   :  { %328 = vadd.xlane.f32.xlu0 %v184_v36  ;;  %v217_v36 = vmul.f32 %v6048_v1, %v81_v34  ;;  %v216_v37 = vmul.f32 %v6048_v1, %v80_v35 }
  0x3b   :  { %334 = vadd.xlane.f32.xlu1 %v187_v39  ;;  %v82_v39 = vld [vmem:[#allocation2 + $0x190] sm:$0xff] }
  0x3c   :  { %332 = vadd.xlane.f32.xlu0 %v186_v40  ;;  %v219_v40 = vmul.f32 %v6048_v1, %v83_v38  ;;  %v218_v41 = vmul.f32 %v6048_v1, %v82_v39  ;;  %v111_v38 = vld [vmem:[#allocation2 + $0x278] sm:$0xff]  ;;  %v110_v39 = vld [vmem:[#allocation2 + $0x270] sm:$0xff] }
  0x3f   :  { %338 = vadd.xlane.f32.xlu1 %v189_v43  ;;  %v84_v43 = vld [vmem:[#allocation2 + $0x1a0] sm:$0xff] }
  0x40   :  { %336 = vadd.xlane.f32.xlu0 %v188_v44  ;;  %v221_v44 = vmul.f32 %v6048_v1, %v85_v42  ;;  %v220_v45 = vmul.f32 %v6048_v1, %v84_v43 }
  0x43   :  { %342 = vadd.xlane.f32.xlu1 %v191_v47  ;;  %v86_v47 = vld [vmem:[#allocation2 + $0x1b0] sm:$0xff] }
  0x44   :  { %340 = vadd.xlane.f32.xlu0 %v190_v48  ;;  %v223_v48 = vmul.f32 %v6048_v1, %v87_v46  ;;  %v222_v49 = vmul.f32 %v6048_v1, %v86_v47 }
  0x47   :  { %346 = vadd.xlane.f32.xlu1 %v193_v51  ;;  %v88_v51 = vld [vmem:[#allocation2 + $0x1c0] sm:$0xff] }
  0x48   :  { %344 = vadd.xlane.f32.xlu0 %v192_v52  ;;  %v225_v52 = vmul.f32 %v6048_v1, %v89_v50  ;;  %v224_v53 = vmul.f32 %v6048_v1, %v88_v51  ;;  %v115_v50 = vld [vmem:[#allocation2 + $0x298] sm:$0xff]  ;;  %v114_v51 = vld [vmem:[#allocation2 + $0x290] sm:$0xff] }
  0x4b   :  { %350 = vadd.xlane.f32.xlu1 %v195_v55  ;;  %v90_v55 = vld [vmem:[#allocation2 + $0x1d0] sm:$0xff] }
  0x4c   :  { %348 = vadd.xlane.f32.xlu0 %v194_v56  ;;  %v227_v56 = vmul.f32 %v6048_v1, %v91_v54  ;;  %v226_v57 = vmul.f32 %v6048_v1, %v90_v55 }
  0x4f   :  { %354 = vadd.xlane.f32.xlu1 %v197_v59  ;;  %v92_v59 = vld [vmem:[#allocation2 + $0x1e0] sm:$0xff] }
  0x50   :  { %352 = vadd.xlane.f32.xlu0 %v196_v60  ;;  %v229_v60 = vmul.f32 %v6048_v1, %v93_v58  ;;  %v228_v61 = vmul.f32 %v6048_v1, %v92_v59 }
  0x53   :  { %358 = vadd.xlane.f32.xlu1 %v199_v63  ;;  %v94_v63 = vld [vmem:[#allocation2 + $0x1f0] sm:$0xff] }
  0x54   :  { %356 = vadd.xlane.f32.xlu0 %v198_v0  ;;  %v231_v0 = vmul.f32 %v6048_v1, %v95_v62  ;;  %v230_v2 = vmul.f32 %v6048_v1, %v94_v63  ;;  %v119_v62 = vld [vmem:[#allocation2 + $0x2b8] sm:$0xff]  ;;  %v118_v63 = vld [vmem:[#allocation2 + $0x2b0] sm:$0xff] }
  0x57   :  { %362 = vadd.xlane.f32.xlu1 %v201_v4  ;;  %v96_v4 = vld [vmem:[#allocation2 + $0x200] sm:$0xff] }
  0x58   :  { %360 = vadd.xlane.f32.xlu0 %v200_v5  ;;  %v233_v5 = vmul.f32 %v6048_v1, %v97_v3  ;;  %v232_v6 = vmul.f32 %v6048_v1, %v96_v4 }
  0x5b   :  { %366 = vadd.xlane.f32.xlu1 %v203_v8  ;;  %v98_v8 = vld [vmem:[#allocation2 + $0x210] sm:$0xff] }
  0x5c   :  { %364 = vadd.xlane.f32.xlu0 %v202_v9  ;;  %v235_v9 = vmul.f32 %v6048_v1, %v99_v7  ;;  %v234_v10 = vmul.f32 %v6048_v1, %v98_v8 }
  0x5f   :  { %370 = vadd.xlane.f32.xlu1 %v205_v12  ;;  %v100_v12 = vld [vmem:[#allocation2 + $0x220] sm:$0xff] }
  0x60   :  { %368 = vadd.xlane.f32.xlu0 %v204_v13  ;;  %v237_v13 = vmul.f32 %v6048_v1, %v101_v11  ;;  %v236_v14 = vmul.f32 %v6048_v1, %v100_v12  ;;  %v123_v11 = vld [vmem:[#allocation2 + $0x2d8] sm:$0xff]  ;;  %v122_v12 = vld [vmem:[#allocation2 + $0x2d0] sm:$0xff] }
  0x63   :  { %374 = vadd.xlane.f32.xlu1 %v207_v16  ;;  %v102_v16 = vld [vmem:[#allocation2 + $0x230] sm:$0xff] }
  0x64   :  { %372 = vadd.xlane.f32.xlu0 %v206_v17  ;;  %v239_v17 = vmul.f32 %v6048_v1, %v103_v15  ;;  %v238_v18 = vmul.f32 %v6048_v1, %v102_v16 }
  0x67   :  { %378 = vadd.xlane.f32.xlu1 %v209_v20  ;;  %v104_v20 = vld [vmem:[#allocation2 + $0x240] sm:$0xff] }
  0x68   :  { %376 = vadd.xlane.f32.xlu0 %v208_v21  ;;  %v241_v21 = vmul.f32 %v6048_v1, %v105_v19  ;;  %v240_v22 = vmul.f32 %v6048_v1, %v104_v20 }
  0x6b   :  { %382 = vadd.xlane.f32.xlu1 %v211_v24 }
  0x6c   :  { %380 = vadd.xlane.f32.xlu0 %v210_v25  ;;  %v107_v25 = vld [vmem:[#allocation2 + $0x258] sm:$0xff] }
  0x6f   :  { %386 = vadd.xlane.f32.xlu1 %v213_v28  ;;  %v243_v28 = vmul.f32 %v6048_v1, %v107_v25  ;;  %v127_v25 = vld [vmem:[#allocation2 + $0x2f8] sm:$0xff] }
  0x70   :  { %384 = vadd.xlane.f32.xlu0 %v212_v29  ;;  %v242_v29 = vmul.f32 %v6048_v1, %v106_v26  ;;  %v126_v26 = vld [vmem:[#allocation2 + $0x2f0] sm:$0xff]  ;;  %v263_v27 = vmul.f32 %v6048_v1, %v127_v25 }
  0x73   :  { %390 = vadd.xlane.f32.xlu1 %v215_v32  ;;  %v109_v32 = vld [vmem:[#allocation2 + $0x268] sm:$0xff] }
  0x74   :  { %388 = vadd.xlane.f32.xlu0 %v214_v33  ;;  %v108_v33 = vld [vmem:[#allocation2 + $0x260] sm:$0xff]  ;;  %v245_v34 = vmul.f32 %v6048_v1, %v109_v32 }
  0x75   :  { %v244_v35 = vmul.f32 %v6048_v1, %v108_v33  ;;  %v129_v33 = vld [vmem:[#allocation2 + $0x308] sm:$0xff] }
  0x77   :  { %394 = vadd.xlane.f32.xlu1 %v217_v36 }
  0x78   :  { %392 = vadd.xlane.f32.xlu0 %v216_v37 }
  0x7b   :  { %398 = vadd.xlane.f32.xlu1 %v219_v40  ;;  %v247_v40 = vmul.f32 %v6048_v1, %v111_v38 }
  0x7c   :  { %396 = vadd.xlane.f32.xlu0 %v218_v41  ;;  %v246_v41 = vmul.f32 %v6048_v1, %v110_v39 }
  0x7f   :  { %402 = vadd.xlane.f32.xlu1 %v221_v44  ;;  %v113_v44 = vld [vmem:[#allocation2 + $0x288] sm:$0xff] }
  0x80   :  { %400 = vadd.xlane.f32.xlu0 %v220_v45  ;;  %v112_v45 = vld [vmem:[#allocation2 + $0x280] sm:$0xff]  ;;  %v249_v46 = vmul.f32 %v6048_v1, %v113_v44  ;;  %v130_v44 = vld [vmem:[#allocation2 + $0x310] sm:$0xff] }
  0x81   :  { %v248_v47 = vmul.f32 %v6048_v1, %v112_v45 }
  0x83   :  { %406 = vadd.xlane.f32.xlu1 %v223_v48 }
  0x84   :  { %404 = vadd.xlane.f32.xlu0 %v222_v49 }
  0x87   :  { %410 = vadd.xlane.f32.xlu1 %v225_v52  ;;  %v251_v52 = vmul.f32 %v6048_v1, %v115_v50 }
  0x88   :  { %408 = vadd.xlane.f32.xlu0 %v224_v53  ;;  %v250_v53 = vmul.f32 %v6048_v1, %v114_v51  ;;  %v133_v51 = vld [vmem:[#allocation2 + $0x328] sm:$0xff] }
  0x8b   :  { %414 = vadd.xlane.f32.xlu1 %v227_v56  ;;  %v117_v56 = vld [vmem:[#allocation2 + $0x2a8] sm:$0xff] }
  0x8c   :  { %412 = vadd.xlane.f32.xlu0 %v226_v57  ;;  %v116_v57 = vld [vmem:[#allocation2 + $0x2a0] sm:$0xff]  ;;  %v253_v58 = vmul.f32 %v6048_v1, %v117_v56 }
  0x8d   :  { %v252_v59 = vmul.f32 %v6048_v1, %v116_v57 }
  0x8f   :  { %418 = vadd.xlane.f32.xlu1 %v229_v60 }
  0x90   :  { %416 = vadd.xlane.f32.xlu0 %v228_v61 }
  0x93   :  { %422 = vadd.xlane.f32.xlu1 %v231_v0  ;;  %v255_v0 = vmul.f32 %v6048_v1, %v119_v62  ;;  %v134_v62 = vld [vmem:[#allocation2 + $0x330] sm:$0xff] }
  0x94   :  { %420 = vadd.xlane.f32.xlu0 %v230_v2  ;;  %v254_v2 = vmul.f32 %v6048_v1, %v118_v63 }
  0x97   :  { %426 = vadd.xlane.f32.xlu1 %v233_v5  ;;  %v121_v5 = vld [vmem:[#allocation2 + $0x2c8] sm:$0xff] }
  0x98   :  { %424 = vadd.xlane.f32.xlu0 %v232_v6  ;;  %v120_v6 = vld [vmem:[#allocation2 + $0x2c0] sm:$0xff]  ;;  %v257_v7 = vmul.f32 %v6048_v1, %v121_v5 }
  0x99   :  { %v256_v8 = vmul.f32 %v6048_v1, %v120_v6  ;;  %v137_v6 = vld [vmem:[#allocation2 + $0x348] sm:$0xff] }
  0x9b   :  { %430 = vadd.xlane.f32.xlu1 %v235_v9 }
  0x9c   :  { %428 = vadd.xlane.f32.xlu0 %v234_v10 }
  0x9f   :  { %434 = vadd.xlane.f32.xlu1 %v237_v13  ;;  %v259_v13 = vmul.f32 %v6048_v1, %v123_v11 }
  0xa0   :  { %432 = vadd.xlane.f32.xlu0 %v236_v14  ;;  %v258_v14 = vmul.f32 %v6048_v1, %v122_v12 }
  0xa3   :  { %438 = vadd.xlane.f32.xlu1 %v239_v17  ;;  %v125_v17 = vld [vmem:[#allocation2 + $0x2e8] sm:$0xff] }
  0xa4   :  { %436 = vadd.xlane.f32.xlu0 %v238_v18  ;;  %v6124_v23 = vpop.xlane.xlu1 %300  ;;  %v124_v18 = vld [vmem:[#allocation2 + $0x2e0] sm:$0xff]  ;;  %v261_v19 = vmul.f32 %v6048_v1, %v125_v17  ;;  %v138_v17 = vld [vmem:[#allocation2 + $0x350] sm:$0xff] }
  0xa5   :  { %9884 = vst [vmem:[#allocation11_spill] sm:$0xff] %v6124_v23  ;;  %v6126_v24 = vpop.xlane.xlu0 %296  ;;  %v260_v20 = vmul.f32 %v6048_v1, %v124_v18 }
  0xa6   :  { %9885 = vst [vmem:[#allocation12_spill] sm:$0xff] %v6126_v24 }
  0xa7   :  { %442 = vadd.xlane.f32.xlu1 %v241_v21 }
  0xa8   :  { %440 = vadd.xlane.f32.xlu0 %v240_v22  ;;  %v6130_v30 = vpop.xlane.xlu1 %302 }
  0xa9   :  { %9886 = vst [vmem:[#allocation13_spill] sm:$0xff] %v6130_v30  ;;  %v6132_v31 = vpop.xlane.xlu0 %298 }
  0xaa   :  { %9887 = vst [vmem:[#allocation14_spill] sm:$0xff] %v6132_v31 }
  0xab   :  { %446 = vadd.xlane.f32.xlu1 %v243_v28  ;;  %v262_v28 = vmul.f32 %v6048_v1, %v126_v26  ;;  %v141_v26 = vld [vmem:[#allocation2 + $0x368] sm:$0xff] }
  0xac   :  { %444 = vadd.xlane.f32.xlu0 %v242_v29  ;;  %v6136_v36 = vpop.xlane.xlu1 %306 }
  0xad   :  { %9888 = vst [vmem:[#allocation15_spill] sm:$0xff] %v6136_v36  ;;  %v6138_v37 = vpop.xlane.xlu0 %304 }
  0xae   :  { %9889 = vst [vmem:[#allocation16_spill] sm:$0xff] %v6138_v37 }
  0xaf   :  { %450 = vadd.xlane.f32.xlu1 %v245_v34  ;;  %v128_v34 = vld [vmem:[#allocation2 + $0x300] sm:$0xff] }
  0xb0   :  { %448 = vadd.xlane.f32.xlu0 %v244_v35  ;;  %v6142_v42 = vpop.xlane.xlu1 %310  ;;  %v265_v35 = vmul.f32 %v6048_v1, %v129_v33  ;;  %v264_v38 = vmul.f32 %v6048_v1, %v128_v34 }
  0xb1   :  { %9890 = vst [vmem:[#allocation17_spill] sm:$0xff] %v6142_v42  ;;  %v6144_v43 = vpop.xlane.xlu0 %308 }
  0xb2   :  { %9891 = vst [vmem:[#allocation18_spill] sm:$0xff] %v6144_v43 }
  0xb3   :  { %454 = vadd.xlane.f32.xlu1 %v247_v40 }
  0xb4   :  { %452 = vadd.xlane.f32.xlu0 %v246_v41  ;;  %v6148_v48 = vpop.xlane.xlu1 %314  ;;  %v131_v41 = vld [vmem:[#allocation2 + $0x318] sm:$0xff] }
  0xb5   :  { %v6150_v49 = vpop.xlane.xlu0 %312  ;;  %v267_v45 = vmul.f32 %v6048_v1, %v131_v41  ;;  %v142_v41 = vld [vmem:[#allocation2 + $0x370] sm:$0xff] }
  0xb7   :  { %458 = vadd.xlane.f32.xlu1 %v249_v46  ;;  %v266_v46 = vmul.f32 %v6048_v1, %v130_v44 }
  0xb8   :  { %456 = vadd.xlane.f32.xlu0 %v248_v47  ;;  %v6154_v54 = vpop.xlane.xlu1 %318 }
  0xb9   :  { %v6156_v55 = vpop.xlane.xlu0 %316 }
  0xbb   :  { %462 = vadd.xlane.f32.xlu1 %v251_v52  ;;  %v132_v52 = vld [vmem:[#allocation2 + $0x320] sm:$0xff] }
  0xbc   :  { %460 = vadd.xlane.f32.xlu0 %v250_v53  ;;  %v6160_v60 = vpop.xlane.xlu1 %322  ;;  %v269_v53 = vmul.f32 %v6048_v1, %v133_v51  ;;  %v268_v56 = vmul.f32 %v6048_v1, %v132_v52  ;;  %v145_v52 = vld [vmem:[#allocation2 + $0x388] sm:$0xff] }
  0xbd   :  { %9892 = vst [vmem:[#allocation19_spill] sm:$0xff] %v6160_v60  ;;  %v6162_v61 = vpop.xlane.xlu0 %320 }
  0xbf   :  { %466 = vadd.xlane.f32.xlu1 %v253_v58 }
  0xc0   :  { %464 = vadd.xlane.f32.xlu0 %v252_v59  ;;  %v6166_v3 = vpop.xlane.xlu1 %326  ;;  %v135_v59 = vld [vmem:[#allocation2 + $0x338] sm:$0xff] }
  0xc1   :  { %9893 = vst [vmem:[#allocation20_spill] sm:$0xff] %v6166_v3  ;;  %v6168_v4 = vpop.xlane.xlu0 %324  ;;  %v271_v63 = vmul.f32 %v6048_v1, %v135_v59 }
  0xc3   :  { %470 = vadd.xlane.f32.xlu1 %v255_v0  ;;  %v270_v0 = vmul.f32 %v6048_v1, %v134_v62 }
  0xc4   :  { %468 = vadd.xlane.f32.xlu0 %v254_v2  ;;  %v6172_v9 = vpop.xlane.xlu1 %330 }
  0xc5   :  { %9894 = vst [vmem:[#allocation21_spill] sm:$0xff] %v6172_v9  ;;  %v6174_v10 = vpop.xlane.xlu0 %328 }
  0xc6   :  { %9895 = vst [vmem:[#allocation22_spill] sm:$0xff] %v6174_v10 }
  0xc7   :  { %474 = vadd.xlane.f32.xlu1 %v257_v7  ;;  %v136_v7 = vld [vmem:[#allocation2 + $0x340] sm:$0xff] }
  0xc8   :  { %472 = vadd.xlane.f32.xlu0 %v256_v8  ;;  %v6178_v15 = vpop.xlane.xlu1 %334  ;;  %v273_v8 = vmul.f32 %v6048_v1, %v137_v6  ;;  %v272_v11 = vmul.f32 %v6048_v1, %v136_v7  ;;  %v146_v6 = vld [vmem:[#allocation2 + $0x390] sm:$0xff] }
  0xc9   :  { %9896 = vst [vmem:[#allocation23_spill] sm:$0xff] %v6178_v15  ;;  %v6180_v16 = vpop.xlane.xlu0 %332 }
  0xca   :  { %9897 = vst [vmem:[#allocation24_spill] sm:$0xff] %v6180_v16 }
  0xcb   :  { %478 = vadd.xlane.f32.xlu1 %v259_v13 }
  0xcc   :  { %476 = vadd.xlane.f32.xlu0 %v258_v14  ;;  %v6184_v21 = vpop.xlane.xlu1 %338  ;;  %v139_v14 = vld [vmem:[#allocation2 + $0x358] sm:$0xff] }
  0xcd   :  { %9898 = vst [vmem:[#allocation25_spill] sm:$0xff] %v6184_v21  ;;  %v6186_v22 = vpop.xlane.xlu0 %336  ;;  %v275_v18 = vmul.f32 %v6048_v1, %v139_v14 }
  0xce   :  { %9899 = vst [vmem:[#allocation26_spill] sm:$0xff] %v6186_v22 }
  0xcf   :  { %482 = vadd.xlane.f32.xlu1 %v261_v19  ;;  %v274_v19 = vmul.f32 %v6048_v1, %v138_v17  ;;  %v149_v17 = vld [vmem:[#allocation2 + $0x3a8] sm:$0xff] }
  0xd0   :  { %480 = vadd.xlane.f32.xlu0 %v260_v20  ;;  %v6190_v29 = vpop.xlane.xlu1 %342 }
  0xd1   :  { %9900 = vst [vmem:[#allocation27_spill] sm:$0xff] %v6190_v29  ;;  %v6192_v32 = vpop.xlane.xlu0 %340 }
  0xd2   :  { %9901 = vst [vmem:[#allocation28_spill] sm:$0xff] %v6192_v32 }
  0xd3   :  { %486 = vadd.xlane.f32.xlu1 %v263_v27  ;;  %v140_v27 = vld [vmem:[#allocation2 + $0x360] sm:$0xff] }
  0xd4   :  { %484 = vadd.xlane.f32.xlu0 %v262_v28  ;;  %v6196_v39 = vpop.xlane.xlu1 %346  ;;  %v277_v28 = vmul.f32 %v6048_v1, %v141_v26  ;;  %v276_v33 = vmul.f32 %v6048_v1, %v140_v27 }
  0xd5   :  { %9902 = vst [vmem:[#allocation29_spill] sm:$0xff] %v6196_v39  ;;  %v6198_v40 = vpop.xlane.xlu0 %344 }
  0xd6   :  { %9903 = vst [vmem:[#allocation30_spill] sm:$0xff] %v6198_v40 }
  0xd7   :  { %490 = vadd.xlane.f32.xlu1 %v265_v35 }
  0xd8   :  { %488 = vadd.xlane.f32.xlu0 %v264_v38  ;;  %v6202_v47 = vpop.xlane.xlu1 %350  ;;  %v143_v38 = vld [vmem:[#allocation2 + $0x378] sm:$0xff] }
  0xd9   :  { %9904 = vst [vmem:[#allocation31_spill] sm:$0xff] %v6202_v47  ;;  %v6204_v50 = vpop.xlane.xlu0 %348  ;;  %v279_v44 = vmul.f32 %v6048_v1, %v143_v38  ;;  %v150_v38 = vld [vmem:[#allocation2 + $0x3b0] sm:$0xff] }
  0xda   :  { %9905 = vst [vmem:[#allocation32_spill] sm:$0xff] %v6204_v50 }
  0xdb   :  { %494 = vadd.xlane.f32.xlu1 %v267_v45  ;;  %v278_v45 = vmul.f32 %v6048_v1, %v142_v41 }
  0xdc   :  { %492 = vadd.xlane.f32.xlu0 %v266_v46  ;;  %v6208_v57 = vpop.xlane.xlu1 %354 }
  0xdd   :  { %9906 = vst [vmem:[#allocation33_spill] sm:$0xff] %v6208_v57  ;;  %v6210_v58 = vpop.xlane.xlu0 %352 }
  0xde   :  { %9907 = vst [vmem:[#allocation34_spill] sm:$0xff] %v6210_v58 }
  0xdf   :  { %498 = vadd.xlane.f32.xlu1 %v269_v53  ;;  %v144_v53 = vld [vmem:[#allocation2 + $0x380] sm:$0xff] }
  0xe0   :  { %496 = vadd.xlane.f32.xlu0 %v268_v56  ;;  %v6214_v2 = vpop.xlane.xlu1 %358  ;;  %v281_v56 = vmul.f32 %v6048_v1, %v145_v52  ;;  %v280_v59 = vmul.f32 %v6048_v1, %v144_v53  ;;  %v153_v53 = vld [vmem:[#allocation2 + $0x3c8] sm:$0xff] }
  0xe1   :  { %9908 = vst [vmem:[#allocation35_spill] sm:$0xff] %v6214_v2  ;;  %v6216_v5 = vpop.xlane.xlu0 %356 }
  0xe2   :  { %9909 = vst [vmem:[#allocation36_spill] sm:$0xff] %v6216_v5 }
  0xe3   :  { %502 = vadd.xlane.f32.xlu1 %v271_v63 }
  0xe4   :  { %500 = vadd.xlane.f32.xlu0 %v270_v0  ;;  %v6220_v12 = vpop.xlane.xlu1 %362  ;;  %v147_v0 = vld [vmem:[#allocation2 + $0x398] sm:$0xff] }
  0xe5   :  { %9910 = vst [vmem:[#allocation37_spill] sm:$0xff] %v6220_v12  ;;  %v6222_v13 = vpop.xlane.xlu0 %360  ;;  %v283_v7 = vmul.f32 %v6048_v1, %v147_v0 }
  0xe6   :  { %9911 = vst [vmem:[#allocation38_spill] sm:$0xff] %v6222_v13 }
  0xe7   :  { %506 = vadd.xlane.f32.xlu1 %v273_v8  ;;  %v282_v8 = vmul.f32 %v6048_v1, %v146_v6 }
  0xe8   :  { %504 = vadd.xlane.f32.xlu0 %v272_v11  ;;  %v6226_v20 = vpop.xlane.xlu1 %366 }
  0xe9   :  { %9912 = vst [vmem:[#allocation39_spill] sm:$0xff] %v6226_v20  ;;  %v6228_v25 = vpop.xlane.xlu0 %364 }
  0xea   :  { %9913 = vst [vmem:[#allocation40_spill] sm:$0xff] %v6228_v25 }
  0xeb   :  { %510 = vadd.xlane.f32.xlu1 %v275_v18  ;;  %v148_v18 = vld [vmem:[#allocation2 + $0x3a0] sm:$0xff] }
  0xec   :  { %508 = vadd.xlane.f32.xlu0 %v274_v19  ;;  %v6232_v34 = vpop.xlane.xlu1 %370  ;;  %v285_v19 = vmul.f32 %v6048_v1, %v149_v17  ;;  %v284_v26 = vmul.f32 %v6048_v1, %v148_v18  ;;  %v154_v17 = vld [vmem:[#allocation2 + $0x3d0] sm:$0xff] }
  0xed   :  { %9914 = vst [vmem:[#allocation41_spill] sm:$0xff] %v6232_v34  ;;  %v6234_v35 = vpop.xlane.xlu0 %368 }
  0xee   :  { %9915 = vst [vmem:[#allocation42_spill] sm:$0xff] %v6234_v35 }
  0xef   :  { %514 = vadd.xlane.f32.xlu1 %v277_v28 }
  0xf0   :  { %512 = vadd.xlane.f32.xlu0 %v276_v33  ;;  %v6238_v46 = vpop.xlane.xlu1 %374  ;;  %v151_v33 = vld [vmem:[#allocation2 + $0x3b8] sm:$0xff] }
  0xf1   :  { %9916 = vst [vmem:[#allocation43_spill] sm:$0xff] %v6238_v46  ;;  %v6240_v51 = vpop.xlane.xlu0 %372  ;;  %v287_v41 = vmul.f32 %v6048_v1, %v151_v33 }
  0xf2   :  { %9917 = vst [vmem:[#allocation44_spill] sm:$0xff] %v6240_v51 }
  0xf3   :  { %518 = vadd.xlane.f32.xlu1 %v279_v44  ;;  %v286_v44 = vmul.f32 %v6048_v1, %v150_v38  ;;  %v157_v38 = vld [vmem:[#allocation2 + $0x3e8] sm:$0xff] }
  0xf4   :  { %516 = vadd.xlane.f32.xlu0 %v278_v45  ;;  %v6244_v62 = vpop.xlane.xlu1 %378 }
  0xf5   :  { %9918 = vst [vmem:[#allocation45_spill] sm:$0xff] %v6244_v62  ;;  %v6246_v63 = vpop.xlane.xlu0 %376 }
  0xf6   :  { %9919 = vst [vmem:[#allocation46_spill] sm:$0xff] %v6246_v63 }
  0xf7   :  { %522 = vadd.xlane.f32.xlu1 %v281_v56  ;;  %v152_v56 = vld [vmem:[#allocation2 + $0x3c0] sm:$0xff] }
  0xf8   :  { %520 = vadd.xlane.f32.xlu0 %v280_v59  ;;  %v6250_v11 = vpop.xlane.xlu1 %382  ;;  %v289_v59 = vmul.f32 %v6048_v1, %v153_v53  ;;  %v288_v0 = vmul.f32 %v6048_v1, %v152_v56 }
  0xf9   :  { %9920 = vst [vmem:[#allocation47_spill] sm:$0xff] %v6250_v11  ;;  %v6252_v14 = vpop.xlane.xlu0 %380 }
  0xfa   :  { %9921 = vst [vmem:[#allocation48_spill] sm:$0xff] %v6252_v14 }
  0xfb   :  { %526 = vadd.xlane.f32.xlu1 %v283_v7 }
  0xfc   :  { %524 = vadd.xlane.f32.xlu0 %v282_v8  ;;  %v6256_v27 = vpop.xlane.xlu1 %386  ;;  %v155_v8 = vld [vmem:[#allocation2 + $0x3d8] sm:$0xff] }
  0xfd   :  { %9922 = vst [vmem:[#allocation49_spill] sm:$0xff] %v6256_v27  ;;  %v6258_v28 = vpop.xlane.xlu0 %384  ;;  %v291_v18 = vmul.f32 %v6048_v1, %v155_v8  ;;  %v158_v8 = vld [vmem:[#allocation2 + $0x3f0] sm:$0xff] }
  0xfe   :  { %9923 = vst [vmem:[#allocation50_spill] sm:$0xff] %v6258_v28 }
  0xff   :  { %530 = vadd.xlane.f32.xlu1 %v285_v19  ;;  %v290_v19 = vmul.f32 %v6048_v1, %v154_v17 }
 0x100   :  { %528 = vadd.xlane.f32.xlu0 %v284_v26  ;;  %v6262_v45 = vpop.xlane.xlu1 %390 }
 0x101   :  { %9924 = vst [vmem:[#allocation51_spill] sm:$0xff] %v6262_v45  ;;  %v6264_v52 = vpop.xlane.xlu0 %388  ;;  %v294_v45 = vmul.f32 %v6048_v1, %v158_v8 }
 0x102   :  { %9925 = vst [vmem:[#allocation52_spill] sm:$0xff] %v6264_v52 }
 0x103   :  { %534 = vadd.xlane.f32.xlu1 %v287_v41  ;;  %v156_v41 = vld [vmem:[#allocation2 + $0x3e0] sm:$0xff] }
 0x104   :  { %532 = vadd.xlane.f32.xlu0 %v286_v44  ;;  %v6268_v6 = vpop.xlane.xlu1 %394  ;;  %v293_v44 = vmul.f32 %v6048_v1, %v157_v38  ;;  %v292_v53 = vmul.f32 %v6048_v1, %v156_v41 }
 0x105   :  { %9926 = vst [vmem:[#allocation53_spill] sm:$0xff] %v6268_v6  ;;  %v6270_v7 = vpop.xlane.xlu0 %392 }
 0x106   :  { %9927 = vst [vmem:[#allocation54_spill] sm:$0xff] %v6270_v7 }
 0x107   :  { %538 = vadd.xlane.f32.xlu1 %v289_v59 }
 0x108   :  { %536 = vadd.xlane.f32.xlu0 %v288_v0  ;;  %v6274_v26 = vpop.xlane.xlu1 %398  ;;  %v159_v0 = vld [vmem:[#allocation2 + $0x3f8] sm:$0xff] }
 0x109   :  { %9928 = vst [vmem:[#allocation55_spill] sm:$0xff] %v6274_v26  ;;  %v6276_v33 = vpop.xlane.xlu0 %396  ;;  %v295_v17 = vmul.f32 %v6048_v1, %v159_v0 }
 0x10a   :  { %9929 = vst [vmem:[#allocation56_spill] sm:$0xff] %v6276_v33 }
 0x10b   :  { %542 = vadd.xlane.f32.xlu1 %v291_v18 }
 0x10c   :  { %540 = vadd.xlane.f32.xlu0 %v290_v19  ;;  %v6280_v56 = vpop.xlane.xlu1 %402 }
 0x10d   :  { %9930 = vst [vmem:[#allocation57_spill] sm:$0xff] %v6280_v56  ;;  %v6282_v59 = vpop.xlane.xlu0 %400 }
 0x10e   :  { %9931 = vst [vmem:[#allocation58_spill] sm:$0xff] %v6282_v59 }
 0x10f   :  { %546 = vadd.xlane.f32.xlu1 %v293_v44 }
 0x110   :  { %544 = vadd.xlane.f32.xlu0 %v292_v53  ;;  %v6286_v52 = vpop.xlane.xlu1 %406 }
 0x111   :  { %9932 = vst [vmem:[#allocation59_spill] sm:$0xff] %v6286_v52  ;;  %v6288_v18 = vpop.xlane.xlu0 %404 }
 0x112   :  { %9933 = vst [vmem:[#allocation60_spill] sm:$0xff] %v6288_v18 }
 0x113   :  { %550 = vadd.xlane.f32.xlu1 %v295_v17 }
 0x114   :  { %548 = vadd.xlane.f32.xlu0 %v294_v45  ;;  %v6290_v19 = vpop.xlane.xlu1 %410  ;;  %v161_v45 = vld [vmem:[%s9562_s2] sm:$0xff]  ;;  %s6006_s2 = smov [#allocation6]  }
 0x115   :  { %9934 = vst [vmem:[#allocation61_spill] sm:$0xff] %v6290_v19  ;;  %v6292_v38 = vpop.xlane.xlu0 %408  ;;  %s5519_s5 = sshll.u32 %s6006_s2, 4  ;;  %s5520_s5 = int_to_ptr.vmem [resolvable:$true] %s5519_s5 }
 0x116   :  { %9935 = vst [vmem:[#allocation62_spill] sm:$0xff] %v6292_v38  ;;  %s5951_s6 = scalar_lea.vmem %s5520_s5, 128  ;;  %p5956_p9 = scmp.lt.s32.totalorder %s5520_s5, %s5520_s5 }
 0x117   :  { %p5952_p8 = scmp.ne.s32.totalorder %s5520_s5, %s5951_s6  ;;  %p5957_p10 = scmp.lt.s32.totalorder %s5951_s6, %s5951_s6 }
 0x118   :  { %v6294_v41 = vpop.xlane.xlu1 %414 }
 0x119   :  { %9936 = vst [vmem:[#allocation63_spill] sm:$0xff] %v6294_v41  ;;  %v6296_v27 = vpop.xlane.xlu0 %412  ;;  %p5958_p11 = por %p5957_p10, %p5956_p9 }
 0x11a   :  { %9937 = vst [vmem:[#allocation64_spill] sm:$0xff] %v6296_v27 }
 0x11b   :  { %p5959_p12 = pnand %p5958_p11, %p5952_p8 }
 0x11c   :  { %v6298_v44 = vpop.xlane.xlu1 %418 }
 0x11d   :  { %9938 = vst [vmem:[#allocation65_spill] sm:$0xff] %v6298_v44  ;;  %v6300_v53 = vpop.xlane.xlu0 %416 }
 0x11e   :  { %9939 = vst [vmem:[#allocation66_spill] sm:$0xff] %v6300_v53 }
 0x120   :  { %v6302_v0 = vpop.xlane.xlu1 %422 }
 0x121   :  { %9940 = vst [vmem:[#allocation67_spill] sm:$0xff] %v6302_v0  ;;  %v6304_v1 = vpop.xlane.xlu0 %420 }
 0x122   :  { %9941 = vst [vmem:[#allocation68_spill] sm:$0xff] %v6304_v1 }
 0x124   :  { %v6309_v8 = vpop.xlane.xlu1 %426  ;;  %1787 = vperm.xlu1 %5541, %v161_v45  }
 0x125   :  { %9942 = vst [vmem:[#allocation69_spill] sm:$0xff] %v6309_v8  ;;  %v6311_v17 = vpop.xlane.xlu0 %424 }
 0x126   :  { %9943 = vst [vmem:[#allocation70_spill] sm:$0xff] %v6311_v17 }
 0x128   :  { %v6313_v41 = vpop.xlane.xlu1 %430 }
 0x129   :  { %9944 = vst [vmem:[#allocation71_spill] sm:$0xff] %v6313_v41  ;;  %v6315_v27 = vpop.xlane.xlu0 %428 }
 0x12a   :  { %9945 = vst [vmem:[#allocation72_spill] sm:$0xff] %v6315_v27 }
 0x12c   :  { %v6317_v44 = vpop.xlane.xlu1 %434 }
 0x12d   :  { %9946 = vst [vmem:[#allocation73_spill] sm:$0xff] %v6317_v44  ;;  %v6319_v53 = vpop.xlane.xlu0 %432 }
 0x12e   :  { %9947 = vst [vmem:[#allocation74_spill] sm:$0xff] %v6319_v53 }
 0x130   :  { %v6321_v0 = vpop.xlane.xlu1 %438 }
 0x131   :  { %9948 = vst [vmem:[#allocation75_spill] sm:$0xff] %v6321_v0  ;;  %v6323_v1 = vpop.xlane.xlu0 %436 }
 0x132   :  { %9949 = vst [vmem:[#allocation76_spill] sm:$0xff] %v6323_v1 }
 0x134   :  { %v6325_v19 = vpop.xlane.xlu1 %442 }
 0x135   :  { %9950 = vst [vmem:[#allocation77_spill] sm:$0xff] %v6325_v19  ;;  %v6327_v38 = vpop.xlane.xlu0 %440 }
 0x136   :  { %9951 = vst [vmem:[#allocation78_spill] sm:$0xff] %v6327_v38  ;;  %v680_v38 = vlaneseq }
 0x138   :  { %v6329_v8 = vpop.xlane.xlu1 %446 }
 0x139   :  { %9952 = vst [vmem:[#allocation79_spill] sm:$0xff] %v6329_v8  ;;  %v6331_v17 = vpop.xlane.xlu0 %444 }
 0x13a   :  { %9953 = vst [vmem:[#allocation80_spill] sm:$0xff] %v6331_v17 }
 0x13c   :  { %v6333_v45 = vpop.xlane.xlu1 %450 }
 0x13d   :  { %9954 = vst [vmem:[#allocation81_spill] sm:$0xff] %v6333_v45  ;;  %v6335_v41 = vpop.xlane.xlu0 %448  ;;  %v6353_v45 = vand.u32 127, %v680_v38 }
 0x13e   :  { %9955 = vst [vmem:[#allocation82_spill] sm:$0xff] %v6335_v41 }
 0x13f   :  { %9964 = vst [vmem:[#allocation91_spill] sm:$0xff] %v6353_v45  ;;  %v686_v41 = vadd.s32 4294967288, %v6353_v45  ;;  %v700_v2 = vadd.s32 4294967272, %v6353_v45  ;;  %v749_v5 = vadd.s32 4294967216, %v6353_v45 }
 0x140   :  { %v6337_v27 = vpop.xlane.xlu1 %454 }
 0x141   :  { %9956 = vst [vmem:[#allocation83_spill] sm:$0xff] %v6337_v27  ;;  %v6339_v44 = vpop.xlane.xlu0 %452 }
 0x142   :  { %9957 = vst [vmem:[#allocation84_spill] sm:$0xff] %v6339_v44 }
 0x144   :  { %v6341_v53 = vpop.xlane.xlu1 %458 }
 0x145   :  { %9958 = vst [vmem:[#allocation85_spill] sm:$0xff] %v6341_v53  ;;  %v6343_v0 = vpop.xlane.xlu0 %456  ;;  %v6360_v53 = vshrl.u32 %v680_v38, 7 }
 0x146   :  { %9959 = vst [vmem:[#allocation86_spill] sm:$0xff] %v6343_v0 }
 0x147   :  { %v6363_v0 = vsub.s32 %v686_v41, %v6360_v53  ;;  %v714_v41 = vadd.s32 4294967256, %v6353_v45  ;;  %v6389_v28 = vsub.s32 %v700_v2, %v6360_v53 }
 0x148   :  { %v6345_v1 = vpop.xlane.xlu1 %462 }
 0x149   :  { %9960 = vst [vmem:[#allocation87_spill] sm:$0xff] %v6345_v1  ;;  %v6347_v19 = vpop.xlane.xlu0 %460  ;;  %9967 = vst [vmem:[#allocation94_spill] sm:$0xff] %v6363_v0  ;;  %v693_v1 = vadd.s32 4294967280, %v6353_v45  ;;  %v6396_v3 = vsub.s32 %v714_v41, %v6360_v53 }
 0x14a   :  { %9961 = vst [vmem:[#allocation88_spill] sm:$0xff] %v6347_v19  ;;  %9974 = vst [vmem:[#allocation101_spill] sm:$0xff] %v6389_v28 }
 0x14b   :  { %v6378_v38 = vsub.s32 %v693_v1, %v6360_v53  ;;  %v728_v1 = vadd.s32 4294967240, %v6353_v45  ;;  %9975 = vst [vmem:[#allocation102_spill] sm:$0xff] %v6396_v3 }
 0x14c   :  { %v6349_v8 = vpop.xlane.xlu1 %466 }
 0x14d   :  { %9962 = vst [vmem:[#allocation89_spill] sm:$0xff] %v6349_v8  ;;  %v6351_v17 = vpop.xlane.xlu0 %464  ;;  %9971 = vst [vmem:[#allocation98_spill] sm:$0xff] %v6378_v38  ;;  %v697_v11 = vrot.slane %v6124_v23, %v6378_v38  ;;  %v735_v23 = vadd.s32 4294967232, %v6353_v45  ;;  %v803_v18 = vrot.slane %v6180_v16, %v6378_v38  ;;  %v763_v16 = vadd.s32 4294967200, %v6353_v45 }
 0x14e   :  { %9963 = vst [vmem:[#allocation90_spill] sm:$0xff] %v6351_v17  ;;  %v6372_v17 = vsub.s32 %v6353_v45, %v6360_v53 }
 0x14f   :  { %v6436_v56 = vsub.s32 %v735_v23, %v6360_v53 }
 0x150   :  { %v6356_v27 = vpop.xlane.xlu1 %470  ;;  %9970 = vst [vmem:[#allocation97_spill] sm:$0xff] %v6372_v17  ;;  %v685_v52 = vrot.slane %v6126_v24, %v6372_v17  ;;  %v721_v24 = vadd.s32 4294967248, %v6353_v45 }
 0x151   :  { %9965 = vst [vmem:[#allocation92_spill] sm:$0xff] %v6356_v27  ;;  %v6358_v44 = vpop.xlane.xlu0 %468  ;;  %v690_v27 = vrot.slane %v6132_v31, %v6363_v0  ;;  %9984 = vst [vmem:[#allocation111_spill] sm:$0xff] %v6436_v56 }
 0x152   :  { %9966 = vst [vmem:[#allocation93_spill] sm:$0xff] %v6358_v44  ;;  %v707_v44 = vadd.s32 4294967264, %v6353_v45 }
 0x153   :  { %v692_v31 = vsel %vm691_vm0, %v690_v27, %v685_v52  ;;  %v704_v27 = vrot.slane %v6130_v30, %v6389_v28  ;;  %v742_v52 = vadd.s32 4294967224, %v6353_v45  ;;  %v756_v30 = vadd.s32 4294967208, %v6353_v45 }
 0x154   :  { %v6366_v19 = vpop.xlane.xlu1 %474  ;;  %v699_v41 = vsel %vm698_vm1, %v697_v11, %v692_v31  ;;  %v6425_v11 = vsub.s32 %v721_v24, %v6360_v53  ;;  %v6440_v24 = vsub.s32 %v749_v5, %v6360_v53 }
 0x155   :  { %9968 = vst [vmem:[#allocation95_spill] sm:$0xff] %v6366_v19  ;;  %v6368_v8 = vpop.xlane.xlu0 %472  ;;  %v6433_v57 = vsub.s32 %v742_v52, %v6360_v53  ;;  %v6448_v52 = vsub.s32 %v756_v30, %v6360_v53 }
 0x156   :  { %9969 = vst [vmem:[#allocation96_spill] sm:$0xff] %v6368_v8  ;;  %9980 = vst [vmem:[#allocation107_spill] sm:$0xff] %v6425_v11  ;;  %v725_v5 = vrot.slane %v6144_v43, %v6425_v11 }
 0x157   :  { %9983 = vst [vmem:[#allocation110_spill] sm:$0xff] %v6433_v57  ;;  %9985 = vst [vmem:[#allocation112_spill] sm:$0xff] %v6440_v24 }
 0x158   :  { %v6382_v19 = vpop.xlane.xlu1 %478  ;;  %9986 = vst [vmem:[#allocation113_spill] sm:$0xff] %v6448_v52 }
 0x159   :  { %9972 = vst [vmem:[#allocation99_spill] sm:$0xff] %v6382_v19  ;;  %v6384_v8 = vpop.xlane.xlu0 %476  ;;  %v6399_v19 = vsub.s32 %v707_v44, %v6360_v53  ;;  %v798_v44 = vrot.slane %v6172_v9, %v6363_v0 }
 0x15a   :  { %9973 = vst [vmem:[#allocation100_spill] sm:$0xff] %v6384_v8 }
 0x15b   :  { %9976 = vst [vmem:[#allocation103_spill] sm:$0xff] %v6399_v19  ;;  %v711_v31 = vrot.slane %v6138_v37, %v6399_v19 }
 0x15c   :  { %v6402_v8 = vpop.xlane.xlu1 %482 }
 0x15d   :  { %9977 = vst [vmem:[#allocation104_spill] sm:$0xff] %v6402_v8  ;;  %v6404_v2 = vpop.xlane.xlu0 %480  ;;  %v794_v8 = vrot.slane %v6174_v10, %v6372_v17 }
 0x15e   :  { %9978 = vst [vmem:[#allocation105_spill] sm:$0xff] %v6404_v2  ;;  %v6417_v2 = vsub.s32 %v728_v1, %v6360_v53  ;;  %v706_v1 = vsel %vm705_vm2, %v704_v27, %v699_v41  ;;  %v718_v27 = vrot.slane %v6136_v36, %v6396_v3  ;;  %v813_v41 = vrot.slane %v6186_v22, %v6399_v19 }
 0x15f   :  { %v799_v37 = vsel %vm691_vm0, %v798_v44, %v794_v8  ;;  %v877_v8 = vrot.slane %v6220_v12, %v6363_v0  ;;  %v873_v44 = vrot.slane %v6222_v13, %v6372_v17  ;;  %v777_v12 = vadd.s32 4294967184, %v6353_v45 }
 0x160   :  { %9979 = vst [vmem:[#allocation106_spill] sm:$0xff] %v6417_v2  ;;  %v6427_v9 = vpop.xlane.xlu1 %486  ;;  %v804_v23 = vsel %vm698_vm1, %v803_v18, %v799_v37  ;;  %v770_v37 = vadd.s32 4294967192, %v6353_v45  ;;  %v6466_v18 = vsub.s32 %v763_v16, %v6360_v53  ;;  %v818_v13 = vrot.slane %v6184_v21, %v6396_v3 }
 0x161   :  { %9981 = vst [vmem:[#allocation108_spill] sm:$0xff] %v6427_v9  ;;  %v6429_v10 = vpop.xlane.xlu0 %484  ;;  %v808_v9 = vrot.slane %v6178_v15, %v6389_v28  ;;  %v732_v36 = vrot.slane %v6142_v42, %v6417_v2  ;;  %v878_v21 = vsel %vm691_vm0, %v877_v8, %v873_v44  ;;  %v746_v44 = vrot.slane %v6148_v48, %v6433_v57 }
 0x162   :  { %9982 = vst [vmem:[#allocation109_spill] sm:$0xff] %v6429_v10  ;;  %v713_v10 = vsel %vm9873_vm3, %v711_v31, %v706_v1  ;;  %9989 = vst [vmem:[#allocation116_spill] sm:$0xff] %v6466_v18  ;;  %v882_v31 = vrot.slane %v6228_v25, %v6378_v38  ;;  %v784_v1 = vadd.s32 4294967176, %v6353_v45  ;;  %v739_v45 = vrot.slane %v6150_v49, %v6436_v56 }
 0x163   :  { %v809_v22 = vsel %vm705_vm2, %v808_v9, %v804_v23  ;;  %v720_v43 = vsel %vm9687_vm4, %v718_v27, %v713_v10  ;;  %v887_v9 = vrot.slane %v6226_v20, %v6389_v28  ;;  %v6492_v10 = vsub.s32 %v770_v37, %v6360_v53 }
 0x164   :  { %v6460_v15 = vpop.xlane.xlu1 %490  ;;  %v814_v16 = vsel %vm9873_vm3, %v813_v41, %v809_v22  ;;  %v727_v25 = vsel %vm9689_vm5, %v725_v5, %v720_v43  ;;  %v883_v22 = vsel %vm698_vm1, %v882_v31, %v878_v21  ;;  %v892_v43 = vrot.slane %v6234_v35, %v6399_v19 }
 0x165   :  { %9987 = vst [vmem:[#allocation114_spill] sm:$0xff] %v6460_v15  ;;  %v6462_v30 = vpop.xlane.xlu0 %488  ;;  %9992 = vst [vmem:[#allocation119_spill] sm:$0xff] %v6492_v10  ;;  %v6498_v27 = vsub.s32 %v784_v1, %v6360_v53  ;;  %v6501_v41 = vsub.s32 %v777_v12, %v6360_v53  ;;  %v828_v5 = vrot.slane %v6190_v29, %v6417_v2  ;;  %v10021_v29 = vld [vmem:[#allocation64_spill] sm:$0xff] }
 0x166   :  { %9988 = vst [vmem:[#allocation115_spill] sm:$0xff] %v6462_v30  ;;  %v823_v30 = vrot.slane %v6192_v32, %v6425_v11  ;;  %v819_v8 = vsel %vm9687_vm4, %v818_v13, %v814_v16  ;;  %v734_v37 = vsel %vm733_vm6, %v732_v36, %v727_v25  ;;  %v833_v31 = vrot.slane %v6198_v40, %v6436_v56 }
 0x167   :  { %9993 = vst [vmem:[#allocation120_spill] sm:$0xff] %v6498_v27  ;;  %9994 = vst [vmem:[#allocation121_spill] sm:$0xff] %v6501_v41  ;;  %v741_v1 = vsel %vm9707_vm7, %v739_v45, %v734_v37  ;;  %v753_v12 = vrot.slane %v6156_v55, %v6440_v24  ;;  %v897_v20 = vrot.slane %v6232_v34, %v6396_v3 }
 0x168   :  { %v6487_v23 = vpop.xlane.xlu1 %494  ;;  %v824_v21 = vsel %vm9689_vm5, %v823_v30, %v819_v8  ;;  %v888_v13 = vsel %vm705_vm2, %v887_v9, %v883_v22  ;;  %v902_v25 = vrot.slane %v6240_v51, %v6425_v11  ;;  %v956_v45 = vrot.slane %v6268_v6, %v6363_v0 }
 0x169   :  { %9990 = vst [vmem:[#allocation117_spill] sm:$0xff] %v6487_v23  ;;  %v6489_v42 = vpop.xlane.xlu0 %492  ;;  %v893_v36 = vsel %vm9873_vm3, %v892_v43, %v888_v13  ;;  %v952_v30 = vrot.slane %v6270_v7, %v6372_v17  ;;  %v838_v8 = vrot.slane %v6196_v39, %v6433_v57  ;;  %v829_v9 = vsel %vm733_vm6, %v828_v5, %v824_v21 }
 0x16a   :  { %9991 = vst [vmem:[#allocation118_spill] sm:$0xff] %v6489_v42  ;;  %v961_v22 = vrot.slane %v6276_v33, %v6378_v38  ;;  %v760_v43 = vrot.slane %v6154_v54, %v6448_v52  ;;  %v748_v37 = vsel %vm9706_vm8, %v746_v44, %v741_v1  ;;  %v834_v13 = vsel %vm9707_vm7, %v833_v31, %v829_v9 }
 0x16b   :  { %v843_v6 = vrot.slane %v6204_v50, %v6440_v24  ;;  %v755_v7 = vsel %vm9705_vm9, %v753_v12, %v748_v37  ;;  %v767_v34 = vrot.slane %v6162_v61, %v6466_v18  ;;  %v907_v5 = vrot.slane %v6238_v46, %v6417_v2 }
 0x16c   :  { %v6518_v16 = vpop.xlane.xlu1 %498  ;;  %v898_v21 = vsel %vm9687_vm4, %v897_v20, %v893_v36  ;;  %v912_v31 = vrot.slane %v6246_v63, %v6436_v56  ;;  %v957_v1 = vsel %vm691_vm0, %v956_v45, %v952_v30  ;;  %v966_v12 = vrot.slane %v6274_v26, %v6389_v28 }
 0x16d   :  { %9995 = vst [vmem:[#allocation122_spill] sm:$0xff] %v6518_v16  ;;  %v6520_v35 = vpop.xlane.xlu0 %496  ;;  %v903_v44 = vsel %vm9689_vm5, %v902_v25, %v898_v21  ;;  %v848_v9 = vrot.slane %v6202_v47, %v6448_v52  ;;  %v839_v37 = vsel %vm9706_vm8, %v838_v8, %v834_v13  ;;  %v962_v20 = vsel %vm698_vm1, %v961_v22, %v957_v1 }
 0x16e   :  { %9996 = vst [vmem:[#allocation123_spill] sm:$0xff] %v6520_v35  ;;  %v971_v36 = vrot.slane %v6282_v59, %v6399_v19  ;;  %v774_v25 = vrot.slane %v6160_v60, %v6492_v10  ;;  %v762_v21 = vsel %vm761_vm10, %v760_v43, %v755_v7  ;;  %v844_v45 = vsel %vm9705_vm9, %v843_v6, %v839_v37  ;;  %v10001_v43 = vld [vmem:[#allocation57_spill] sm:$0xff] }
 0x16f   :  { %v853_v30 = vrot.slane %v6210_v58, %v6466_v18  ;;  %v769_v26 = vsel %vm768_vm11, %v767_v34, %v762_v21  ;;  %v781_v8 = vrot.slane %v6168_v4, %v6501_v41  ;;  %v917_v22 = vrot.slane %v6244_v62, %v6433_v57  ;;  %v10002_v21 = vld [vmem:[#allocation33_spill] sm:$0xff]  ;;  %v10014_v58 = vld [vmem:[#allocation70_spill] sm:$0xff] }
 0x170   :  { %v6546_v33 = vpop.xlane.xlu1 %502  ;;  %v908_v13 = vsel %vm733_vm6, %v907_v5, %v903_v44  ;;  %v922_v6 = vrot.slane %v6252_v14, %v6440_v24  ;;  %v976_v34 = vrot.slane %v10001_v43, %v6396_v3  ;;  %v967_v37 = vsel %vm705_vm2, %v966_v12, %v962_v20  ;;  %v10003_v44 = vld [vmem:[#allocation60_spill] sm:$0xff] }
 0x171   :  { %9997 = vst [vmem:[#allocation124_spill] sm:$0xff] %v6546_v33  ;;  %v6548_v51 = vpop.xlane.xlu0 %500  ;;  %v913_v7 = vsel %vm9707_vm7, %v912_v31, %v908_v13  ;;  %v858_v46 = vrot.slane %v10002_v21, %v6492_v10  ;;  %v849_v62 = vsel %vm761_vm10, %v848_v9, %v844_v45  ;;  %v972_v5 = vsel %vm9873_vm3, %v971_v36, %v967_v37  ;;  %v10004_v14 = vld [vmem:[#allocation36_spill] sm:$0xff]  ;;  %v10006_v9 = vld [vmem:[#allocation47_spill] sm:$0xff] }
 0x172   :  { %9998 = vst [vmem:[#allocation125_spill] sm:$0xff] %v6548_v51  ;;  %v981_v63 = vrot.slane %v10003_v44, %v6425_v11  ;;  %v776_v31 = vsel %vm775_vm12, %v774_v25, %v769_v26  ;;  %v854_v13 = vsel %vm768_vm11, %v853_v30, %v849_v62  ;;  %v863_v43 = vrot.slane %v10004_v14, %v6501_v41  ;;  %v10005_v12 = vld [vmem:[#allocation20_spill] sm:$0xff]  ;;  %v10009_v62 = vld [vmem:[#allocation50_spill] sm:$0xff]  ;;  %v10010_v30 = vld [vmem:[#allocation59_spill] sm:$0xff] }
 0x173   :  { %v788_v20 = vrot.slane %v10005_v12, %v6498_v27  ;;  %v783_v21 = vsel %vm782_vm13, %v781_v8, %v776_v31  ;;  %v927_v45 = vrot.slane %v10006_v9, %v6448_v52  ;;  %v918_v36 = vsel %vm9706_vm8, %v917_v22, %v913_v7  ;;  %v10011_v8 = vld [vmem:[#allocation35_spill] sm:$0xff]  ;;  %v10012_v7 = vld [vmem:[#allocation62_spill] sm:$0xff] }
 0x174   :  { %v6574_v1 = vpop.xlane.xlu1 %506  ;;  %v923_v26 = vsel %vm9705_vm9, %v922_v6, %v918_v36  ;;  %v932_v25 = vrot.slane %v10009_v62, %v6466_v18  ;;  %v986_v47 = vrot.slane %v10010_v30, %v6417_v2  ;;  %v977_v14 = vsel %vm9687_vm4, %v976_v34, %v972_v5  ;;  %v10013_v36 = vld [vmem:[#allocation69_spill] sm:$0xff] }
 0x175   :  { %9999 = vst [vmem:[#allocation126_spill] sm:$0xff] %v6574_v1  ;;  %v6576_v59 = vpop.xlane.xlu0 %504  ;;  %v868_v31 = vrot.slane %v10011_v8, %v6498_v27  ;;  %v859_v9 = vsel %vm775_vm12, %v858_v46, %v854_v13  ;;  %v982_v22 = vsel %vm9689_vm5, %v981_v63, %v977_v14  ;;  %v991_v39 = vrot.slane %v10012_v7, %v6436_v56  ;;  %v10015_v34 = vld [vmem:[#allocation49_spill] sm:$0xff]  ;;  %v10016_v46 = vld [vmem:[#allocation72_spill] sm:$0xff] }
 0x176   :  { %10000 = vst [vmem:[#allocation127_spill] sm:$0xff] %v6576_v59  ;;  %v864_v6 = vsel %vm782_vm13, %v863_v43, %v859_v9  ;;  %v1035_v62 = vrot.slane %v10013_v36, %v6363_v0  ;;  %v1031_v30 = vrot.slane %v10014_v58, %v6372_v17  ;;  %v937_v5 = vrot.slane %v10015_v34, %v6492_v10  ;;  %v10019_v36 = vld [vmem:[#allocation61_spill] sm:$0xff] }
 0x177   :  { %v928_v8 = vsel %vm761_vm10, %v927_v45, %v923_v26  ;;  %v1040_v13 = vrot.slane %v10016_v46, %v6378_v38  ;;  %v6631_v43 = vsel %vm789_vm14, %v788_v20, %v783_v21  ;;  %v996_v58 = vrot.slane %v10019_v36, %v6433_v57  ;;  %v10020_v45 = vld [vmem:[#allocation52_spill] sm:$0xff]  ;;  %v10022_v20 = vld [vmem:[#allocation71_spill] sm:$0xff] }
 0x178   :  { %v6600_v37 = vpop.xlane.xlu1 %510  ;;  %v933_v9 = vsel %vm768_vm11, %v932_v25, %v928_v8  ;;  %v987_v7 = vsel %vm733_vm6, %v986_v47, %v982_v22  ;;  %v6638_v34 = vsel %vm789_vm14, %v868_v31, %v864_v6  ;;  %v942_v26 = vrot.slane %v10020_v45, %v6501_v41  ;;  %v10023_v8 = vld [vmem:[#allocation85_spill] sm:$0xff]  ;;  %v10024_v47 = vld [vmem:[#allocation86_spill] sm:$0xff] }
 0x179   :  { %10007 = vst [vmem:[#allocation128_spill] sm:$0xff] %v6600_v37  ;;  %v6602_v44 = vpop.xlane.xlu0 %508  ;;  %v992_v46 = vsel %vm9707_vm7, %v991_v39, %v987_v7  ;;  %v1001_v50 = vrot.slane %v10021_v29, %v6440_v24  ;;  %v1036_v21 = vsel %vm691_vm0, %v1035_v62, %v1031_v30  ;;  %v1045_v25 = vrot.slane %v10022_v20, %v6389_v28  ;;  %v10025_v39 = vld [vmem:[#allocation74_spill] sm:$0xff]  ;;  %v10026_v29 = vld [vmem:[#allocation88_spill] sm:$0xff]  ;;  %v10029_v20 = vld [vmem:[#allocation63_spill] sm:$0xff] }
 0x17a   :  { %10008 = vst [vmem:[#allocation129_spill] sm:$0xff] %v6602_v44  ;;  %v1114_v36 = vrot.slane %v10023_v8, %v6363_v0  ;;  %v1110_v31 = vrot.slane %v10024_v47, %v6372_v17  ;;  %v938_v22 = vsel %vm775_vm12, %v937_v5, %v933_v9  ;;  %v1041_v6 = vsel %vm698_vm1, %v1040_v13, %v1036_v21  ;;  %v10030_v13 = vld [vmem:[#allocation115_spill] sm:$0xff] }
 0x17b   :  { %v1050_v7 = vrot.slane %v10025_v39, %v6399_v19  ;;  %v1119_v45 = vrot.slane %v10026_v29, %v6378_v38  ;;  %v1006_v8 = vrot.slane %v10029_v20, %v6448_v52  ;;  %v997_v40 = vsel %vm9706_vm8, %v996_v58, %v992_v46  ;;  %v10031_v21 = vld [vmem:[#allocation51_spill] sm:$0xff]  ;;  %v10032_v20 = vld [vmem:[#allocation73_spill] sm:$0xff] }
 0x17c   :  { %v6626_v63 = vpop.xlane.xlu1 %514  ;;  %v1193_v5 = vrot.slane %v6460_v15, %v6363_v0  ;;  %v1189_v9 = vrot.slane %v10030_v13, %v6372_v17  ;;  %v6672_v29 = vsel %vm782_vm13, %v942_v26, %v938_v22  ;;  %v1002_v39 = vsel %vm9705_vm9, %v1001_v50, %v997_v40  ;;  %v10033_v13 = vld [vmem:[#allocation87_spill] sm:$0xff]  ;;  %v10034_v26 = vld [vmem:[#allocation76_spill] sm:$0xff]  ;;  %v10035_v50 = vld [vmem:[#allocation90_spill] sm:$0xff] }
 0x17d   :  { %10017 = vst [vmem:[#allocation130_spill] sm:$0xff] %v6626_v63  ;;  %v6628_v14 = vpop.xlane.xlu0 %512  ;;  %v1198_v32 = vrot.slane %v6489_v42, %v6378_v38  ;;  %v1055_v58 = vrot.slane %v10032_v20, %v6396_v3  ;;  %v1046_v46 = vsel %vm705_vm2, %v1045_v25, %v1041_v6  ;;  %v1115_v15 = vsel %vm691_vm0, %v1114_v36, %v1110_v31  ;;  %v10038_v25 = vld [vmem:[#allocation65_spill] sm:$0xff] }
 0x17e   :  { %10018 = vst [vmem:[#allocation131_spill] sm:$0xff] %v6628_v14  ;;  %v1124_v12 = vrot.slane %v10033_v13, %v6389_v28  ;;  %v1051_v47 = vsel %vm9873_vm3, %v1050_v7, %v1046_v46  ;;  %v1060_v22 = vrot.slane %v10034_v26, %v6425_v11  ;;  %v1120_v40 = vsel %vm698_vm1, %v1119_v45, %v1115_v15 }
 0x17f   :  { %v1129_v42 = vrot.slane %v10035_v50, %v6399_v19  ;;  %v1016_v36 = vrot.slane %v10038_v25, %v6492_v10  ;;  %v1007_v31 = vsel %vm761_vm10, %v1006_v8, %v1002_v39  ;;  %v1194_v6 = vsel %vm691_vm0, %v1193_v5, %v1189_v9  ;;  %v10039_v50 = vld [vmem:[#allocation66_spill] sm:$0xff]  ;;  %v10040_v39 = vld [vmem:[#allocation89_spill] sm:$0xff] }
 0x180   :  { %v6658_v62 = vpop.xlane.xlu1 %518  ;;  %v1203_v7 = vrot.slane %v6487_v23, %v6389_v28  ;;  %v1199_v46 = vsel %vm698_vm1, %v1198_v32, %v1194_v6  ;;  %v1208_v15 = vrot.slane %v6520_v35, %v6399_v19  ;;  %v1011_v26 = vrot.slane %v10039_v50, %v6466_v18  ;;  %v10041_v32 = vld [vmem:[#allocation75_spill] sm:$0xff] }
 0x181   :  { %10027 = vst [vmem:[#allocation132_spill] sm:$0xff] %v6658_v62  ;;  %v6660_v30 = vpop.xlane.xlu0 %516  ;;  %v1056_v8 = vsel %vm9687_vm4, %v1055_v58, %v1051_v47  ;;  %v1134_v5 = vrot.slane %v10040_v39, %v6396_v3  ;;  %v1125_v9 = vsel %vm705_vm2, %v1124_v12, %v1120_v40  ;;  %v1065_v6 = vrot.slane %v10041_v32, %v6417_v2  ;;  %v10045_v47 = vld [vmem:[#allocation78_spill] sm:$0xff]  ;;  %v10046_v32 = vld [vmem:[#allocation92_spill] sm:$0xff] }
 0x182   :  { %10028 = vst [vmem:[#allocation133_spill] sm:$0xff] %v6660_v30  ;;  %v1061_v23 = vsel %vm9689_vm5, %v1060_v22, %v1056_v8  ;;  %v1070_v58 = vrot.slane %v10045_v47, %v6436_v56  ;;  %v1213_v12 = vrot.slane %v6518_v16, %v6396_v3  ;;  %v1204_v40 = vsel %vm705_vm2, %v1203_v7, %v1199_v46 }
 0x183   :  { %v1218_v8 = vrot.slane %v6548_v51, %v6425_v11  ;;  %v1144_v16 = vrot.slane %v10046_v32, %v6417_v2 }
 0x184   :  { %v6689_v60 = vpop.xlane.xlu1 %522 }
 0x185   :  { %10036 = vst [vmem:[#allocation134_spill] sm:$0xff] %v6689_v60  ;;  %v6691_v20 = vpop.xlane.xlu0 %520  ;;  %v1272_v45 = vrot.slane %v6689_v60, %v6363_v0  ;;  %v1130_v0 = vsel %vm9873_vm3, %v1129_v42, %v1125_v9  ;;  %v10042_v60 = vld [vmem:[#allocation93_spill] sm:$0xff]  ;;  %v1209_v42 = vsel %vm9873_vm3, %v1208_v15, %v1204_v40  ;;  %v1066_v40 = vsel %vm733_vm6, %v1065_v6, %v1061_v23 }
 0x186   :  { %10037 = vst [vmem:[#allocation135_spill] sm:$0xff] %v6691_v20  ;;  %v1268_v13 = vrot.slane %v6691_v20, %v6372_v17  ;;  %v1139_v17 = vrot.slane %v10042_v60, %v6425_v11  ;;  %v1012_v60 = vsel %vm768_vm11, %v1011_v26, %v1007_v31  ;;  %v1135_v7 = vsel %vm9687_vm4, %v1134_v5, %v1130_v0 }
 0x187   :  { %v1071_v31 = vsel %vm9707_vm7, %v1070_v58, %v1066_v40  ;;  %v1223_v0 = vrot.slane %v6546_v33, %v6417_v2  ;;  %v1214_v5 = vsel %vm9687_vm4, %v1213_v12, %v1209_v42  ;;  %v1017_v58 = vsel %vm775_vm12, %v1016_v36, %v1012_v60 }
 0x188   :  { %v6718_v20 = vpop.xlane.xlu1 %526  ;;  %v1273_v9 = vsel %vm691_vm0, %v1272_v45, %v1268_v13  ;;  %v10048_v13 = vld [vmem:[#allocation96_spill] sm:$0xff]  ;;  %v1219_v23 = vsel %vm9689_vm5, %v1218_v8, %v1214_v5 }
 0x189   :  { %10043 = vst [vmem:[#allocation136_spill] sm:$0xff] %v6718_v20  ;;  %v6720_v35 = vpop.xlane.xlu0 %524  ;;  %v1282_v39 = vrot.slane %v6718_v20, %v6389_v28  ;;  %v1149_v45 = vrot.slane %v10048_v13, %v6436_v56  ;;  %v10053_v5 = vld [vmem:[#allocation80_spill] sm:$0xff] }
 0x18a   :  { %10044 = vst [vmem:[#allocation137_spill] sm:$0xff] %v6720_v35  ;;  %v1277_v22 = vrot.slane %v6720_v35, %v6378_v38  ;;  %v10047_v38 = vld [vmem:[#allocation77_spill] sm:$0xff]  ;;  %v1140_v35 = vsel %vm9689_vm5, %v1139_v17, %v1135_v7  ;;  %v1228_v17 = vrot.slane %v6576_v59, %v6436_v56  ;;  %v10051_v7 = vld [vmem:[#allocation95_spill] sm:$0xff]  ;;  %v1080_v20 = vrot.slane %v10053_v5, %v6440_v24 }
 0x18b   :  { %v1075_v15 = vrot.slane %v10047_v38, %v6433_v57  ;;  %v1154_v40 = vrot.slane %v10051_v7, %v6433_v57  ;;  %v1145_v12 = vsel %vm733_vm6, %v1144_v16, %v1140_v35  ;;  %v1233_v35 = vrot.slane %v6574_v1, %v6433_v57 }
 0x18c   :  { %v1278_v46 = vsel %vm698_vm1, %v1277_v22, %v1273_v9  ;;  %v6746_v28 = vpop.xlane.xlu1 %530  ;;  %v1224_v16 = vsel %vm733_vm6, %v1223_v0, %v1219_v23 }
 0x18d   :  { %10049 = vst [vmem:[#allocation138_spill] sm:$0xff] %v6746_v28  ;;  %v6748_v26 = vpop.xlane.xlu0 %528  ;;  %v1292_v6 = vrot.slane %v6746_v28, %v6396_v3  ;;  %v1283_v9 = vsel %vm705_vm2, %v1282_v39, %v1278_v46  ;;  %v10054_v3 = vld [vmem:[#allocation100_spill] sm:$0xff]  ;;  %v1076_v36 = vsel %vm9706_vm8, %v1075_v15, %v1071_v31  ;;  %v10057_v15 = vld [vmem:[#allocation79_spill] sm:$0xff] }
 0x18e   :  { %10050 = vst [vmem:[#allocation139_spill] sm:$0xff] %v6748_v26  ;;  %v1287_v22 = vrot.slane %v6748_v26, %v6399_v19  ;;  %v10052_v19 = vld [vmem:[#allocation67_spill] sm:$0xff]  ;;  %v1150_v26 = vsel %vm9707_vm7, %v1149_v45, %v1145_v12  ;;  %v1159_v39 = vrot.slane %v10054_v3, %v6440_v24  ;;  %v1238_v45 = vrot.slane %v6602_v44, %v6440_v24  ;;  %v10064_v44 = vld [vmem:[#allocation81_spill] sm:$0xff] }
 0x18f   :  { %v1085_v31 = vrot.slane %v10057_v15, %v6448_v52  ;;  %v10058_v28 = vld [vmem:[#allocation99_spill] sm:$0xff]  ;;  %v1155_v0 = vsel %vm9706_vm8, %v1154_v40, %v1150_v26  ;;  %v10063_v26 = vld [vmem:[#allocation68_spill] sm:$0xff]  ;;  %v1095_v59 = vrot.slane %v10064_v44, %v6492_v10 }
 0x190   :  { %v1288_v42 = vsel %vm9873_vm3, %v1287_v22, %v1283_v9  ;;  %v6774_v46 = vpop.xlane.xlu1 %534  ;;  %v1229_v9 = vsel %vm9707_vm7, %v1228_v17, %v1224_v16  ;;  %v1164_v1 = vrot.slane %v10058_v28, %v6448_v52  ;;  %v1081_v17 = vsel %vm9705_vm9, %v1080_v20, %v1076_v36  ;;  %v10059_v16 = vld [vmem:[#allocation82_spill] sm:$0xff] }
 0x191   :  { %10055 = vst [vmem:[#allocation140_spill] sm:$0xff] %v6774_v46  ;;  %v6776_v60 = vpop.xlane.xlu0 %532  ;;  %v1302_v12 = vrot.slane %v6774_v46, %v6417_v2  ;;  %v1293_v8 = vsel %vm9687_vm4, %v1292_v6, %v1288_v42  ;;  %v1160_v2 = vsel %vm9705_vm9, %v1159_v39, %v1155_v0  ;;  %v10060_v6 = vld [vmem:[#allocation105_spill] sm:$0xff]  ;;  %vm9708_vm4 = vcmask 1042434  }
 0x192   :  { %10056 = vst [vmem:[#allocation141_spill] sm:$0xff] %v6776_v60  ;;  %v1297_v22 = vrot.slane %v6776_v60, %v6425_v11  ;;  %v1090_v11 = vrot.slane %v10059_v16, %v6466_v18  ;;  %v1169_v42 = vrot.slane %v10060_v6, %v6466_v18  ;;  %v1021_v40 = vrot.slane %v10063_v26, %v6501_v41 }
 0x193   :  { %v1234_v20 = vsel %vm9706_vm8, %v1233_v35, %v1229_v9  ;;  %v1165_v35 = vsel %vm761_vm10, %v1164_v1, %v1160_v2  ;;  %v7001_v6 = vsub.s32 6, %v6360_v53 }
 0x194   :  { %v1298_v23 = vsel %vm9689_vm5, %v1297_v22, %v1293_v8  ;;  %v6802_v46 = vpop.xlane.xlu1 %538  ;;  %v1243_v8 = vrot.slane %v6600_v37, %v6448_v52  ;;  %v1239_v39 = vsel %vm9705_vm9, %v1238_v45, %v1234_v20  ;;  %v1248_v22 = vrot.slane %v6628_v14, %v6466_v18  ;;  %v10065_v20 = vld [vmem:[#allocation84_spill] sm:$0xff]  ;;  %v10070_v14 = vld [vmem:[#allocation83_spill] sm:$0xff] }
 0x195   :  { %10061 = vst [vmem:[#allocation142_spill] sm:$0xff] %v6802_v46  ;;  %v6804_v60 = vpop.xlane.xlu0 %536  ;;  %v1312_v0 = vrot.slane %v6802_v46, %v6433_v57  ;;  %v1303_v33 = vsel %vm733_vm6, %v1302_v12, %v1298_v23  ;;  %vm1348_vm5 = vcmask 1043459   ;;  %v1086_v37 = vsel %vm761_vm10, %v1085_v31, %v1081_v17  ;;  %v10069_v31 = vld [vmem:[#allocation109_spill] sm:$0xff]  ;;  %10085 = vst [vmem:[#allocation155_spill] sm:$0xff] %v7001_v6 }
 0x196   :  { %10062 = vst [vmem:[#allocation143_spill] sm:$0xff] %v6804_v60  ;;  %v1307_v36 = vrot.slane %v6804_v60, %v6436_v56  ;;  %v1091_v45 = vsel %vm768_vm11, %v1090_v11, %v1086_v37  ;;  %v1100_v56 = vrot.slane %v10065_v20, %v6501_v41  ;;  %v10066_v60 = vld [vmem:[#allocation104_spill] sm:$0xff]  ;;  %v1170_v12 = vsel %vm768_vm11, %v1169_v42, %v1165_v35 }
 0x197   :  { %v1174_v57 = vrot.slane %v10066_v60, %v6492_v10  ;;  %v1179_v17 = vrot.slane %v10069_v31, %v6501_v41  ;;  %v1244_v2 = vsel %vm761_vm10, %v1243_v8, %v1239_v39  ;;  %v1258_v37 = vrot.slane %v6660_v30, %v6501_v41 }
 0x198   :  { %v1308_v9 = vsel %vm9707_vm7, %v1307_v36, %v1303_v33  ;;  %v6830_v23 = vpop.xlane.xlu1 %542  ;;  %v1253_v33 = vrot.slane %v6626_v63, %v6492_v10  ;;  %v1249_v1 = vsel %vm768_vm11, %v1248_v22, %v1244_v2  ;;  %v1022_v35 = vsel %vm782_vm13, %v1021_v40, %v1017_v58 }
 0x199   :  { %10067 = vst [vmem:[#allocation144_spill] sm:$0xff] %v6830_v23  ;;  %v6832_v46 = vpop.xlane.xlu0 %540  ;;  %v1322_v42 = vrot.slane %v6830_v23, %v6448_v52  ;;  %v1313_v36 = vsel %vm9706_vm8, %v1312_v0, %v1308_v9  ;;  %v1105_v63 = vrot.slane %v10070_v14, %v6498_v27  ;;  %v1096_v8 = vsel %vm775_vm12, %v1095_v59, %v1091_v45  ;;  %v10072_v52 = vld [vmem:[#allocation108_spill] sm:$0xff] }
 0x19a   :  { %10068 = vst [vmem:[#allocation145_spill] sm:$0xff] %v6832_v46  ;;  %v1317_v11 = vrot.slane %v6832_v46, %v6440_v24  ;;  %v10071_v22 = vrot.slane %v10031_v21, %v6498_v27  ;;  %v1101_v24 = vsel %vm782_vm13, %v1100_v56, %v1096_v8  ;;  %v1184_v0 = vrot.slane %v10072_v52, %v6498_v27 }
 0x19b   :  { %v1175_v58 = vsel %vm775_vm12, %v1174_v57, %v1170_v12  ;;  %v1263_v45 = vrot.slane %v6658_v62, %v6498_v27  ;;  %v10075_v56 = vrot.slane %v10052_v19, %v6498_v27  ;;  %v1345_v8 = vsel %vm9709_vm15, %v6638_v34, %v6631_v43 }
 0x19c   :  { %v1318_v39 = vsel %vm9705_vm9, %v1317_v11, %v1313_v36  ;;  %v948_v2 = vsel %vm789_vm14, %v10071_v22, %v6672_v29  ;;  %v6861_v40 = vpop.xlane.xlu1 %546  ;;  %v1180_v59 = vsel %vm782_vm13, %v1179_v17, %v1175_v58  ;;  %v1254_v11 = vsel %vm775_vm12, %v1253_v33, %v1249_v1 }
 0x19d   :  { %10073 = vst [vmem:[#allocation146_spill] sm:$0xff] %v6861_v40  ;;  %v6863_v9 = vpop.xlane.xlu0 %544  ;;  %v1027_v36 = vsel %vm789_vm14, %v10075_v56, %v1022_v35  ;;  %v1259_v57 = vsel %vm782_vm13, %v1258_v37, %v1254_v11  ;;  %v1332_v12 = vrot.slane %v6861_v40, %v6492_v10  ;;  %v1323_v17 = vsel %vm761_vm10, %v1322_v42, %v1318_v39 }
 0x19e   :  { %10074 = vst [vmem:[#allocation147_spill] sm:$0xff] %v6863_v9  ;;  %v1327_v29 = vrot.slane %v6863_v9, %v6466_v18  ;;  %v1106_v33 = vsel %vm789_vm14, %v1105_v63, %v1101_v24  ;;  %vm1350_vm9 = vcmask 1044484   ;;  %v1347_v22 = vsel %vm9708_vm4, %v948_v2, %v1345_v8 }
 0x19f   :  { %v1185_v37 = vsel %vm789_vm14, %v1184_v0, %v1180_v59  ;;  %vm9872_vm8 = vcmask 1045509   ;;  %vm9871_vm7 = vcmask 1046534   ;;  %v1264_v24 = vsel %vm789_vm14, %v1263_v45, %v1259_v57  ;;  %v10079_v45 = vld [vmem:[#allocation91_spill] sm:$0xff] }
 0x1a0   :  { %v1328_v1 = vsel %vm768_vm11, %v1327_v29, %v1323_v17  ;;  %v6885_v58 = vpop.xlane.xlu1 %550  ;;  %v1349_v63 = vsel %vm1348_vm5, %v1027_v36, %v1347_v22  ;;  %vm9870_vm4 = vcmask 1047559   ;;  %v6899_v2 = vsub.s32 0, %v6360_v53 }
 0x1a1   :  { %10076 = vst [vmem:[#allocation148_spill] sm:$0xff] %v6885_v58  ;;  %v6887_v35 = vpop.xlane.xlu0 %548  ;;  %v1342_v42 = vrot.slane %v6885_v58, %v6498_v27  ;;  %v1333_v43 = vsel %vm775_vm12, %v1332_v12, %v1328_v1  ;;  %v1351_v39 = vsel %vm1350_vm9, %v1106_v33, %v1349_v63  ;;  %v6005_v57 = vmov 0.0  }
 0x1a2   :  { %10077 = vst [vmem:[#allocation149_spill] sm:$0xff] %v6887_v35  ;;  %v1337_v34 = vrot.slane %v6887_v35, %v6501_v41  ;;  %10078 = vst [vmem:[#allocation150_spill] sm:$0xff] %v6899_v2  ;;  %v1353_v59 = vsel %vm9872_vm8, %v1185_v37, %v1351_v39  ;;  %v6912_v8 = vsub.s32 1, %v6360_v53  ;;  %v6917_v1 = vsub.s32 2, %v6360_v53 }
 0x1a3   :  { %v1355_v56 = vsel %vm9871_vm7, %v1264_v24, %v1353_v59  ;;  %v6922_v37 = vsub.s32 3, %v6360_v53  ;;  %v6964_v41 = vsub.s32 5, %v6360_v53 }
 0x1a4   :  { %v1338_v0 = vsel %vm782_vm13, %v1337_v34, %v1333_v43  ;;  %v1788_v11 = vpop.permute.xlu1 %1787  ;;  %10080 = vst [vmem:[#allocation91_spill] sm:$0xff] %v6912_v8  ;;  %10081 = vst [vmem:[#allocation151_spill] sm:$0xff] %v6917_v1  ;;  %v6933_v43 = vsub.s32 4, %v6360_v53 }
 0x1a5   :  { %v1343_v29 = vsel %vm789_vm14, %v1342_v42, %v1338_v0  ;;  %vm1789_vm15 = vcmp.lt.s32.totalorder %v10079_v45, %v1788_v11  ;;  %10082 = vst [vmem:[#allocation152_spill] sm:$0xff] %v6922_v37  ;;  %10084 = vst [vmem:[#allocation154_spill] sm:$0xff] %v6964_v41 }
 0x1a6   :  { %v1357_v36 = vsel %vm9870_vm4, %v1343_v29, %v1355_v56  ;;  %v6907_v12 = vsel %vm1789_vm15, 1.0, %v6005_v57  ;;  %10083 = vst [vmem:[#allocation153_spill] sm:$0xff] %v6933_v43  ;;  %vm10482_vm15 = vcmask 392512   ;;  %vm10491_vm4 = vcmask 589312  }
 0x1a7   :  { %1359 = vmax.xlane.f32.xlu0 %v1357_v36  ;;  %v1796_v17 = vrot.slane %v6907_v12, %v6899_v2  ;;  %v1863_v33 = vrot.slane %v6907_v12, %v6912_v8  ;;  %v1930_v22 = vrot.slane %v6907_v12, %v6917_v1  ;;  %v1997_v42 = vrot.slane %v6907_v12, %v6922_v37 }
 0x1a8   :  { %v2064_v0 = vrot.slane %v6907_v12, %v6933_v43  ;;  %v2131_v58 = vrot.slane %v6907_v12, %v6964_v41  ;;  %v2198_v13 = vrot.slane %v6907_v12, %v7001_v6  ;;  %v7038_v43 = vsub.s32 7, %v6360_v53 }
 0x1a9   :  { %1802 = vbcast.lane.b32.xlu1 %v1796_v17, 264 }
 0x1aa   :  { %10094 = vst [vmem:[#allocation164_spill] sm:$0xff] %v7038_v43 }
 0x1ad   :  { %1806 = vbcast.lane.b32.xlu1 %v1796_v17, 272 }
 0x1b1   :  { %1810 = vbcast.lane.b32.xlu1 %v1796_v17, 280 }
 0x1b5   :  { %1818 = vbcast.lane.b32.xlu1 %v1796_v17, 296 }
 0x1b9   :  { %1826 = vbcast.lane.b32.xlu1 %v1796_v17, 312 }
 0x1bd   :  { %1798 = vbcast.lane.b32.xlu0 %v1796_v17, 256  ;;  %1834 = vbcast.lane.b32.xlu1 %v1796_v17, 328 }
 0x1c1   :  { %1814 = vbcast.lane.b32.xlu0 %v1796_v17, 288  ;;  %1842 = vbcast.lane.b32.xlu1 %v1796_v17, 344 }
 0x1c5   :  { %1822 = vbcast.lane.b32.xlu0 %v1796_v17, 304  ;;  %1850 = vbcast.lane.b32.xlu1 %v1796_v17, 360 }
 0x1c9   :  { %1830 = vbcast.lane.b32.xlu0 %v1796_v17, 320  ;;  %1858 = vbcast.lane.b32.xlu1 %v1796_v17, 376 }
 0x1cd   :  { %1838 = vbcast.lane.b32.xlu0 %v1796_v17, 336  ;;  %1869 = vbcast.lane.b32.xlu1 %v1863_v33, 264 }
 0x1d1   :  { %1846 = vbcast.lane.b32.xlu0 %v1796_v17, 352  ;;  %1877 = vbcast.lane.b32.xlu1 %v1863_v33, 280 }
 0x1d5   :  { %1854 = vbcast.lane.b32.xlu0 %v1796_v17, 368  ;;  %1885 = vbcast.lane.b32.xlu1 %v1863_v33, 296 }
 0x1d9   :  { %1865 = vbcast.lane.b32.xlu0 %v1863_v33, 256  ;;  %1893 = vbcast.lane.b32.xlu1 %v1863_v33, 312 }
 0x1dd   :  { %1873 = vbcast.lane.b32.xlu0 %v1863_v33, 272  ;;  %1901 = vbcast.lane.b32.xlu1 %v1863_v33, 328 }
 0x1e1   :  { %1881 = vbcast.lane.b32.xlu0 %v1863_v33, 288  ;;  %1909 = vbcast.lane.b32.xlu1 %v1863_v33, 344 }
 0x1e5   :  { %1889 = vbcast.lane.b32.xlu0 %v1863_v33, 304  ;;  %1917 = vbcast.lane.b32.xlu1 %v1863_v33, 360 }
 0x1e9   :  { %1897 = vbcast.lane.b32.xlu0 %v1863_v33, 320  ;;  %1925 = vbcast.lane.b32.xlu1 %v1863_v33, 376 }
 0x1ed   :  { %1905 = vbcast.lane.b32.xlu0 %v1863_v33, 336  ;;  %1936 = vbcast.lane.b32.xlu1 %v1930_v22, 264 }
 0x1f1   :  { %1913 = vbcast.lane.b32.xlu0 %v1863_v33, 352  ;;  %1944 = vbcast.lane.b32.xlu1 %v1930_v22, 280 }
 0x1f5   :  { %1921 = vbcast.lane.b32.xlu0 %v1863_v33, 368  ;;  %1952 = vbcast.lane.b32.xlu1 %v1930_v22, 296 }
 0x1f9   :  { %1932 = vbcast.lane.b32.xlu0 %v1930_v22, 256  ;;  %1960 = vbcast.lane.b32.xlu1 %v1930_v22, 312 }
 0x1fd   :  { %1940 = vbcast.lane.b32.xlu0 %v1930_v22, 272  ;;  %1968 = vbcast.lane.b32.xlu1 %v1930_v22, 328 }
 0x201   :  { %1948 = vbcast.lane.b32.xlu0 %v1930_v22, 288  ;;  %1976 = vbcast.lane.b32.xlu1 %v1930_v22, 344 }
 0x205   :  { %1956 = vbcast.lane.b32.xlu0 %v1930_v22, 304  ;;  %1984 = vbcast.lane.b32.xlu1 %v1930_v22, 360 }
 0x209   :  { %1964 = vbcast.lane.b32.xlu0 %v1930_v22, 320  ;;  %1992 = vbcast.lane.b32.xlu1 %v1930_v22, 376 }
 0x20d   :  { %1972 = vbcast.lane.b32.xlu0 %v1930_v22, 336  ;;  %2003 = vbcast.lane.b32.xlu1 %v1997_v42, 264 }
 0x211   :  { %1980 = vbcast.lane.b32.xlu0 %v1930_v22, 352  ;;  %2011 = vbcast.lane.b32.xlu1 %v1997_v42, 280 }
 0x215   :  { %1988 = vbcast.lane.b32.xlu0 %v1930_v22, 368  ;;  %2019 = vbcast.lane.b32.xlu1 %v1997_v42, 296 }
 0x219   :  { %1999 = vbcast.lane.b32.xlu0 %v1997_v42, 256  ;;  %2027 = vbcast.lane.b32.xlu1 %v1997_v42, 312 }
 0x21b   :  { %v6926_v34 = vpop.permute.xlu1 %1802 }
 0x21d   :  { %2007 = vbcast.lane.b32.xlu0 %v1997_v42, 272  ;;  %2035 = vbcast.lane.b32.xlu1 %v1997_v42, 328 }
 0x21f   :  { %v6928_v24 = vpop.permute.xlu1 %1806 }
 0x221   :  { %2015 = vbcast.lane.b32.xlu0 %v1997_v42, 288  ;;  %2043 = vbcast.lane.b32.xlu1 %v1997_v42, 344 }
 0x223   :  { %v6930_v63 = vpop.permute.xlu1 %1810 }
 0x225   :  { %2023 = vbcast.lane.b32.xlu0 %v1997_v42, 304  ;;  %2051 = vbcast.lane.b32.xlu1 %v1997_v42, 360 }
 0x227   :  { %v6935_v39 = vpop.permute.xlu1 %1818 }
 0x229   :  { %2031 = vbcast.lane.b32.xlu0 %v1997_v42, 320  ;;  %2059 = vbcast.lane.b32.xlu1 %v1997_v42, 376 }
 0x22b   :  { %v6939_v59 = vpop.permute.xlu1 %1826 }
 0x22d   :  { %2039 = vbcast.lane.b32.xlu0 %v1997_v42, 336  ;;  %2070 = vbcast.lane.b32.xlu1 %v2064_v0, 264 }
 0x22f   :  { %v6941_v11 = vpop.permute.xlu1 %1834 }
 0x231   :  { %2047 = vbcast.lane.b32.xlu0 %v1997_v42, 352  ;;  %2078 = vbcast.lane.b32.xlu1 %v2064_v0, 280 }
 0x233   :  { %v6943_v29 = vpop.permute.xlu1 %1842 }
 0x234   :  { %v6945_v56 = vpop.xlane.xlu0 %1359 }
 0x235   :  { %2055 = vbcast.lane.b32.xlu0 %v1997_v42, 368  ;;  %2086 = vbcast.lane.b32.xlu1 %v2064_v0, 296 }
 0x237   :  { %v6947_v45 = vpop.permute.xlu1 %1850 }
 0x238   :  { %v6949_v36 = vpop.permute.xlu0 %1798 }
 0x239   :  { %2066 = vbcast.lane.b32.xlu0 %v2064_v0, 256  ;;  %2094 = vbcast.lane.b32.xlu1 %v2064_v0, 312 }
 0x23b   :  { %v6951_v57 = vpop.permute.xlu1 %1858 }
 0x23c   :  { %v6953_v17 = vpop.permute.xlu0 %1814 }
 0x23d   :  { %2074 = vbcast.lane.b32.xlu0 %v2064_v0, 272  ;;  %2102 = vbcast.lane.b32.xlu1 %v2064_v0, 328 }
 0x23f   :  { %v6955_v33 = vpop.permute.xlu1 %1869 }
 0x240   :  { %v6957_v22 = vpop.permute.xlu0 %1822 }
 0x241   :  { %2082 = vbcast.lane.b32.xlu0 %v2064_v0, 288  ;;  %2110 = vbcast.lane.b32.xlu1 %v2064_v0, 344 }
 0x243   :  { %v6959_v42 = vpop.permute.xlu1 %1877 }
 0x244   :  { %v6961_v27 = vpop.permute.xlu0 %1830 }
 0x245   :  { %2090 = vbcast.lane.b32.xlu0 %v2064_v0, 304  ;;  %2118 = vbcast.lane.b32.xlu1 %v2064_v0, 360 }
 0x247   :  { %v6966_v10 = vpop.permute.xlu1 %1885 }
 0x248   :  { %v6968_v18 = vpop.permute.xlu0 %1838 }
 0x249   :  { %2098 = vbcast.lane.b32.xlu0 %v2064_v0, 320  ;;  %2126 = vbcast.lane.b32.xlu1 %v2064_v0, 376 }
 0x24b   :  { %v6972_v40 = vpop.permute.xlu1 %1893 }
 0x24c   :  { %v6974_v23 = vpop.permute.xlu0 %1846 }
 0x24d   :  { %2106 = vbcast.lane.b32.xlu0 %v2064_v0, 336  ;;  %2137 = vbcast.lane.b32.xlu1 %v2131_v58, 264 }
 0x24f   :  { %v6976_v35 = vpop.permute.xlu1 %1901 }
 0x250   :  { %v6978_v9 = vpop.permute.xlu0 %1854 }
 0x251   :  { %2114 = vbcast.lane.b32.xlu0 %v2064_v0, 352  ;;  %2145 = vbcast.lane.b32.xlu1 %v2131_v58, 280 }
 0x253   :  { %v6980_v46 = vpop.permute.xlu1 %1909 }
 0x254   :  { %v6982_v62 = vpop.permute.xlu0 %1865 }
 0x255   :  { %2122 = vbcast.lane.b32.xlu0 %v2064_v0, 368  ;;  %2153 = vbcast.lane.b32.xlu1 %v2131_v58, 296 }
 0x257   :  { %v6984_v30 = vpop.permute.xlu1 %1917 }
 0x258   :  { %v6986_v51 = vpop.permute.xlu0 %1873 }
 0x259   :  { %2133 = vbcast.lane.b32.xlu0 %v2131_v58, 256  ;;  %2161 = vbcast.lane.b32.xlu1 %v2131_v58, 312 }
 0x25b   :  { %v6988_v52 = vpop.permute.xlu1 %1925 }
 0x25c   :  { %v6990_v60 = vpop.permute.xlu0 %1881 }
 0x25d   :  { %2141 = vbcast.lane.b32.xlu0 %v2131_v58, 272  ;;  %2169 = vbcast.lane.b32.xlu1 %v2131_v58, 328 }
 0x25f   :  { %v6992_v28 = vpop.permute.xlu1 %1936 }
 0x260   :  { %v6994_v31 = vpop.permute.xlu0 %1889 }
 0x261   :  { %2149 = vbcast.lane.b32.xlu0 %v2131_v58, 288  ;;  %2177 = vbcast.lane.b32.xlu1 %v2131_v58, 344 }
 0x263   :  { %v6996_v0 = vpop.permute.xlu1 %1944 }
 0x264   :  { %v6998_v7 = vpop.permute.xlu0 %1897 }
 0x265   :  { %2157 = vbcast.lane.b32.xlu0 %v2131_v58, 304  ;;  %2185 = vbcast.lane.b32.xlu1 %v2131_v58, 360 }
 0x267   :  { %v7003_v32 = vpop.permute.xlu1 %1952 }
 0x268   :  { %10086 = vst [vmem:[#allocation156_spill] sm:$0xff] %v7003_v32  ;;  %v7005_v3 = vpop.permute.xlu0 %1905 }
 0x269   :  { %2165 = vbcast.lane.b32.xlu0 %v2131_v58, 320  ;;  %2193 = vbcast.lane.b32.xlu1 %v2131_v58, 376 }
 0x26b   :  { %v7009_v14 = vpop.permute.xlu1 %1960 }
 0x26c   :  { %10087 = vst [vmem:[#allocation157_spill] sm:$0xff] %v7009_v14  ;;  %v7011_v44 = vpop.permute.xlu0 %1913 }
 0x26d   :  { %2173 = vbcast.lane.b32.xlu0 %v2131_v58, 336  ;;  %2204 = vbcast.lane.b32.xlu1 %v2198_v13, 264 }
 0x26f   :  { %v7013_v15 = vpop.permute.xlu1 %1968 }
 0x270   :  { %10088 = vst [vmem:[#allocation158_spill] sm:$0xff] %v7013_v15  ;;  %v7015_v20 = vpop.permute.xlu0 %1921 }
 0x271   :  { %2181 = vbcast.lane.b32.xlu0 %v2131_v58, 352  ;;  %2212 = vbcast.lane.b32.xlu1 %v2198_v13, 280 }
 0x273   :  { %v7017_v41 = vpop.permute.xlu1 %1976 }
 0x274   :  { %10089 = vst [vmem:[#allocation159_spill] sm:$0xff] %v7017_v41  ;;  %v7019_v38 = vpop.permute.xlu0 %1932 }
 0x275   :  { %2189 = vbcast.lane.b32.xlu0 %v2131_v58, 368  ;;  %2220 = vbcast.lane.b32.xlu1 %v2198_v13, 296 }
 0x277   :  { %v7021_v16 = vpop.permute.xlu1 %1984 }
 0x278   :  { %10090 = vst [vmem:[#allocation160_spill] sm:$0xff] %v7021_v16  ;;  %v7023_v6 = vpop.permute.xlu0 %1940 }
 0x279   :  { %2200 = vbcast.lane.b32.xlu0 %v2198_v13, 256  ;;  %2228 = vbcast.lane.b32.xlu1 %v2198_v13, 312 }
 0x27b   :  { %v7025_v5 = vpop.permute.xlu1 %1992 }
 0x27c   :  { %10091 = vst [vmem:[#allocation161_spill] sm:$0xff] %v7025_v5  ;;  %v7027_v47 = vpop.permute.xlu0 %1948 }
 0x27d   :  { %2208 = vbcast.lane.b32.xlu0 %v2198_v13, 272  ;;  %2236 = vbcast.lane.b32.xlu1 %v2198_v13, 328 }
 0x27f   :  { %v7029_v19 = vpop.permute.xlu1 %2003 }
 0x280   :  { %10092 = vst [vmem:[#allocation162_spill] sm:$0xff] %v7029_v19  ;;  %v7031_v25 = vpop.permute.xlu0 %1956  ;;  %v7046_v19 = vrot.slane %v6907_v12, %v7038_v43 }
 0x281   :  { %2216 = vbcast.lane.b32.xlu0 %v2198_v13, 288  ;;  %2244 = vbcast.lane.b32.xlu1 %v2198_v13, 344 }
 0x283   :  { %v7033_v58 = vpop.permute.xlu1 %2011 }
 0x284   :  { %10093 = vst [vmem:[#allocation163_spill] sm:$0xff] %v7033_v58  ;;  %v7035_v26 = vpop.permute.xlu0 %1964 }
 0x285   :  { %2224 = vbcast.lane.b32.xlu0 %v2198_v13, 304  ;;  %2252 = vbcast.lane.b32.xlu1 %v2198_v13, 360 }
 0x287   :  { %v7040_v5 = vpop.permute.xlu1 %2019 }
 0x288   :  { %10095 = vst [vmem:[#allocation165_spill] sm:$0xff] %v7040_v5  ;;  %v7042_v50 = vpop.permute.xlu0 %1972  ;;  %v7060_v5 = vrot.slane %v6945_v56, %v6899_v2 }
 0x289   :  { %10096 = vst [vmem:[#allocation166_spill] sm:$0xff] %v7042_v50  ;;  %2232 = vbcast.lane.b32.xlu0 %v2198_v13, 320  ;;  %2260 = vbcast.lane.b32.xlu1 %v2198_v13, 376 }
 0x28b   :  { %v7048_v16 = vpop.permute.xlu1 %2027 }
 0x28c   :  { %10097 = vst [vmem:[#allocation167_spill] sm:$0xff] %v7048_v16  ;;  %v7050_v58 = vpop.permute.xlu0 %1980  ;;  %v10103_v16 = vld [vmem:[#allocation14_spill] sm:$0xff] }
 0x28d   :  { %10098 = vst [vmem:[#allocation168_spill] sm:$0xff] %v7050_v58  ;;  %2240 = vbcast.lane.b32.xlu0 %v2198_v13, 336  ;;  %2271 = vbcast.lane.b32.xlu1 %v7046_v19, 264  ;;  %v1403_v15 = vsub.f32 %v10103_v16, %v7060_v5  ;;  %v10106_v58 = vld [vmem:[#allocation11_spill] sm:$0xff]  ;;  %v10109_v16 = vld [vmem:[#allocation16_spill] sm:$0xff] }
 0x28f   :  { %v7053_v41 = vpop.permute.xlu1 %2035  ;;  %v1532_v2 = vmul.f32 1.442695, %v1403_v15  ;;  %v10112_v15 = vld [vmem:[#allocation12_spill] sm:$0xff] }
 0x290   :  { %10099 = vst [vmem:[#allocation169_spill] sm:$0xff] %v7053_v41  ;;  %v7055_v53 = vpop.permute.xlu0 %1988 }
 0x291   :  { %10100 = vst [vmem:[#allocation170_spill] sm:$0xff] %v7055_v53  ;;  %2248 = vbcast.lane.b32.xlu0 %v2198_v13, 352  ;;  %2279 = vbcast.lane.b32.xlu1 %v7046_v19, 280  ;;  %5543 = vpow2.f32 %v1532_v2 }
 0x293   :  { %v7062_v12 = vpop.permute.xlu1 %2043 }
 0x294   :  { %10101 = vst [vmem:[#allocation171_spill] sm:$0xff] %v7062_v12  ;;  %v7064_v43 = vpop.permute.xlu0 %1999  ;;  %v1404_v12 = vsub.f32 %v10106_v58, %v7060_v5  ;;  %v1402_v58 = vsub.f32 %v10112_v15, %v7060_v5 }
 0x295   :  { %10102 = vst [vmem:[#allocation172_spill] sm:$0xff] %v7064_v43  ;;  %2256 = vbcast.lane.b32.xlu0 %v2198_v13, 368  ;;  %2287 = vbcast.lane.b32.xlu1 %v7046_v19, 296 }
 0x297   :  { %v7069_v41 = vpop.permute.xlu1 %2051 }
 0x298   :  { %10104 = vst [vmem:[#allocation14_spill] sm:$0xff] %v7069_v41  ;;  %v7071_v53 = vpop.permute.xlu0 %2007  ;;  %v1406_v41 = vsub.f32 %v10109_v16, %v7060_v5  ;;  %v10116_v16 = vld [vmem:[#allocation13_spill] sm:$0xff] }
 0x299   :  { %10105 = vst [vmem:[#allocation173_spill] sm:$0xff] %v7071_v53  ;;  %2267 = vbcast.lane.b32.xlu0 %v7046_v19, 256  ;;  %2295 = vbcast.lane.b32.xlu1 %v7046_v19, 312  ;;  %v1534_v53 = vmul.f32 1.442695, %v1404_v12 }
 0x29a   :  { %v1530_v12 = vmul.f32 1.442695, %v1402_v58 }
 0x29b   :  { %v7077_v14 = vpop.permute.xlu1 %2059  ;;  %5545 = vpow2.f32 %v1534_v53 }
 0x29c   :  { %10107 = vst [vmem:[#allocation11_spill] sm:$0xff] %v7077_v14  ;;  %v7079_v13 = vpop.permute.xlu0 %2015  ;;  %v1538_v14 = vmul.f32 1.442695, %v1406_v41  ;;  %v1410_v41 = vsub.f32 %v6150_v49, %v7060_v5 }
 0x29d   :  { %10108 = vst [vmem:[#allocation174_spill] sm:$0xff] %v7079_v13  ;;  %2275 = vbcast.lane.b32.xlu0 %v7046_v19, 272  ;;  %2303 = vbcast.lane.b32.xlu1 %v7046_v19, 328  ;;  %v10113_v13 = vld [vmem:[#allocation18_spill] sm:$0xff] }
 0x29e   :  { %v1408_v21 = vsub.f32 %v10113_v13, %v7060_v5  ;;  %5547 = vpow2.f32 %v1538_v14  ;;  %v5544_v13 = vpop.eup %5543  ;;  %v1546_v14 = vmul.f32 1.442695, %v1410_v41 }
 0x29f   :  { %v7085_v43 = vpop.permute.xlu1 %2070  ;;  %5549 = vpow2.f32 %v1530_v12  ;;  %v7118_v49 = vmul.f32 %v5544_v13, %v6926_v34 }
 0x2a0   :  { %10110 = vst [vmem:[#allocation16_spill] sm:$0xff] %v7085_v43  ;;  %v7087_v50 = vpop.permute.xlu0 %2023  ;;  %v1405_v43 = vsub.f32 %v10116_v16, %v7060_v5  ;;  %v1542_v15 = vmul.f32 1.442695, %v1408_v21 }
 0x2a1   :  { %10111 = vst [vmem:[#allocation175_spill] sm:$0xff] %v7087_v50  ;;  %2283 = vbcast.lane.b32.xlu0 %v7046_v19, 288  ;;  %2311 = vbcast.lane.b32.xlu1 %v7046_v19, 344  ;;  %10121 = vst [vmem:[#allocation177_spill] sm:$0xff] %v7118_v49 }
 0x2a2   :  { %v1536_v58 = vmul.f32 1.442695, %v1405_v43  ;;  %5551 = vpow2.f32 %v1542_v15 }
 0x2a3   :  { %v7095_v32 = vpop.permute.xlu1 %2078 }
 0x2a4   :  { %10114 = vst [vmem:[#allocation12_spill] sm:$0xff] %v7095_v32  ;;  %v7097_v2 = vpop.permute.xlu0 %2031  ;;  %v10119_v32 = vld [vmem:[#allocation15_spill] sm:$0xff]  ;;  %5553 = vpow2.f32 %v1536_v58  ;;  %v1411_v58 = vsub.f32 %v6148_v48, %v7060_v5 }
 0x2a5   :  { %10115 = vst [vmem:[#allocation18_spill] sm:$0xff] %v7097_v2  ;;  %2291 = vbcast.lane.b32.xlu0 %v7046_v19, 304  ;;  %2319 = vbcast.lane.b32.xlu1 %v7046_v19, 360  ;;  %v1407_v2 = vsub.f32 %v10119_v32, %v7060_v5  ;;  %v10122_v32 = vld [vmem:[#allocation17_spill] sm:$0xff]  ;;  %5555 = vpow2.f32 %v1546_v14 }
 0x2a6   :  { %v1409_v12 = vsub.f32 %v10122_v32, %v7060_v5  ;;  %v1548_v48 = vmul.f32 1.442695, %v1411_v58 }
 0x2a7   :  { %v7105_v50 = vpop.permute.xlu1 %2086  ;;  %v1540_v43 = vmul.f32 1.442695, %v1407_v2 }
 0x2a8   :  { %10117 = vst [vmem:[#allocation13_spill] sm:$0xff] %v7105_v50  ;;  %v7107_v53 = vpop.permute.xlu0 %2039  ;;  %v5546_v50 = vpop.eup %5545  ;;  %v1544_v2 = vmul.f32 1.442695, %v1409_v12 }
 0x2a9   :  { %10118 = vst [vmem:[#allocation176_spill] sm:$0xff] %v7107_v53  ;;  %2299 = vbcast.lane.b32.xlu0 %v7046_v19, 320  ;;  %2327 = vbcast.lane.b32.xlu1 %v7046_v19, 376  ;;  %v1412_v53 = vsub.f32 %v6156_v55, %v7060_v5  ;;  %v7131_v34 = vmul.f32 %v5546_v50, %v6928_v24  ;;  %v5548_v13 = vpop.eup %5547  ;;  %5557 = vpow2.f32 %v1540_v43 }
 0x2aa   :  { %v1414_v55 = vsub.f32 %v6162_v61, %v7060_v5  ;;  %v5550_v14 = vpop.eup %5549  ;;  %v7140_v32 = vmul.f32 %v5548_v13, %v6953_v17  ;;  %v7148_v61 = vrot.slane %v6945_v56, %v6912_v8  ;;  %v1416_v43 = vsub.f32 %v6168_v4, %v7060_v5 }
 0x2ab   :  { %v7113_v21 = vpop.permute.xlu1 %2094  ;;  %10123 = vst [vmem:[#allocation17_spill] sm:$0xff] %v7131_v34  ;;  %v1413_v17 = vsub.f32 %v6154_v54, %v7060_v5  ;;  %v7157_v12 = vmul.f32 %v5550_v14, %v6949_v36  ;;  %v10128_v54 = vld [vmem:[#allocation19_spill] sm:$0xff] }
 0x2ac   :  { %10120 = vst [vmem:[#allocation15_spill] sm:$0xff] %v7113_v21  ;;  %v7115_v16 = vpop.permute.xlu0 %2047  ;;  %v1550_v21 = vmul.f32 1.442695, %v1412_v53  ;;  %10124 = vst [vmem:[#allocation178_spill] sm:$0xff] %v7140_v32  ;;  %v5552_v53 = vpop.eup %5551  ;;  %v1415_v36 = vsub.f32 %v10128_v54, %v7060_v5 }
 0x2ad   :  { %2307 = vbcast.lane.b32.xlu0 %v7046_v19, 336  ;;  %2717 = vperm.xlu1 %5541, %v7118_v49   ;;  %10125 = vst [vmem:[#allocation179_spill] sm:$0xff] %v7157_v12  ;;  %v7160_v8 = vmul.f32 %v5552_v53, %v6957_v22  ;;  %v1552_v22 = vmul.f32 1.442695, %v1413_v17  ;;  %v10131_v49 = vld [vmem:[#allocation24_spill] sm:$0xff] }
 0x2ae   :  { %5559 = vpow2.f32 %v1550_v21  ;;  %v5554_v13 = vpop.eup %5553  ;;  %v1420_v54 = vsub.f32 %v10131_v49, %v7148_v61  ;;  %v10132_v17 = vld [vmem:[#allocation20_spill] sm:$0xff] }
 0x2af   :  { %v7126_v15 = vpop.permute.xlu1 %2102  ;;  %5561 = vpow2.f32 %v1544_v2  ;;  %10126 = vst [vmem:[#allocation180_spill] sm:$0xff] %v7160_v8  ;;  %v5556_v4 = vpop.eup %5555  ;;  %v10127_v2 = vld [vmem:[#allocation22_spill] sm:$0xff]  ;;  %v7173_v14 = vmul.f32 %v5554_v13, %v6930_v63  ;;  %v1417_v63 = vsub.f32 %v10132_v17, %v7060_v5 }
 0x2b0   :  { %v7128_v41 = vpop.permute.xlu0 %2055  ;;  %v1418_v58 = vsub.f32 %v10127_v2, %v7148_v61 }
 0x2b1   :  { %2315 = vbcast.lane.b32.xlu0 %v7046_v19, 352  ;;  %2720 = vperm.xlu1 %5541, %v7131_v34   ;;  %v1554_v34 = vmul.f32 1.442695, %v1414_v55  ;;  %10129 = vst [vmem:[#allocation22_spill] sm:$0xff] %v7173_v14 }
 0x2b2   :  { %v1562_v2 = vmul.f32 1.442695, %v1418_v58 }
 0x2b3   :  { %v7142_v50 = vpop.permute.xlu1 %2110  ;;  %5563 = vpow2.f32 %v1554_v34  ;;  %v5558_v53 = vpop.eup %5557 }
 0x2b4   :  { %v7144_v24 = vpop.permute.xlu0 %2066  ;;  %5565 = vpow2.f32 %v1548_v48  ;;  %v1556_v48 = vmul.f32 1.442695, %v1415_v36  ;;  %v7189_v13 = vmul.f32 %v5558_v53, %v6935_v39  ;;  %v1566_v36 = vmul.f32 1.442695, %v1420_v54  ;;  %v10136_v39 = vld [vmem:[#allocation21_spill] sm:$0xff] }
 0x2b5   :  { %2323 = vbcast.lane.b32.xlu0 %v7046_v19, 368  ;;  %2726 = vperm.xlu1 %5541, %v7140_v32   ;;  %v1558_v19 = vmul.f32 1.442695, %v1416_v43  ;;  %v7176_v32 = vmul.f32 %v5556_v4, %v6961_v27  ;;  %v1419_v53 = vsub.f32 %v10136_v39, %v7148_v61 }
 0x2b6   :  { %10133 = vst [vmem:[#allocation24_spill] sm:$0xff] %v7189_v13 }
 0x2b7   :  { %v7162_v21 = vpop.permute.xlu1 %2118  ;;  %10130 = vst [vmem:[#allocation19_spill] sm:$0xff] %v7176_v32  ;;  %5567 = vpow2.f32 %v1558_v19  ;;  %v1564_v39 = vmul.f32 1.442695, %v1419_v53  ;;  %v10143_v53 = vld [vmem:[#allocation30_spill] sm:$0xff] }
 0x2b8   :  { %v7164_v55 = vpop.permute.xlu0 %2074  ;;  %5569 = vpow2.f32 %v1552_v22  ;;  %v5560_v27 = vpop.eup %5559  ;;  %v1560_v22 = vmul.f32 1.442695, %v1417_v63  ;;  %v10139_v63 = vld [vmem:[#allocation28_spill] sm:$0xff] }
 0x2b9   :  { %2714 = vperm.xlu0 %5542, %v7157_v12   ;;  %2732 = vperm.xlu1 %5541, %v7160_v8   ;;  %v5562_v4 = vpop.eup %5561  ;;  %v7192_v19 = vmul.f32 %v5560_v27, %v6968_v18  ;;  %5571 = vpow2.f32 %v1562_v2  ;;  %v10135_v8 = vld [vmem:[#allocation26_spill] sm:$0xff] }
 0x2ba   :  { %v1422_v5 = vsub.f32 %v10135_v8, %v7148_v61  ;;  %5573 = vpow2.f32 %v1556_v48  ;;  %v7205_v17 = vmul.f32 %v5562_v4, %v6939_v59  ;;  %v10140_v59 = vld [vmem:[#allocation23_spill] sm:$0xff] }
 0x2bb   :  { %v7178_v34 = vpop.permute.xlu1 %2126  ;;  %10134 = vst [vmem:[#allocation20_spill] sm:$0xff] %v7192_v19  ;;  %5575 = vpow2.f32 %v1566_v36  ;;  %v1421_v4 = vsub.f32 %v10140_v59, %v7148_v61 }
 0x2bc   :  { %v7180_v43 = vpop.permute.xlu0 %2082  ;;  %10137 = vst [vmem:[#allocation26_spill] sm:$0xff] %v7205_v17  ;;  %v1570_v48 = vmul.f32 1.442695, %v1422_v5  ;;  %5577 = vpow2.f32 %v1560_v22 }
 0x2bd   :  { %2723 = vperm.xlu0 %5542, %v7173_v14   ;;  %2738 = vperm.xlu1 %5541, %v7176_v32   ;;  %v5564_v18 = vpop.eup %5563  ;;  %v1424_v32 = vsub.f32 %v10139_v63, %v7148_v61  ;;  %v1568_v59 = vmul.f32 1.442695, %v1421_v4  ;;  %v10147_v4 = vld [vmem:[#allocation32_spill] sm:$0xff] }
 0x2be   :  { %v5566_v27 = vpop.eup %5565  ;;  %v7208_v2 = vmul.f32 %v5564_v18, %v6974_v23  ;;  %5579 = vpow2.f32 %v1570_v48 }
 0x2bf   :  { %v7194_v58 = vpop.permute.xlu1 %2137  ;;  %v7221_v18 = vmul.f32 %v5566_v27, %v6941_v11  ;;  %v1574_v22 = vmul.f32 1.442695, %v1424_v32  ;;  %5581 = vpow2.f32 %v1564_v39 }
 0x2c0   :  { %v7196_v49 = vpop.permute.xlu0 %2090  ;;  %10138 = vst [vmem:[#allocation21_spill] sm:$0xff] %v7208_v2 }
 0x2c1   :  { %2729 = vperm.xlu0 %5542, %v7189_v13   ;;  %2744 = vperm.xlu1 %5541, %v7192_v19   ;;  %v5568_v23 = vpop.eup %5567  ;;  %10141 = vst [vmem:[#allocation28_spill] sm:$0xff] %v7221_v18  ;;  %5583 = vpow2.f32 %v1574_v22 }
 0x2c2   :  { %v5570_v19 = vpop.eup %5569  ;;  %v7224_v36 = vmul.f32 %v5568_v23, %v6978_v9  ;;  %v10145_v23 = vld [vmem:[#allocation25_spill] sm:$0xff]  ;;  %5585 = vpow2.f32 %v1568_v59 }
 0x2c3   :  { %v7210_v54 = vpop.permute.xlu1 %2145  ;;  %v5572_v11 = vpop.eup %5571  ;;  %v7235_v27 = vmul.f32 %v5570_v19, %v6943_v29 }
 0x2c4   :  { %v7212_v8 = vpop.permute.xlu0 %2098  ;;  %10142 = vst [vmem:[#allocation23_spill] sm:$0xff] %v7224_v36  ;;  %v5574_v9 = vpop.eup %5573  ;;  %v7240_v48 = vmul.f32 %v5572_v11, %v6982_v62 }
 0x2c5   :  { %2735 = vperm.xlu0 %5542, %v7205_v17   ;;  %2750 = vperm.xlu1 %5541, %v7208_v2   ;;  %v1426_v17 = vsub.f32 %v10143_v53, %v7148_v61  ;;  %10144 = vst [vmem:[#allocation30_spill] sm:$0xff] %v7235_v27  ;;  %v1423_v2 = vsub.f32 %v10145_v23, %v7148_v61  ;;  %v5576_v29 = vpop.eup %5575  ;;  %v10149_v23 = vld [vmem:[#allocation27_spill] sm:$0xff] }
 0x2c6   :  { %10146 = vst [vmem:[#allocation25_spill] sm:$0xff] %v7240_v48  ;;  %v7251_v19 = vmul.f32 %v5574_v9, %v6947_v45  ;;  %v5578_v62 = vpop.eup %5577  ;;  %v1425_v13 = vsub.f32 %v10149_v23, %v7148_v61  ;;  %v7256_v22 = vmul.f32 %v5576_v29, %v6986_v51  ;;  %v10153_v29 = vld [vmem:[#allocation29_spill] sm:$0xff] }
 0x2c7   :  { %v7226_v5 = vpop.permute.xlu1 %2153  ;;  %v1578_v39 = vmul.f32 1.442695, %v1426_v17  ;;  %v1572_v11 = vmul.f32 1.442695, %v1423_v2  ;;  %v7267_v2 = vmul.f32 %v5578_v62, %v6951_v57  ;;  %v1427_v23 = vsub.f32 %v10153_v29, %v7148_v61  ;;  %v10155_v62 = vld [vmem:[#allocation36_spill] sm:$0xff] }
 0x2c8   :  { %v7228_v63 = vpop.permute.xlu0 %2106  ;;  %10148 = vst [vmem:[#allocation32_spill] sm:$0xff] %v7251_v19  ;;  %10150 = vst [vmem:[#allocation27_spill] sm:$0xff] %v7256_v22  ;;  %v5580_v45 = vpop.eup %5579  ;;  %v1576_v51 = vmul.f32 1.442695, %v1425_v13 }
 0x2c9   :  { %2741 = vperm.xlu0 %5542, %v7221_v18   ;;  %2756 = vperm.xlu1 %5541, %v7224_v36   ;;  %v1428_v36 = vsub.f32 %v10147_v4, %v7148_v61  ;;  %5587 = vpow2.f32 %v1578_v39  ;;  %v5582_v9 = vpop.eup %5581  ;;  %v7272_v39 = vmul.f32 %v5580_v45, %v6990_v60  ;;  %v1580_v29 = vmul.f32 1.442695, %v1427_v23 }
 0x2ca   :  { %5589 = vpow2.f32 %v1572_v11  ;;  %v1432_v11 = vsub.f32 %v10155_v62, %v7148_v61  ;;  %v7287_v60 = vmul.f32 %v5582_v9, %v6955_v33 }
 0x2cb   :  { %v7242_v32 = vpop.permute.xlu1 %2161  ;;  %v1582_v59 = vmul.f32 1.442695, %v1428_v36  ;;  %10154 = vst [vmem:[#allocation29_spill] sm:$0xff] %v7272_v39  ;;  %v5584_v13 = vpop.eup %5583 }
 0x2cc   :  { %v7244_v53 = vpop.permute.xlu0 %2114  ;;  %10156 = vst [vmem:[#allocation36_spill] sm:$0xff] %v7287_v60  ;;  %v5586_v45 = vpop.eup %5585  ;;  %v1590_v14 = vmul.f32 1.442695, %v1432_v11 }
 0x2cd   :  { %2747 = vperm.xlu0 %5542, %v7235_v27   ;;  %2762 = vperm.xlu1 %5541, %v7240_v48   ;;  %v10151_v48 = vld [vmem:[#allocation34_spill] sm:$0xff]  ;;  %5591 = vpow2.f32 %v1582_v59  ;;  %v7292_v59 = vmul.f32 %v5584_v13, %v6994_v31  ;;  %v7303_v9 = vmul.f32 %v5586_v45, %v6959_v42  ;;  %v10163_v13 = vld [vmem:[#allocation40_spill] sm:$0xff] }
 0x2ce   :  { %v1430_v27 = vsub.f32 %v10151_v48, %v7148_v61  ;;  %10152 = vst [vmem:[#allocation34_spill] sm:$0xff] %v7267_v2  ;;  %5593 = vpow2.f32 %v1576_v51 }
 0x2cf   :  { %v7258_v17 = vpop.permute.xlu1 %2169 }
 0x2d0   :  { %v7260_v4 = vpop.permute.xlu0 %2122  ;;  %v1586_v57 = vmul.f32 1.442695, %v1430_v27 }
 0x2d1   :  { %2753 = vperm.xlu0 %5542, %v7251_v19   ;;  %2768 = vperm.xlu1 %5541, %v7256_v22   ;;  %v7280_v22 = vrot.slane %v6945_v56, %v6917_v1  ;;  %v10157_v19 = vld [vmem:[#allocation31_spill] sm:$0xff] }
 0x2d2   :  { %v1429_v1 = vsub.f32 %v10157_v19, %v7148_v61  ;;  %10158 = vst [vmem:[#allocation31_spill] sm:$0xff] %v7292_v59  ;;  %5595 = vpow2.f32 %v1586_v57  ;;  %v10161_v19 = vld [vmem:[#allocation33_spill] sm:$0xff] }
 0x2d3   :  { %v7274_v36 = vpop.permute.xlu1 %2177  ;;  %v5588_v33 = vpop.eup %5587  ;;  %5597 = vpow2.f32 %v1580_v29  ;;  %v1431_v51 = vsub.f32 %v10161_v19, %v7148_v61  ;;  %v10165_v29 = vld [vmem:[#allocation35_spill] sm:$0xff] }
 0x2d4   :  { %v7276_v48 = vpop.permute.xlu0 %2133  ;;  %v1584_v31 = vmul.f32 1.442695, %v1429_v1  ;;  %v7308_v23 = vmul.f32 %v5588_v33, %v6998_v7  ;;  %5599 = vpow2.f32 %v1590_v14  ;;  %v5590_v42 = vpop.eup %5589  ;;  %v1433_v33 = vsub.f32 %v10165_v29, %v7148_v61  ;;  %v10171_v29 = vld [vmem:[#allocation44_spill] sm:$0xff] }
 0x2d5   :  { %2759 = vperm.xlu0 %5542, %v7267_v2   ;;  %2774 = vperm.xlu1 %5541, %v7272_v39   ;;  %v10159_v39 = vld [vmem:[#allocation38_spill] sm:$0xff]  ;;  %v7319_v45 = vmul.f32 %v5590_v42, %v6966_v10  ;;  %v1588_v7 = vmul.f32 1.442695, %v1431_v51  ;;  %v10169_v51 = vld [vmem:[#allocation37_spill] sm:$0xff] }
 0x2d6   :  { %v1434_v2 = vsub.f32 %v10159_v39, %v7280_v22  ;;  %10160 = vst [vmem:[#allocation38_spill] sm:$0xff] %v7303_v9  ;;  %10162 = vst [vmem:[#allocation33_spill] sm:$0xff] %v7308_v23  ;;  %5601 = vpow2.f32 %v1584_v31  ;;  %v1435_v42 = vsub.f32 %v10169_v51, %v7280_v22 }
 0x2d7   :  { %v7294_v27 = vpop.permute.xlu1 %2185  ;;  %v5592_v1 = vpop.eup %5591  ;;  %10164 = vst [vmem:[#allocation40_spill] sm:$0xff] %v7319_v45 }
 0x2d8   :  { %v7296_v62 = vpop.permute.xlu0 %2141  ;;  %v1594_v39 = vmul.f32 1.442695, %v1434_v2  ;;  %v7324_v14 = vmul.f32 %v5592_v1, %v7005_v3  ;;  %v5594_v10 = vpop.eup %5593  ;;  %v1592_v3 = vmul.f32 1.442695, %v1433_v33 }
 0x2d9   :  { %2765 = vperm.xlu0 %5542, %v7287_v60   ;;  %2780 = vperm.xlu1 %5541, %v7292_v59   ;;  %v1436_v59 = vsub.f32 %v10163_v13, %v7280_v22  ;;  %v7335_v61 = vmul.f32 %v5594_v10, %v6972_v40  ;;  %v10173_v10 = vld [vmem:[#allocation39_spill] sm:$0xff] }
 0x2da   :  { %10166 = vst [vmem:[#allocation35_spill] sm:$0xff] %v7324_v14  ;;  %5603 = vpow2.f32 %v1594_v39 }
 0x2db   :  { %v7310_v57 = vpop.permute.xlu1 %2193  ;;  %v1598_v13 = vmul.f32 1.442695, %v1436_v59  ;;  %5605 = vpow2.f32 %v1588_v7 }
 0x2dc   :  { %v7312_v11 = vpop.permute.xlu0 %2149  ;;  %v5596_v31 = vpop.eup %5595 }
 0x2dd   :  { %2771 = vperm.xlu0 %5542, %v7303_v9   ;;  %2786 = vperm.xlu1 %5541, %v7308_v23   ;;  %v10167_v23 = vld [vmem:[#allocation42_spill] sm:$0xff]  ;;  %v7340_v39 = vmul.f32 %v5596_v31, %v7011_v44  ;;  %5607 = vpow2.f32 %v1598_v13  ;;  %v5598_v40 = vpop.eup %5597  ;;  %v1596_v44 = vmul.f32 1.442695, %v1435_v42  ;;  %v1437_v31 = vsub.f32 %v10173_v10, %v7280_v22 }
 0x2de   :  { %v1438_v9 = vsub.f32 %v10167_v23, %v7280_v22  ;;  %10168 = vst [vmem:[#allocation42_spill] sm:$0xff] %v7335_v61  ;;  %v5600_v7 = vpop.eup %5599  ;;  %v7351_v33 = vmul.f32 %v5598_v40, %v6976_v35  ;;  %5609 = vpow2.f32 %v1592_v3  ;;  %v10177_v40 = vld [vmem:[#allocation41_spill] sm:$0xff] }
 0x2df   :  { %v7326_v2 = vpop.permute.xlu1 %2204  ;;  %10170 = vst [vmem:[#allocation37_spill] sm:$0xff] %v7340_v39  ;;  %v7356_v13 = vmul.f32 %v5600_v7, %v7015_v20  ;;  %v1600_v20 = vmul.f32 1.442695, %v1437_v31  ;;  %v1439_v7 = vsub.f32 %v10177_v40, %v7280_v22 }
 0x2e0   :  { %v7328_v19 = vpop.permute.xlu0 %2157  ;;  %v1602_v1 = vmul.f32 1.442695, %v1438_v9  ;;  %10172 = vst [vmem:[#allocation44_spill] sm:$0xff] %v7351_v33  ;;  %v5602_v35 = vpop.eup %5601 }
 0x2e1   :  { %2777 = vperm.xlu0 %5542, %v7319_v45   ;;  %2792 = vperm.xlu1 %5541, %v7324_v14   ;;  %v1440_v14 = vsub.f32 %v10171_v29, %v7280_v22  ;;  %10174 = vst [vmem:[#allocation39_spill] sm:$0xff] %v7356_v13  ;;  %v7367_v42 = vmul.f32 %v5602_v35, %v6980_v46  ;;  %v10181_v35 = vld [vmem:[#allocation43_spill] sm:$0xff]  ;;  %v10202_v45 = vld [vmem:[#allocation166_spill] sm:$0xff] }
 0x2e2   :  { %5611 = vpow2.f32 %v1602_v1 }
 0x2e3   :  { %v7342_v59 = vpop.permute.xlu1 %2212  ;;  %v1606_v29 = vmul.f32 1.442695, %v1440_v14  ;;  %5613 = vpow2.f32 %v1596_v44 }
 0x2e4   :  { %v7344_v23 = vpop.permute.xlu0 %2165  ;;  %v5604_v3 = vpop.eup %5603 }
 0x2e5   :  { %2783 = vperm.xlu0 %5542, %v7335_v61   ;;  %2798 = vperm.xlu1 %5541, %v7340_v39   ;;  %v10175_v39 = vld [vmem:[#allocation46_spill] sm:$0xff]  ;;  %v7372_v1 = vmul.f32 %v5604_v3, %v7019_v38  ;;  %5615 = vpow2.f32 %v1606_v29  ;;  %v5606_v46 = vpop.eup %5605  ;;  %v1604_v38 = vmul.f32 1.442695, %v1439_v7  ;;  %v1441_v3 = vsub.f32 %v10181_v35, %v7280_v22 }
 0x2e6   :  { %v1442_v61 = vsub.f32 %v10175_v39, %v7280_v22  ;;  %10176 = vst [vmem:[#allocation46_spill] sm:$0xff] %v7367_v42  ;;  %v7383_v31 = vmul.f32 %v5606_v46, %v6984_v30  ;;  %5617 = vpow2.f32 %v1600_v20  ;;  %v10185_v46 = vld [vmem:[#allocation45_spill] sm:$0xff]  ;;  %v7412_v35 = vrot.slane %v6945_v56, %v6922_v37 }
 0x2e7   :  { %v7358_v9 = vpop.permute.xlu1 %2220  ;;  %10178 = vst [vmem:[#allocation41_spill] sm:$0xff] %v7372_v1  ;;  %v5608_v44 = vpop.eup %5607 }
 0x2e8   :  { %v7360_v51 = vpop.permute.xlu0 %2173  ;;  %v1610_v10 = vmul.f32 1.442695, %v1442_v61  ;;  %v7388_v29 = vmul.f32 %v5608_v44, %v7023_v6  ;;  %v5610_v30 = vpop.eup %5609  ;;  %v1608_v6 = vmul.f32 1.442695, %v1441_v3  ;;  %v1443_v44 = vsub.f32 %v10185_v46, %v7280_v22  ;;  %v10190_v46 = vld [vmem:[#allocation47_spill] sm:$0xff] }
 0x2e9   :  { %2789 = vperm.xlu0 %5542, %v7351_v33   ;;  %2804 = vperm.xlu1 %5541, %v7356_v13   ;;  %v10179_v13 = vld [vmem:[#allocation48_spill] sm:$0xff]  ;;  %v7399_v7 = vmul.f32 %v5610_v30, %v6988_v52  ;;  %v1445_v37 = vsub.f32 %v10190_v46, %v7280_v22 }
 0x2ea   :  { %v1444_v33 = vsub.f32 %v10179_v13, %v7280_v22  ;;  %10180 = vst [vmem:[#allocation48_spill] sm:$0xff] %v7383_v31  ;;  %10182 = vst [vmem:[#allocation43_spill] sm:$0xff] %v7388_v29  ;;  %5619 = vpow2.f32 %v1610_v10  ;;  %v10188_v52 = vld [vmem:[#allocation52_spill] sm:$0xff] }
 0x2eb   :  { %v7374_v14 = vpop.permute.xlu1 %2228  ;;  %5621 = vpow2.f32 %v1604_v38  ;;  %v1448_v38 = vsub.f32 %v10188_v52, %v7280_v22 }
 0x2ec   :  { %v7376_v39 = vpop.permute.xlu0 %2181  ;;  %v1614_v40 = vmul.f32 1.442695, %v1444_v33  ;;  %v5612_v20 = vpop.eup %5611 }
 0x2ed   :  { %2795 = vperm.xlu0 %5542, %v7367_v42   ;;  %2810 = vperm.xlu1 %5541, %v7372_v1   ;;  %v10183_v1 = vld [vmem:[#allocation50_spill] sm:$0xff]  ;;  %v7404_v10 = vmul.f32 %v5612_v20, %v7027_v47  ;;  %v5614_v3 = vpop.eup %5613  ;;  %v1612_v20 = vmul.f32 1.442695, %v1443_v44 }
 0x2ee   :  { %v1446_v42 = vsub.f32 %v10183_v1, %v7280_v22  ;;  %10184 = vst [vmem:[#allocation50_spill] sm:$0xff] %v7399_v7  ;;  %5623 = vpow2.f32 %v1614_v40  ;;  %v7419_v30 = vmul.f32 %v5614_v3, %v6992_v28  ;;  %v10195_v3 = vld [vmem:[#allocation49_spill] sm:$0xff] }
 0x2ef   :  { %v7390_v61 = vpop.permute.xlu1 %2236  ;;  %10186 = vst [vmem:[#allocation45_spill] sm:$0xff] %v7404_v10  ;;  %v5616_v47 = vpop.eup %5615  ;;  %5625 = vpow2.f32 %v1608_v6 }
 0x2f0   :  { %v7392_v13 = vpop.permute.xlu0 %2189  ;;  %10189 = vst [vmem:[#allocation52_spill] sm:$0xff] %v7419_v30  ;;  %v7424_v40 = vmul.f32 %v5616_v47, %v7031_v25  ;;  %v5618_v28 = vpop.eup %5617  ;;  %v1616_v25 = vmul.f32 1.442695, %v1445_v37  ;;  %v1447_v47 = vsub.f32 %v10195_v3, %v7280_v22 }
 0x2f1   :  { %2801 = vperm.xlu0 %5542, %v7383_v31   ;;  %2816 = vperm.xlu1 %5541, %v7388_v29   ;;  %v1618_v29 = vmul.f32 1.442695, %v1446_v42  ;;  %v7435_v44 = vmul.f32 %v5618_v28, %v6996_v0 }
 0x2f2   :  { %10191 = vst [vmem:[#allocation47_spill] sm:$0xff] %v7424_v40 }
 0x2f3   :  { %v7406_v33 = vpop.permute.xlu1 %2244  ;;  %5627 = vpow2.f32 %v1618_v29 }
 0x2f4   :  { %10187 = vst [vmem:[#allocation181_spill] sm:$0xff] %v7406_v33  ;;  %v7408_v1 = vpop.permute.xlu0 %2200  ;;  %v5620_v6 = vpop.eup %5619  ;;  %5629 = vpow2.f32 %v1612_v20  ;;  %v10199_v20 = vld [vmem:[#allocation156_spill] sm:$0xff] }
 0x2f5   :  { %2807 = vperm.xlu0 %5542, %v7399_v7   ;;  %2822 = vperm.xlu1 %5541, %v7404_v10   ;;  %v1622_v7 = vmul.f32 1.442695, %v1448_v38  ;;  %v10193_v10 = vld [vmem:[#allocation54_spill] sm:$0xff]  ;;  %v7440_v29 = vmul.f32 %v5620_v6, %v7035_v26  ;;  %v5622_v0 = vpop.eup %5621  ;;  %v1620_v26 = vmul.f32 1.442695, %v1447_v47  ;;  %v10201_v6 = vld [vmem:[#allocation51_spill] sm:$0xff] }
 0x2f6   :  { %v1450_v31 = vsub.f32 %v10193_v10, %v7412_v35  ;;  %10194 = vst [vmem:[#allocation54_spill] sm:$0xff] %v7435_v44  ;;  %v7451_v28 = vmul.f32 %v5622_v0, %v10199_v20  ;;  %v1449_v3 = vsub.f32 %v10201_v6, %v7280_v22  ;;  %v10206_v47 = vld [vmem:[#allocation157_spill] sm:$0xff]  ;;  %v10209_v6 = vld [vmem:[#allocation168_spill] sm:$0xff] }
 0x2f7   :  { %v7426_v42 = vpop.permute.xlu1 %2252  ;;  %10196 = vst [vmem:[#allocation49_spill] sm:$0xff] %v7440_v29  ;;  %5631 = vpow2.f32 %v1622_v7 }
 0x2f8   :  { %10192 = vst [vmem:[#allocation182_spill] sm:$0xff] %v7426_v42  ;;  %v7428_v52 = vpop.permute.xlu0 %2208  ;;  %v1626_v46 = vmul.f32 1.442695, %v1450_v31  ;;  %v5624_v37 = vpop.eup %5623  ;;  %5633 = vpow2.f32 %v1616_v25  ;;  %v10240_v42 = vld [vmem:[#allocation68_spill] sm:$0xff] }
 0x2f9   :  { %2813 = vperm.xlu0 %5542, %v7419_v30   ;;  %2828 = vperm.xlu1 %5541, %v7424_v40   ;;  %v10198_v40 = vld [vmem:[#allocation56_spill] sm:$0xff]  ;;  %v7456_v7 = vmul.f32 %v5624_v37, %v10202_v45  ;;  %v5626_v0 = vpop.eup %5625  ;;  %v1624_v45 = vmul.f32 1.442695, %v1449_v3  ;;  %v10208_v37 = vld [vmem:[#allocation53_spill] sm:$0xff]  ;;  %v10213_v3 = vld [vmem:[#allocation158_spill] sm:$0xff] }
 0x2fa   :  { %v1452_v30 = vsub.f32 %v10198_v40, %v7412_v35  ;;  %10200 = vst [vmem:[#allocation56_spill] sm:$0xff] %v7451_v28  ;;  %5635 = vpow2.f32 %v1626_v46  ;;  %v7467_v22 = vmul.f32 %v5626_v0, %v10206_v47  ;;  %v1451_v20 = vsub.f32 %v10208_v37, %v7412_v35  ;;  %v10215_v37 = vld [vmem:[#allocation55_spill] sm:$0xff] }
 0x2fb   :  { %v7442_v38 = vpop.permute.xlu1 %2260  ;;  %10203 = vst [vmem:[#allocation156_spill] sm:$0xff] %v7456_v7  ;;  %5637 = vpow2.f32 %v1620_v26 }
 0x2fc   :  { %10197 = vst [vmem:[#allocation183_spill] sm:$0xff] %v7442_v38  ;;  %v7444_v10 = vpop.permute.xlu0 %2216  ;;  %10207 = vst [vmem:[#allocation166_spill] sm:$0xff] %v7467_v22 }
 0x2fd   :  { %2819 = vperm.xlu0 %5542, %v7435_v44   ;;  %2834 = vperm.xlu1 %5541, %v7440_v29   ;;  %v1630_v44 = vmul.f32 1.442695, %v1452_v30  ;;  %v10205_v29 = vld [vmem:[#allocation58_spill] sm:$0xff]  ;;  %v5628_v25 = vpop.eup %5627 }
 0x2fe   :  { %v1454_v60 = vsub.f32 %v10205_v29, %v7412_v35  ;;  %v7472_v46 = vmul.f32 %v5628_v25, %v10209_v6  ;;  %v5630_v0 = vpop.eup %5629  ;;  %v1628_v25 = vmul.f32 1.442695, %v1451_v20  ;;  %v10219_v20 = vld [vmem:[#allocation159_spill] sm:$0xff] }
 0x2ff   :  { %v7458_v31 = vpop.permute.xlu1 %2271  ;;  %5639 = vpow2.f32 %v1630_v44  ;;  %v7483_v47 = vmul.f32 %v5630_v0, %v10213_v3  ;;  %v1453_v44 = vsub.f32 %v10215_v37, %v7412_v35  ;;  %v10222_v37 = vld [vmem:[#allocation57_spill] sm:$0xff] }
 0x300   :  { %10204 = vst [vmem:[#allocation51_spill] sm:$0xff] %v7458_v31  ;;  %v7460_v40 = vpop.permute.xlu0 %2224  ;;  %10210 = vst [vmem:[#allocation58_spill] sm:$0xff] %v7472_v46  ;;  %v1634_v29 = vmul.f32 1.442695, %v1454_v60  ;;  %5641 = vpow2.f32 %v1624_v45  ;;  %v10216_v60 = vld [vmem:[#allocation170_spill] sm:$0xff] }
 0x301   :  { %2825 = vperm.xlu0 %5542, %v7451_v28   ;;  %2840 = vperm.xlu1 %5541, %v7456_v7   ;;  %v10211_v28 = vld [vmem:[#allocation60_spill] sm:$0xff]  ;;  %v5632_v26 = vpop.eup %5631  ;;  %10214 = vst [vmem:[#allocation53_spill] sm:$0xff] %v7483_v47 }
 0x302   :  { %v1456_v12 = vsub.f32 %v10211_v28, %v7412_v35  ;;  %v7488_v6 = vmul.f32 %v5632_v26, %v10216_v60  ;;  %5643 = vpow2.f32 %v1634_v29  ;;  %v1632_v26 = vmul.f32 1.442695, %v1453_v44  ;;  %v10226_v44 = vld [vmem:[#allocation160_spill] sm:$0xff] }
 0x303   :  { %v7478_v7 = vpop.permute.xlu1 %2279  ;;  %5645 = vpow2.f32 %v1628_v25  ;;  %v1455_v29 = vsub.f32 %v10222_v37, %v7412_v35 }
 0x304   :  { %v7474_v30 = vpop.permute.xlu0 %2232  ;;  %10212 = vst [vmem:[#allocation157_spill] sm:$0xff] %v7478_v7  ;;  %10217 = vst [vmem:[#allocation168_spill] sm:$0xff] %v7488_v6  ;;  %v1638_v18 = vmul.f32 1.442695, %v1456_v12  ;;  %v10223_v12 = vld [vmem:[#allocation172_spill] sm:$0xff] }
 0x305   :  { %2831 = vperm.xlu0 %5542, %v7467_v22   ;;  %2846 = vperm.xlu1 %5541, %v7472_v46   ;;  %v10218_v22 = vld [vmem:[#allocation62_spill] sm:$0xff]  ;;  %v5634_v46 = vpop.eup %5633  ;;  %v1636_v37 = vmul.f32 1.442695, %v1455_v29  ;;  %v10233_v29 = vld [vmem:[#allocation161_spill] sm:$0xff] }
 0x306   :  { %v1458_v7 = vsub.f32 %v10218_v22, %v7412_v35  ;;  %v5636_v45 = vpop.eup %5635  ;;  %v7497_v0 = vmul.f32 %v5634_v46, %v10219_v20  ;;  %5647 = vpow2.f32 %v1638_v18 }
 0x307   :  { %v7499_v3 = vpop.permute.xlu1 %2287  ;;  %v7504_v60 = vmul.f32 %v5636_v45, %v10223_v12  ;;  %v5638_v46 = vpop.eup %5637  ;;  %5649 = vpow2.f32 %v1632_v26  ;;  %v10228_v45 = vld [vmem:[#allocation59_spill] sm:$0xff] }
 0x308   :  { %v7490_v28 = vpop.permute.xlu0 %2240  ;;  %10220 = vst [vmem:[#allocation60_spill] sm:$0xff] %v7497_v0  ;;  %10221 = vst [vmem:[#allocation158_spill] sm:$0xff] %v7499_v3  ;;  %v7513_v20 = vmul.f32 %v5638_v46, %v10226_v44  ;;  %v1457_v12 = vsub.f32 %v10228_v45, %v7412_v35  ;;  %v10229_v3 = vld [vmem:[#allocation173_spill] sm:$0xff] }
 0x309   :  { %2837 = vperm.xlu0 %5542, %v7483_v47   ;;  %2852 = vperm.xlu1 %5541, %v7488_v6   ;;  %10224 = vst [vmem:[#allocation55_spill] sm:$0xff] %v7504_v60  ;;  %v1642_v47 = vmul.f32 1.442695, %v1458_v7  ;;  %v10225_v6 = vld [vmem:[#allocation64_spill] sm:$0xff]  ;;  %v5640_v25 = vpop.eup %5639 }
 0x30a   :  { %v1460_v31 = vsub.f32 %v10225_v6, %v7412_v35  ;;  %10227 = vst [vmem:[#allocation170_spill] sm:$0xff] %v7513_v20  ;;  %v7518_v18 = vmul.f32 %v5640_v25, %v10229_v3  ;;  %v5642_v46 = vpop.eup %5641  ;;  %v1640_v3 = vmul.f32 1.442695, %v1457_v12  ;;  %v10235_v25 = vld [vmem:[#allocation61_spill] sm:$0xff] }
 0x30b   :  { %5651 = vpow2.f32 %v1642_v47  ;;  %v7529_v44 = vmul.f32 %v5642_v46, %v10233_v29  ;;  %v1459_v47 = vsub.f32 %v10235_v25, %v7412_v35  ;;  %v1464_v46 = vsub.f32 %v10240_v42, %v7412_v35  ;;  %v10241_v29 = vld [vmem:[#allocation162_spill] sm:$0xff] }
 0x30c   :  { %v7506_v22 = vpop.permute.xlu0 %2248  ;;  %10230 = vst [vmem:[#allocation62_spill] sm:$0xff] %v7518_v18  ;;  %v1646_v6 = vmul.f32 1.442695, %v1460_v31  ;;  %v5644_v26 = vpop.eup %5643  ;;  %5653 = vpow2.f32 %v1636_v37  ;;  %v10236_v31 = vld [vmem:[#allocation174_spill] sm:$0xff] }
 0x30d   :  { %2843 = vperm.xlu0 %5542, %v7497_v0   ;;  %2858 = vperm.xlu1 %5541, %v7504_v60   ;;  %v10231_v0 = vld [vmem:[#allocation66_spill] sm:$0xff]  ;;  %v7524_v60 = vpop.permute.xlu1 %2295  ;;  %10234 = vst [vmem:[#allocation57_spill] sm:$0xff] %v7529_v44  ;;  %v7534_v45 = vmul.f32 %v5644_v26, %v10236_v31  ;;  %v5646_v37 = vpop.eup %5645  ;;  %v1644_v31 = vmul.f32 1.442695, %v1459_v47  ;;  %v10249_v47 = vld [vmem:[#allocation163_spill] sm:$0xff] }
 0x30e   :  { %v1462_v38 = vsub.f32 %v10231_v0, %v7412_v35  ;;  %10232 = vst [vmem:[#allocation159_spill] sm:$0xff] %v7524_v60  ;;  %v10239_v60 = vld [vmem:[#allocation153_spill] sm:$0xff]  ;;  %5655 = vpow2.f32 %v1646_v6  ;;  %v7547_v26 = vmul.f32 %v5646_v37, %v10241_v29 }
 0x30f   :  { %10237 = vst [vmem:[#allocation172_spill] sm:$0xff] %v7534_v45  ;;  %5657 = vpow2.f32 %v1640_v3 }
 0x310   :  { %v7520_v7 = vpop.permute.xlu0 %2256  ;;  %v5648_v12 = vpop.eup %5647  ;;  %10242 = vst [vmem:[#allocation160_spill] sm:$0xff] %v7547_v26 }
 0x311   :  { %2849 = vperm.xlu0 %5542, %v7513_v20   ;;  %2864 = vperm.xlu1 %5541, %v7518_v18   ;;  %v7540_v20 = vrot.slane %v6945_v56, %v10239_v60  ;;  %v1650_v18 = vmul.f32 1.442695, %v1462_v38  ;;  %v7549_v25 = vpop.permute.xlu1 %2303  ;;  %v10244_v60 = vld [vmem:[#allocation63_spill] sm:$0xff]  ;;  %v5650_v37 = vpop.eup %5649 }
 0x312   :  { %10243 = vst [vmem:[#allocation59_spill] sm:$0xff] %v7549_v25  ;;  %v1461_v6 = vsub.f32 %v10244_v60, %v7412_v35  ;;  %v10245_v38 = vld [vmem:[#allocation175_spill] sm:$0xff]  ;;  %v7563_v29 = vmul.f32 %v5650_v37, %v10249_v47  ;;  %v10252_v25 = vld [vmem:[#allocation18_spill] sm:$0xff] }
 0x313   :  { %5659 = vpow2.f32 %v1650_v18 }
 0x314   :  { %v7536_v0 = vpop.permute.xlu0 %2267  ;;  %10250 = vst [vmem:[#allocation161_spill] sm:$0xff] %v7563_v29  ;;  %5661 = vpow2.f32 %v1644_v31  ;;  %v1648_v60 = vmul.f32 1.442695, %v1461_v6  ;;  %v10257_v6 = vld [vmem:[#allocation165_spill] sm:$0xff] }
 0x315   :  { %10238 = vst [vmem:[#allocation64_spill] sm:$0xff] %v7536_v0  ;;  %2855 = vperm.xlu0 %5542, %v7529_v44   ;;  %2870 = vperm.xlu1 %5541, %v7534_v45   ;;  %v7554_v0 = vmul.f32 %v5648_v12, %v10245_v38  ;;  %v1654_v44 = vmul.f32 1.442695, %v1464_v46  ;;  %v10248_v45 = vld [vmem:[#allocation70_spill] sm:$0xff]  ;;  %v5652_v3 = vpop.eup %5651  ;;  %v10251_v12 = vld [vmem:[#allocation65_spill] sm:$0xff] }
 0x316   :  { %v1466_v33 = vsub.f32 %v10248_v45, %v7540_v20  ;;  %v1463_v38 = vsub.f32 %v10251_v12, %v7412_v35  ;;  %v7568_v18 = vmul.f32 %v5652_v3, %v10252_v25  ;;  %v5654_v37 = vpop.eup %5653  ;;  %v10259_v3 = vld [vmem:[#allocation67_spill] sm:$0xff] }
 0x317   :  { %10246 = vst [vmem:[#allocation173_spill] sm:$0xff] %v7554_v0  ;;  %5663 = vpow2.f32 %v1654_v44  ;;  %v7579_v47 = vmul.f32 %v5654_v37, %v10257_v6  ;;  %v1465_v44 = vsub.f32 %v10259_v3, %v7412_v35  ;;  %v10265_v6 = vld [vmem:[#allocation69_spill] sm:$0xff] }
 0x318   :  { %v7556_v42 = vpop.permute.xlu0 %2275  ;;  %10253 = vst [vmem:[#allocation61_spill] sm:$0xff] %v7568_v18  ;;  %v1658_v45 = vmul.f32 1.442695, %v1466_v33  ;;  %v5656_v31 = vpop.eup %5655  ;;  %5665 = vpow2.f32 %v1648_v60  ;;  %v1652_v25 = vmul.f32 1.442695, %v1463_v38  ;;  %v10260_v33 = vld [vmem:[#allocation176_spill] sm:$0xff] }
 0x319   :  { %10247 = vst [vmem:[#allocation66_spill] sm:$0xff] %v7556_v42  ;;  %2861 = vperm.xlu0 %5542, %v7547_v26   ;;  %2876 = vperm.xlu1 %5541, %v7554_v0   ;;  %v10255_v26 = vld [vmem:[#allocation72_spill] sm:$0xff]  ;;  %v7574_v0 = vpop.permute.xlu1 %2311  ;;  %10258 = vst [vmem:[#allocation162_spill] sm:$0xff] %v7579_v47  ;;  %v7584_v12 = vmul.f32 %v5656_v31, %v10260_v33  ;;  %v10263_v38 = vld [vmem:[#allocation167_spill] sm:$0xff]  ;;  %v1656_v31 = vmul.f32 1.442695, %v1465_v44 }
 0x31a   :  { %v1468_v42 = vsub.f32 %v10255_v26, %v7540_v20  ;;  %10256 = vst [vmem:[#allocation68_spill] sm:$0xff] %v7574_v0  ;;  %5667 = vpow2.f32 %v1658_v45  ;;  %v1467_v45 = vsub.f32 %v10265_v6, %v7540_v20  ;;  %v10267_v33 = vld [vmem:[#allocation76_spill] sm:$0xff]  ;;  %v10268_v44 = vld [vmem:[#allocation169_spill] sm:$0xff] }
 0x31b   :  { %10261 = vst [vmem:[#allocation63_spill] sm:$0xff] %v7584_v12  ;;  %5669 = vpow2.f32 %v1652_v25 }
 0x31c   :  { %v7570_v46 = vpop.permute.xlu0 %2283  ;;  %v1662_v0 = vmul.f32 1.442695, %v1468_v42  ;;  %v1660_v6 = vmul.f32 1.442695, %v1467_v45  ;;  %v10274_v45 = vld [vmem:[#allocation171_spill] sm:$0xff] }
 0x31d   :  { %10254 = vst [vmem:[#allocation174_spill] sm:$0xff] %v7570_v46  ;;  %2867 = vperm.xlu0 %5542, %v7563_v29   ;;  %2882 = vperm.xlu1 %5541, %v7568_v18   ;;  %v10262_v29 = vld [vmem:[#allocation74_spill] sm:$0xff]  ;;  %v5658_v18 = vpop.eup %5657  ;;  %v7595_v35 = vpop.permute.xlu1 %2319 }
 0x31e   :  { %v1470_v46 = vsub.f32 %v10262_v29, %v7540_v20  ;;  %v5660_v60 = vpop.eup %5659  ;;  %v7593_v37 = vmul.f32 %v5658_v18, %v10263_v38  ;;  %5671 = vpow2.f32 %v1662_v0 }
 0x31f   :  { %v7600_v42 = vmul.f32 %v5660_v60, %v7115_v16  ;;  %v5662_v18 = vpop.eup %5661  ;;  %5673 = vpow2.f32 %v1656_v31  ;;  %v10270_v16 = vld [vmem:[#allocation71_spill] sm:$0xff] }
 0x320   :  { %v7586_v26 = vpop.permute.xlu0 %2291  ;;  %10264 = vst [vmem:[#allocation175_spill] sm:$0xff] %v7593_v37  ;;  %v1666_v3 = vmul.f32 1.442695, %v1470_v46  ;;  %v7609_v38 = vmul.f32 %v5662_v18, %v10268_v44  ;;  %v1469_v60 = vsub.f32 %v10270_v16, %v7540_v20  ;;  %v10278_v16 = vld [vmem:[#allocation80_spill] sm:$0xff] }
 0x321   :  { %2873 = vperm.xlu0 %5542, %v7579_v47   ;;  %2888 = vperm.xlu1 %5541, %v7584_v12   ;;  %10266 = vst [vmem:[#allocation70_spill] sm:$0xff] %v7600_v42  ;;  %v1472_v12 = vsub.f32 %v10267_v33, %v7540_v20  ;;  %v5664_v25 = vpop.eup %5663 }
 0x322   :  { %10269 = vst [vmem:[#allocation163_spill] sm:$0xff] %v7609_v38  ;;  %v7614_v0 = vmul.f32 %v5664_v25, %v7128_v41  ;;  %5675 = vpow2.f32 %v1666_v3  ;;  %v5666_v18 = vpop.eup %5665  ;;  %v1664_v41 = vmul.f32 1.442695, %v1469_v60  ;;  %v10276_v25 = vld [vmem:[#allocation73_spill] sm:$0xff]  ;;  %v10280_v60 = vld [vmem:[#allocation14_spill] sm:$0xff] }
 0x323   :  { %v1670_v33 = vmul.f32 1.442695, %v1472_v12  ;;  %v7625_v44 = vmul.f32 %v5666_v18, %v10274_v45  ;;  %5677 = vpow2.f32 %v1660_v6  ;;  %v1471_v3 = vsub.f32 %v10276_v25, %v7540_v20 }
 0x324   :  { %v7602_v29 = vpop.permute.xlu0 %2299  ;;  %10271 = vst [vmem:[#allocation65_spill] sm:$0xff] %v7614_v0  ;;  %v5668_v31 = vpop.eup %5667 }
 0x325   :  { %2879 = vperm.xlu0 %5542, %v7593_v37   ;;  %2894 = vperm.xlu1 %5541, %v7600_v42   ;;  %v10272_v37 = vld [vmem:[#allocation78_spill] sm:$0xff]  ;;  %v7620_v42 = vpop.permute.xlu1 %2327  ;;  %10275 = vst [vmem:[#allocation72_spill] sm:$0xff] %v7625_v44  ;;  %v7630_v12 = vmul.f32 %v5668_v31, %v7144_v24  ;;  %5679 = vpow2.f32 %v1670_v33  ;;  %v1668_v24 = vmul.f32 1.442695, %v1471_v3 }
 0x326   :  { %v1474_v47 = vsub.f32 %v10272_v37, %v7540_v20  ;;  %10273 = vst [vmem:[#allocation18_spill] sm:$0xff] %v7620_v42  ;;  %5681 = vpow2.f32 %v1664_v41  ;;  %v10286_v41 = vld [vmem:[#allocation11_spill] sm:$0xff] }
 0x327   :  { %10277 = vst [vmem:[#allocation165_spill] sm:$0xff] %v7630_v12 }
 0x328   :  { %v7616_v46 = vpop.permute.xlu0 %2307  ;;  %v1674_v37 = vmul.f32 1.442695, %v1474_v47  ;;  %v10282_v47 = vld [vmem:[#allocation75_spill] sm:$0xff] }
 0x329   :  { %2885 = vperm.xlu0 %5542, %v7609_v38   ;;  %2900 = vperm.xlu1 %5541, %v7614_v0   ;;  %v1476_v38 = vsub.f32 %v10278_v16, %v7540_v20  ;;  %v5670_v0 = vpop.eup %5669  ;;  %v1473_v33 = vsub.f32 %v10282_v47, %v7540_v20  ;;  %v10284_v16 = vld [vmem:[#allocation82_spill] sm:$0xff] }
 0x32a   :  { %v5672_v6 = vpop.eup %5671  ;;  %v7641_v45 = vmul.f32 %v5670_v0, %v10280_v60  ;;  %5683 = vpow2.f32 %v1674_v37  ;;  %v10290_v47 = vld [vmem:[#allocation154_spill] sm:$0xff] }
 0x32b   :  { %v7646_v31 = vmul.f32 %v5672_v6, %v7164_v55  ;;  %v1678_v25 = vmul.f32 1.442695, %v1476_v38  ;;  %5685 = vpow2.f32 %v1668_v24  ;;  %v1672_v60 = vmul.f32 1.442695, %v1473_v33  ;;  %v10288_v55 = vld [vmem:[#allocation77_spill] sm:$0xff]  ;;  %v10293_v33 = vld [vmem:[#allocation16_spill] sm:$0xff] }
 0x32c   :  { %v7634_v42 = vpop.permute.xlu1 %2717  ;;  %v7637_v18 = vpop.permute.xlu0 %2315  ;;  %10281 = vst [vmem:[#allocation176_spill] sm:$0xff] %v7641_v45  ;;  %v1475_v37 = vsub.f32 %v10288_v55, %v7540_v20 }
 0x32d   :  { %10279 = vst [vmem:[#allocation67_spill] sm:$0xff] %v7634_v42  ;;  %2891 = vperm.xlu0 %5542, %v7625_v44   ;;  %2906 = vperm.xlu1 %5541, %v7630_v12   ;;  %10283 = vst [vmem:[#allocation74_spill] sm:$0xff] %v7646_v31  ;;  %v1478_v44 = vsub.f32 %v10284_v16, %v7540_v20  ;;  %v5674_v12 = vpop.eup %5673  ;;  %v7666_v16 = vrot.slane %v6945_v56, %v10290_v47  ;;  %5687 = vpow2.f32 %v1678_v25  ;;  %v10295_v47 = vld [vmem:[#allocation79_spill] sm:$0xff] }
 0x32e   :  { %v5676_v0 = vpop.eup %5675  ;;  %v7655_v3 = vmul.f32 %v5674_v12, %v10286_v41  ;;  %5689 = vpow2.f32 %v1672_v60  ;;  %v1676_v55 = vmul.f32 1.442695, %v1475_v37  ;;  %v1477_v25 = vsub.f32 %v10295_v47, %v7540_v20  ;;  %v10299_v37 = vld [vmem:[#allocation12_spill] sm:$0xff] }
 0x32f   :  { %v7660_v38 = vmul.f32 %v5676_v0, %v7180_v43  ;;  %v5678_v24 = vpop.eup %5677 }
 0x330   :  { %v7650_v42 = vpop.permute.xlu1 %2720  ;;  %10287 = vst [vmem:[#allocation69_spill] sm:$0xff] %v7655_v3  ;;  %v7662_v6 = vpop.permute.xlu0 %2323  ;;  %v7675_v0 = vmul.f32 %v5678_v24, %v10293_v33 }
 0x331   :  { %10285 = vst [vmem:[#allocation167_spill] sm:$0xff] %v7650_v42  ;;  %2897 = vperm.xlu0 %5542, %v7641_v45   ;;  %2912 = vperm.xlu1 %5541, %v7646_v31   ;;  %10289 = vst [vmem:[#allocation76_spill] sm:$0xff] %v7660_v38  ;;  %v1682_v31 = vmul.f32 1.442695, %v1478_v44  ;;  %v10291_v45 = vld [vmem:[#allocation84_spill] sm:$0xff]  ;;  %v5680_v43 = vpop.eup %5679 }
 0x332   :  { %v1480_v12 = vsub.f32 %v10291_v45, %v7540_v20  ;;  %10294 = vst [vmem:[#allocation71_spill] sm:$0xff] %v7675_v0  ;;  %v7680_v44 = vmul.f32 %v5680_v43, %v7196_v49  ;;  %v5682_v24 = vpop.eup %5681  ;;  %v1680_v49 = vmul.f32 1.442695, %v1477_v25  ;;  %v10301_v43 = vld [vmem:[#allocation81_spill] sm:$0xff] }
 0x333   :  { %5691 = vpow2.f32 %v1682_v31  ;;  %v7691_v47 = vmul.f32 %v5682_v24, %v10299_v37  ;;  %v1479_v31 = vsub.f32 %v10301_v43, %v7540_v20  ;;  %v10305_v25 = vld [vmem:[#allocation13_spill] sm:$0xff] }
 0x334   :  { %v7670_v41 = vpop.permute.xlu1 %2726  ;;  %10296 = vst [vmem:[#allocation78_spill] sm:$0xff] %v7680_v44  ;;  %v5684_v60 = vpop.eup %5683  ;;  %5693 = vpow2.f32 %v1676_v55 }
 0x335   :  { %10292 = vst [vmem:[#allocation169_spill] sm:$0xff] %v7670_v41  ;;  %2903 = vperm.xlu0 %5542, %v7655_v3   ;;  %2918 = vperm.xlu1 %5541, %v7660_v38   ;;  %v1686_v41 = vmul.f32 1.442695, %v1480_v12  ;;  %v10297_v3 = vld [vmem:[#allocation86_spill] sm:$0xff]  ;;  %10300 = vst [vmem:[#allocation73_spill] sm:$0xff] %v7691_v47  ;;  %v7696_v12 = vmul.f32 %v5684_v60, %v7212_v8  ;;  %v5686_v24 = vpop.eup %5685  ;;  %v10307_v60 = vld [vmem:[#allocation83_spill] sm:$0xff] }
 0x336   :  { %v1482_v42 = vsub.f32 %v10297_v3, %v7666_v16  ;;  %v7707_v37 = vmul.f32 %v5686_v24, %v10305_v25  ;;  %v1684_v8 = vmul.f32 1.442695, %v1479_v31  ;;  %v10310_v31 = vld [vmem:[#allocation15_spill] sm:$0xff] }
 0x337   :  { %10302 = vst [vmem:[#allocation80_spill] sm:$0xff] %v7696_v12  ;;  %5695 = vpow2.f32 %v1686_v41  ;;  %v5688_v55 = vpop.eup %5687  ;;  %v1481_v41 = vsub.f32 %v10307_v60, %v7540_v20  ;;  %v10314_v60 = vld [vmem:[#allocation93_spill] sm:$0xff] }
 0x338   :  { %v7682_v45 = vpop.permute.xlu0 %2714  ;;  %v7686_v38 = vpop.permute.xlu1 %2732  ;;  %v1690_v33 = vmul.f32 1.442695, %v1482_v42  ;;  %10306 = vst [vmem:[#allocation75_spill] sm:$0xff] %v7707_v37  ;;  %5697 = vpow2.f32 %v1680_v49  ;;  %v7712_v42 = vmul.f32 %v5688_v55, %v7228_v63  ;;  %v10312_v55 = vld [vmem:[#allocation85_spill] sm:$0xff] }
 0x339   :  { %10298 = vst [vmem:[#allocation171_spill] sm:$0xff] %v7686_v38  ;;  %2909 = vperm.xlu0 %5542, %v7675_v0   ;;  %2924 = vperm.xlu1 %5541, %v7680_v44   ;;  %v10303_v0 = vld [vmem:[#allocation88_spill] sm:$0xff]  ;;  %v5690_v24 = vpop.eup %5689  ;;  %v1688_v63 = vmul.f32 1.442695, %v1481_v41 }
 0x33a   :  { %v1484_v38 = vsub.f32 %v10303_v0, %v7666_v16  ;;  %10308 = vst [vmem:[#allocation82_spill] sm:$0xff] %v7712_v42  ;;  %5699 = vpow2.f32 %v1690_v33  ;;  %v7723_v20 = vmul.f32 %v5690_v24, %v10310_v31  ;;  %v1483_v33 = vsub.f32 %v10312_v55, %v7666_v16 }
 0x33b   :  { %5701 = vpow2.f32 %v1684_v8 }
 0x33c   :  { %v7698_v3 = vpop.permute.xlu0 %2723  ;;  %v7702_v44 = vpop.permute.xlu1 %2738  ;;  %v1694_v43 = vmul.f32 1.442695, %v1484_v38  ;;  %10311 = vst [vmem:[#allocation11_spill] sm:$0xff] %v7723_v20 }
 0x33d   :  { %10304 = vst [vmem:[#allocation14_spill] sm:$0xff] %v7702_v44  ;;  %2915 = vperm.xlu0 %5542, %v7691_v47   ;;  %2930 = vperm.xlu1 %5541, %v7696_v12   ;;  %v10309_v47 = vld [vmem:[#allocation90_spill] sm:$0xff]  ;;  %v5692_v49 = vpop.eup %5691 }
 0x33e   :  { %v1486_v44 = vsub.f32 %v10309_v47, %v7666_v16  ;;  %v7728_v38 = vmul.f32 %v5692_v49, %v7244_v53  ;;  %5703 = vpow2.f32 %v1694_v43  ;;  %v5694_v24 = vpop.eup %5693  ;;  %v1692_v53 = vmul.f32 1.442695, %v1483_v33  ;;  %v10316_v49 = vld [vmem:[#allocation87_spill] sm:$0xff] }
 0x33f   :  { %v7739_v41 = vmul.f32 %v5694_v24, %v7126_v15  ;;  %5705 = vpow2.f32 %v1688_v63  ;;  %v1485_v43 = vsub.f32 %v10316_v49, %v7666_v16  ;;  %v10320_v24 = vld [vmem:[#allocation89_spill] sm:$0xff] }
 0x340   :  { %v7714_v0 = vpop.permute.xlu0 %2729  ;;  %v7718_v12 = vpop.permute.xlu1 %2744  ;;  %10313 = vst [vmem:[#allocation77_spill] sm:$0xff] %v7728_v38  ;;  %v1698_v25 = vmul.f32 1.442695, %v1486_v44 }
 0x341   :  { %2921 = vperm.xlu0 %5542, %v7707_v37   ;;  %2936 = vperm.xlu1 %5541, %v7712_v42   ;;  %v1488_v37 = vsub.f32 %v10314_v60, %v7666_v16  ;;  %v5696_v8 = vpop.eup %5695  ;;  %10315 = vst [vmem:[#allocation84_spill] sm:$0xff] %v7739_v41  ;;  %v10318_v60 = vld [vmem:[#allocation96_spill] sm:$0xff] }
 0x342   :  { %v7744_v44 = vmul.f32 %v5696_v8, %v7260_v4  ;;  %5707 = vpow2.f32 %v1698_v25  ;;  %v5698_v15 = vpop.eup %5697  ;;  %v1696_v4 = vmul.f32 1.442695, %v1485_v43  ;;  %v1487_v25 = vsub.f32 %v10320_v24, %v7666_v16 }
 0x343   :  { %v1702_v55 = vmul.f32 1.442695, %v1488_v37  ;;  %v7755_v33 = vmul.f32 %v5698_v15, %v7142_v50  ;;  %5709 = vpow2.f32 %v1692_v53  ;;  %v10324_v15 = vld [vmem:[#allocation92_spill] sm:$0xff] }
 0x344   :  { %v7730_v47 = vpop.permute.xlu0 %2735  ;;  %v7734_v42 = vpop.permute.xlu1 %2750  ;;  %10317 = vst [vmem:[#allocation16_spill] sm:$0xff] %v7744_v44 }
 0x345   :  { %2927 = vperm.xlu0 %5542, %v7723_v20   ;;  %2942 = vperm.xlu1 %5541, %v7728_v38   ;;  %v1490_v20 = vsub.f32 %v10318_v60, %v7666_v16  ;;  %v5700_v63 = vpop.eup %5699  ;;  %10319 = vst [vmem:[#allocation79_spill] sm:$0xff] %v7755_v33  ;;  %5711 = vpow2.f32 %v1702_v55  ;;  %v10322_v60 = vld [vmem:[#allocation100_spill] sm:$0xff]  ;;  %v1489_v55 = vsub.f32 %v10324_v15, %v7666_v16  ;;  %v10331_v15 = vld [vmem:[#allocation155_spill] sm:$0xff] }
 0x346   :  { %v7760_v37 = vmul.f32 %v5700_v63, %v7276_v48  ;;  %v5702_v50 = vpop.eup %5701  ;;  %5713 = vpow2.f32 %v1696_v4  ;;  %v1700_v48 = vmul.f32 1.442695, %v1487_v25 }
 0x347   :  { %v1706_v49 = vmul.f32 1.442695, %v1490_v20  ;;  %v7771_v43 = vmul.f32 %v5702_v50, %v7162_v21  ;;  %v10328_v50 = vld [vmem:[#allocation95_spill] sm:$0xff] }
 0x348   :  { %v7746_v31 = vpop.permute.xlu0 %2741  ;;  %v7750_v38 = vpop.permute.xlu1 %2756  ;;  %10321 = vst [vmem:[#allocation86_spill] sm:$0xff] %v7760_v37 }
 0x349   :  { %2933 = vperm.xlu0 %5542, %v7739_v41   ;;  %2948 = vperm.xlu1 %5541, %v7744_v44   ;;  %v1492_v41 = vsub.f32 %v10322_v60, %v7666_v16  ;;  %v5704_v53 = vpop.eup %5703  ;;  %10323 = vst [vmem:[#allocation12_spill] sm:$0xff] %v7771_v43  ;;  %5715 = vpow2.f32 %v1706_v49  ;;  %v10326_v60 = vld [vmem:[#allocation105_spill] sm:$0xff]  ;;  %v1491_v49 = vsub.f32 %v10328_v50, %v7666_v16  ;;  %v10334_v50 = vld [vmem:[#allocation99_spill] sm:$0xff] }
 0x34a   :  { %v7776_v20 = vmul.f32 %v5704_v53, %v7296_v62  ;;  %v5706_v21 = vpop.eup %5705  ;;  %5717 = vpow2.f32 %v1700_v48  ;;  %v1704_v62 = vmul.f32 1.442695, %v1489_v55 }
 0x34b   :  { %v1710_v24 = vmul.f32 1.442695, %v1492_v41  ;;  %v7787_v25 = vmul.f32 %v5706_v21, %v7178_v34 }
 0x34c   :  { %v7762_v8 = vpop.permute.xlu0 %2747  ;;  %v7766_v44 = vpop.permute.xlu1 %2762  ;;  %10325 = vst [vmem:[#allocation81_spill] sm:$0xff] %v7776_v20 }
 0x34d   :  { %2939 = vperm.xlu0 %5542, %v7755_v33   ;;  %2954 = vperm.xlu1 %5541, %v7760_v37   ;;  %v1494_v33 = vsub.f32 %v10326_v60, %v7666_v16  ;;  %v5708_v4 = vpop.eup %5707  ;;  %10327 = vst [vmem:[#allocation88_spill] sm:$0xff] %v7787_v25  ;;  %v7798_v60 = vrot.slane %v6945_v56, %v10331_v15  ;;  %5719 = vpow2.f32 %v1710_v24 }
 0x34e   :  { %v7792_v41 = vmul.f32 %v5708_v4, %v7312_v11  ;;  %v5710_v48 = vpop.eup %5709  ;;  %5721 = vpow2.f32 %v1704_v62  ;;  %v1708_v4 = vmul.f32 1.442695, %v1491_v49  ;;  %v1493_v24 = vsub.f32 %v10334_v50, %v7666_v16  ;;  %v10340_v50 = vld [vmem:[#allocation118_spill] sm:$0xff] }
 0x34f   :  { %v5712_v11 = vpop.eup %5711  ;;  %v7807_v55 = vmul.f32 %v5710_v48, %v7194_v58  ;;  %v10338_v48 = vld [vmem:[#allocation104_spill] sm:$0xff] }
 0x350   :  { %v7778_v63 = vpop.permute.xlu0 %2753  ;;  %v7782_v37 = vpop.permute.xlu1 %2768  ;;  %10329 = vst [vmem:[#allocation13_spill] sm:$0xff] %v7792_v41 }
 0x351   :  { %2945 = vperm.xlu0 %5542, %v7771_v43   ;;  %2960 = vperm.xlu1 %5541, %v7776_v20   ;;  %v1714_v20 = vmul.f32 1.442695, %v1494_v33  ;;  %v10332_v43 = vld [vmem:[#allocation109_spill] sm:$0xff]  ;;  %10333 = vst [vmem:[#allocation90_spill] sm:$0xff] %v7807_v55  ;;  %v7812_v33 = vmul.f32 %v5712_v11, %v7328_v19  ;;  %v5714_v58 = vpop.eup %5713  ;;  %v1712_v19 = vmul.f32 1.442695, %v1493_v24 }
 0x352   :  { %v1496_v34 = vsub.f32 %v10332_v43, %v7666_v16  ;;  %v7823_v49 = vmul.f32 %v5714_v58, %v7210_v54  ;;  %v10342_v58 = vld [vmem:[#allocation108_spill] sm:$0xff] }
 0x353   :  { %10335 = vst [vmem:[#allocation15_spill] sm:$0xff] %v7812_v33  ;;  %5723 = vpow2.f32 %v1714_v20  ;;  %v5716_v62 = vpop.eup %5715  ;;  %v1495_v20 = vsub.f32 %v10338_v48, %v7666_v16 }
 0x354   :  { %v7794_v53 = vpop.permute.xlu0 %2759  ;;  %v7802_v21 = vpop.permute.xlu1 %2774  ;;  %v1718_v15 = vmul.f32 1.442695, %v1496_v34  ;;  %10337 = vst [vmem:[#allocation85_spill] sm:$0xff] %v7823_v49  ;;  %5725 = vpow2.f32 %v1708_v4  ;;  %v7828_v34 = vmul.f32 %v5716_v62, %v7344_v23 }
 0x355   :  { %10330 = vst [vmem:[#allocation83_spill] sm:$0xff] %v7794_v53  ;;  %2951 = vperm.xlu0 %5542, %v7787_v25   ;;  %2966 = vperm.xlu1 %5541, %v7792_v41   ;;  %v10336_v25 = vld [vmem:[#allocation115_spill] sm:$0xff]  ;;  %v5718_v54 = vpop.eup %5717  ;;  %v1716_v23 = vmul.f32 1.442695, %v1495_v20  ;;  %v10346_v20 = vld [vmem:[#allocation114_spill] sm:$0xff] }
 0x356   :  { %v1498_v53 = vsub.f32 %v10336_v25, %v7798_v60  ;;  %10339 = vst [vmem:[#allocation93_spill] sm:$0xff] %v7828_v34  ;;  %5727 = vpow2.f32 %v1718_v15  ;;  %v7839_v24 = vmul.f32 %v5718_v54, %v7226_v5  ;;  %v1497_v15 = vsub.f32 %v10342_v58, %v7666_v16  ;;  %v10348_v58 = vld [vmem:[#allocation125_spill] sm:$0xff] }
 0x357   :  { %v5720_v4 = vpop.eup %5719  ;;  %5729 = vpow2.f32 %v1712_v19 }
 0x358   :  { %v7814_v43 = vpop.permute.xlu0 %2765  ;;  %v7818_v41 = vpop.permute.xlu1 %2780  ;;  %v1722_v11 = vmul.f32 1.442695, %v1498_v53  ;;  %10341 = vst [vmem:[#allocation87_spill] sm:$0xff] %v7839_v24  ;;  %v7844_v53 = vmul.f32 %v5720_v4, %v7360_v51  ;;  %v1720_v51 = vmul.f32 1.442695, %v1497_v15 }
 0x359   :  { %2957 = vperm.xlu0 %5542, %v7807_v55   ;;  %2972 = vperm.xlu1 %5541, %v7812_v33   ;;  %v1500_v55 = vsub.f32 %v10340_v50, %v7798_v60  ;;  %v10344_v50 = vld [vmem:[#allocation123_spill] sm:$0xff]  ;;  %v5722_v5 = vpop.eup %5721 }
 0x35a   :  { %10343 = vst [vmem:[#allocation96_spill] sm:$0xff] %v7844_v53  ;;  %5731 = vpow2.f32 %v1722_v11  ;;  %v7855_v16 = vmul.f32 %v5722_v5, %v7242_v32  ;;  %v1499_v11 = vsub.f32 %v10346_v20, %v7798_v60  ;;  %v10350_v5 = vld [vmem:[#allocation117_spill] sm:$0xff] }
 0x35b   :  { %v1726_v48 = vmul.f32 1.442695, %v1500_v55  ;;  %5733 = vpow2.f32 %v1716_v23 }
 0x35c   :  { %v7830_v25 = vpop.permute.xlu0 %2771  ;;  %v7834_v33 = vpop.permute.xlu1 %2786  ;;  %10345 = vst [vmem:[#allocation89_spill] sm:$0xff] %v7855_v16 }
 0x35d   :  { %2963 = vperm.xlu0 %5542, %v7823_v49   ;;  %2978 = vperm.xlu1 %5541, %v7828_v34   ;;  %v1502_v49 = vsub.f32 %v10344_v50, %v7798_v60  ;;  %v5724_v19 = vpop.eup %5723  ;;  %5735 = vpow2.f32 %v1726_v48  ;;  %v1504_v50 = vsub.f32 %v10348_v58, %v7798_v60  ;;  %v1501_v48 = vsub.f32 %v10350_v5, %v7798_v60  ;;  %v10352_v58 = vld [vmem:[#allocation127_spill] sm:$0xff] }
 0x35e   :  { %v7860_v55 = vmul.f32 %v5724_v19, %v7376_v39  ;;  %v5726_v32 = vpop.eup %5725  ;;  %5737 = vpow2.f32 %v1720_v51  ;;  %v1724_v39 = vmul.f32 1.442695, %v1499_v11 }
 0x35f   :  { %v1730_v4 = vmul.f32 1.442695, %v1502_v49  ;;  %v7871_v15 = vmul.f32 %v5726_v32, %v7258_v17  ;;  %v1734_v20 = vmul.f32 1.442695, %v1504_v50  ;;  %v10355_v32 = vld [vmem:[#allocation122_spill] sm:$0xff] }
 0x360   :  { %v7846_v62 = vpop.permute.xlu0 %2777  ;;  %v7850_v34 = vpop.permute.xlu1 %2792  ;;  %10347 = vst [vmem:[#allocation100_spill] sm:$0xff] %v7860_v55 }
 0x361   :  { %2969 = vperm.xlu0 %5542, %v7839_v24   ;;  %2984 = vperm.xlu1 %5541, %v7844_v53   ;;  %v5728_v23 = vpop.eup %5727  ;;  %10349 = vst [vmem:[#allocation92_spill] sm:$0xff] %v7871_v15  ;;  %5739 = vpow2.f32 %v1730_v4  ;;  %v1503_v4 = vsub.f32 %v10355_v32, %v7798_v60 }
 0x362   :  { %v7876_v49 = vmul.f32 %v5728_v23, %v7392_v13  ;;  %v5730_v17 = vpop.eup %5729  ;;  %5741 = vpow2.f32 %v1724_v39  ;;  %v1728_v13 = vmul.f32 1.442695, %v1501_v48 }
 0x363   :  { %v7887_v11 = vmul.f32 %v5730_v17, %v7274_v36  ;;  %5743 = vpow2.f32 %v1734_v20  ;;  %v10359_v17 = vld [vmem:[#allocation124_spill] sm:$0xff] }
 0x364   :  { %v7862_v54 = vpop.permute.xlu0 %2783  ;;  %v7866_v53 = vpop.permute.xlu1 %2798  ;;  %10351 = vst [vmem:[#allocation105_spill] sm:$0xff] %v7876_v49  ;;  %5745 = vpow2.f32 %v1728_v13  ;;  %v1505_v20 = vsub.f32 %v10359_v17, %v7798_v60  ;;  %v10366_v17 = vld [vmem:[#allocation164_spill] sm:$0xff] }
 0x365   :  { %2975 = vperm.xlu0 %5542, %v7855_v16   ;;  %2990 = vperm.xlu1 %5541, %v7860_v55   ;;  %v1506_v16 = vsub.f32 %v10352_v58, %v7798_v60  ;;  %v5732_v51 = vpop.eup %5731  ;;  %10354 = vst [vmem:[#allocation109_spill] sm:$0xff] %v7887_v11  ;;  %v10357_v58 = vld [vmem:[#allocation129_spill] sm:$0xff] }
 0x366   :  { %v7892_v50 = vmul.f32 %v5732_v51, %v7408_v1  ;;  %v5734_v36 = vpop.eup %5733  ;;  %v1732_v1 = vmul.f32 1.442695, %v1503_v4 }
 0x367   :  { %v1738_v5 = vmul.f32 1.442695, %v1506_v16  ;;  %v5736_v39 = vpop.eup %5735  ;;  %v7903_v48 = vmul.f32 %v5734_v36, %v7294_v27  ;;  %v10363_v36 = vld [vmem:[#allocation126_spill] sm:$0xff] }
 0x368   :  { %v7878_v19 = vpop.permute.xlu0 %2789  ;;  %v7882_v55 = vpop.permute.xlu1 %2804  ;;  %10356 = vst [vmem:[#allocation99_spill] sm:$0xff] %v7892_v50  ;;  %v7908_v16 = vmul.f32 %v5736_v39, %v7428_v52  ;;  %v1736_v52 = vmul.f32 1.442695, %v1505_v20 }
 0x369   :  { %10353 = vst [vmem:[#allocation95_spill] sm:$0xff] %v7882_v55  ;;  %2981 = vperm.xlu0 %5542, %v7871_v15   ;;  %2996 = vperm.xlu1 %5541, %v7876_v49   ;;  %v1508_v15 = vsub.f32 %v10357_v58, %v7798_v60  ;;  %10358 = vst [vmem:[#allocation115_spill] sm:$0xff] %v7903_v48  ;;  %5747 = vpow2.f32 %v1738_v5  ;;  %v10361_v58 = vld [vmem:[#allocation131_spill] sm:$0xff]  ;;  %v5738_v27 = vpop.eup %5737  ;;  %v1507_v5 = vsub.f32 %v10363_v36, %v7798_v60 }
 0x36a   :  { %10360 = vst [vmem:[#allocation104_spill] sm:$0xff] %v7908_v16  ;;  %v7919_v4 = vmul.f32 %v5738_v27, %v7310_v57  ;;  %5749 = vpow2.f32 %v1732_v1 }
 0x36b   :  { %v1742_v32 = vmul.f32 1.442695, %v1508_v15  ;;  %v5740_v13 = vpop.eup %5739 }
 0x36c   :  { %v7894_v23 = vpop.permute.xlu0 %2795  ;;  %v7898_v49 = vpop.permute.xlu1 %2810  ;;  %10362 = vst [vmem:[#allocation118_spill] sm:$0xff] %v7919_v4  ;;  %v7924_v15 = vmul.f32 %v5740_v13, %v7444_v10  ;;  %v1740_v13 = vmul.f32 1.442695, %v1507_v5 }
 0x36d   :  { %2987 = vperm.xlu0 %5542, %v7887_v11   ;;  %3002 = vperm.xlu1 %5541, %v7892_v50   ;;  %v1510_v11 = vsub.f32 %v10361_v58, %v7798_v60  ;;  %v7930_v58 = vrot.slane %v6945_v56, %v10366_v17  ;;  %5751 = vpow2.f32 %v1742_v32  ;;  %v5742_v1 = vpop.eup %5741  ;;  %v10369_v56 = vld [vmem:[#allocation128_spill] sm:$0xff]  ;;  %v10371_v17 = vld [vmem:[#allocation135_spill] sm:$0xff] }
 0x36e   :  { %10364 = vst [vmem:[#allocation108_spill] sm:$0xff] %v7924_v15  ;;  %v5744_v10 = vpop.eup %5743  ;;  %v7939_v20 = vmul.f32 %v5742_v1, %v7326_v2  ;;  %5753 = vpow2.f32 %v1736_v52  ;;  %v1509_v32 = vsub.f32 %v10369_v56, %v7798_v60  ;;  %v10373_v1 = vld [vmem:[#allocation130_spill] sm:$0xff]  ;;  %v10375_v56 = vld [vmem:[#allocation137_spill] sm:$0xff] }
 0x36f   :  { %v5746_v2 = vpop.eup %5745 }
 0x370   :  { %v7910_v51 = vpop.permute.xlu0 %2801  ;;  %v7914_v50 = vpop.permute.xlu1 %2816  ;;  %10368 = vst [vmem:[#allocation114_spill] sm:$0xff] %v7939_v20  ;;  %v7955_v5 = vmul.f32 %v5746_v2, %v7342_v59  ;;  %v10377_v2 = vld [vmem:[#allocation132_spill] sm:$0xff] }
 0x371   :  { %2993 = vperm.xlu0 %5542, %v7903_v48   ;;  %3008 = vperm.xlu1 %5541, %v7908_v16   ;;  %v1746_v16 = vmul.f32 1.442695, %v1510_v11  ;;  %v10367_v48 = vld [vmem:[#allocation133_spill] sm:$0xff]  ;;  %v7944_v11 = vmul.f32 %v5744_v10, %v7460_v40  ;;  %v1744_v40 = vmul.f32 1.442695, %v1509_v32 }
 0x372   :  { %v1512_v57 = vsub.f32 %v10367_v48, %v7798_v60  ;;  %10372 = vst [vmem:[#allocation117_spill] sm:$0xff] %v7955_v5 }
 0x373   :  { %10370 = vst [vmem:[#allocation125_spill] sm:$0xff] %v7944_v11  ;;  %5755 = vpow2.f32 %v1746_v16  ;;  %v5748_v52 = vpop.eup %5747  ;;  %v1511_v16 = vsub.f32 %v10373_v1, %v7798_v60 }
 0x374   :  { %v7926_v39 = vpop.permute.xlu0 %2807  ;;  %v7934_v27 = vpop.permute.xlu1 %2822  ;;  %v1750_v36 = vmul.f32 1.442695, %v1512_v57  ;;  %5757 = vpow2.f32 %v1740_v13  ;;  %v7960_v57 = vmul.f32 %v5748_v52, %v7474_v30 }
 0x375   :  { %10365 = vst [vmem:[#allocation123_spill] sm:$0xff] %v7926_v39  ;;  %2999 = vperm.xlu0 %5542, %v7919_v4   ;;  %3014 = vperm.xlu1 %5541, %v7924_v15   ;;  %v1514_v4 = vsub.f32 %v10371_v17, %v7930_v58  ;;  %v5750_v59 = vpop.eup %5749  ;;  %v1748_v30 = vmul.f32 1.442695, %v1511_v16  ;;  %v10381_v16 = vld [vmem:[#allocation134_spill] sm:$0xff] }
 0x376   :  { %10374 = vst [vmem:[#allocation127_spill] sm:$0xff] %v7960_v57  ;;  %5759 = vpow2.f32 %v1750_v36  ;;  %v7971_v32 = vmul.f32 %v5750_v59, %v7358_v9  ;;  %v1513_v36 = vsub.f32 %v10377_v2, %v7798_v60  ;;  %v10383_v2 = vld [vmem:[#allocation141_spill] sm:$0xff] }
 0x377   :  { %v1754_v10 = vmul.f32 1.442695, %v1514_v4  ;;  %v5752_v13 = vpop.eup %5751  ;;  %5761 = vpow2.f32 %v1744_v40 }
 0x378   :  { %v7946_v48 = vpop.permute.xlu0 %2813  ;;  %v7950_v15 = vpop.permute.xlu1 %2828  ;;  %10376 = vst [vmem:[#allocation122_spill] sm:$0xff] %v7971_v32  ;;  %v7976_v4 = vmul.f32 %v5752_v13, %v7490_v28  ;;  %v1752_v28 = vmul.f32 1.442695, %v1513_v36 }
 0x379   :  { %3005 = vperm.xlu0 %5542, %v7939_v20   ;;  %3020 = vperm.xlu1 %5541, %v7944_v11   ;;  %v1516_v20 = vsub.f32 %v10375_v56, %v7930_v58  ;;  %5763 = vpow2.f32 %v1754_v10  ;;  %v10379_v56 = vld [vmem:[#allocation139_spill] sm:$0xff]  ;;  %v5754_v9 = vpop.eup %5753  ;;  %v1515_v10 = vsub.f32 %v10381_v16, %v7930_v58 }
 0x37a   :  { %10378 = vst [vmem:[#allocation129_spill] sm:$0xff] %v7976_v4  ;;  %v7987_v60 = vmul.f32 %v5754_v9, %v7374_v14  ;;  %5765 = vpow2.f32 %v1748_v30  ;;  %v10386_v9 = vld [vmem:[#allocation136_spill] sm:$0xff] }
 0x37b   :  { %v1758_v1 = vmul.f32 1.442695, %v1516_v20 }
 0x37c   :  { %v7962_v17 = vpop.permute.xlu0 %2819  ;;  %v7966_v11 = vpop.permute.xlu1 %2834  ;;  %10380 = vst [vmem:[#allocation124_spill] sm:$0xff] %v7987_v60 }
 0x37d   :  { %3011 = vperm.xlu0 %5542, %v7955_v5   ;;  %3026 = vperm.xlu1 %5541, %v7960_v57   ;;  %v1518_v5 = vsub.f32 %v10379_v56, %v7930_v58  ;;  %v5756_v40 = vpop.eup %5755  ;;  %5767 = vpow2.f32 %v1758_v1  ;;  %v1520_v56 = vsub.f32 %v10383_v2, %v7930_v58  ;;  %v1517_v1 = vsub.f32 %v10386_v9, %v7930_v58  ;;  %v10388_v2 = vld [vmem:[#allocation143_spill] sm:$0xff] }
 0x37e   :  { %v7992_v20 = vmul.f32 %v5756_v40, %v7506_v22  ;;  %v5758_v14 = vpop.eup %5757  ;;  %5769 = vpow2.f32 %v1752_v28  ;;  %v1756_v22 = vmul.f32 1.442695, %v1515_v10  ;;  %v10390_v10 = vld [vmem:[#allocation181_spill] sm:$0xff] }
 0x37f   :  { %v1762_v13 = vmul.f32 1.442695, %v1518_v5  ;;  %v8003_v36 = vmul.f32 %v5758_v14, %v7390_v61  ;;  %v1766_v16 = vmul.f32 1.442695, %v1520_v56  ;;  %v10393_v56 = vld [vmem:[#allocation64_spill] sm:$0xff] }
 0x380   :  { %v7978_v52 = vpop.permute.xlu0 %2825  ;;  %v7982_v57 = vpop.permute.xlu1 %2840  ;;  %10382 = vst [vmem:[#allocation131_spill] sm:$0xff] %v7992_v20 }
 0x381   :  { %3017 = vperm.xlu0 %5542, %v7971_v32   ;;  %3032 = vperm.xlu1 %5541, %v7976_v4   ;;  %v5760_v30 = vpop.eup %5759  ;;  %10385 = vst [vmem:[#allocation133_spill] sm:$0xff] %v8003_v36  ;;  %5771 = vpow2.f32 %v1762_v13 }
 0x382   :  { %v8008_v5 = vmul.f32 %v5760_v30, %v7520_v7  ;;  %v5762_v61 = vpop.eup %5761  ;;  %5773 = vpow2.f32 %v1756_v22  ;;  %v1760_v7 = vmul.f32 1.442695, %v1517_v1  ;;  %v10392_v30 = vld [vmem:[#allocation138_spill] sm:$0xff] }
 0x383   :  { %v5764_v28 = vpop.eup %5763  ;;  %v8019_v14 = vmul.f32 %v5762_v61, %v10390_v10  ;;  %v1519_v13 = vsub.f32 %v10392_v30, %v7930_v58  ;;  %5775 = vpow2.f32 %v1766_v16  ;;  %v10396_v1 = vld [vmem:[#allocation182_spill] sm:$0xff]  ;;  %v10398_v30 = vld [vmem:[#allocation140_spill] sm:$0xff] }
 0x384   :  { %v7994_v59 = vpop.permute.xlu0 %2831  ;;  %v7998_v4 = vpop.permute.xlu1 %2846  ;;  %10387 = vst [vmem:[#allocation128_spill] sm:$0xff] %v8008_v5  ;;  %v8024_v9 = vmul.f32 %v5764_v28, %v10393_v56  ;;  %5777 = vpow2.f32 %v1760_v7  ;;  %v1521_v16 = vsub.f32 %v10398_v30, %v7930_v58  ;;  %v10405_v30 = vld [vmem:[#allocation142_spill] sm:$0xff] }
 0x385   :  { %10384 = vst [vmem:[#allocation126_spill] sm:$0xff] %v7998_v4  ;;  %3023 = vperm.xlu0 %5542, %v7987_v60   ;;  %3038 = vperm.xlu1 %5541, %v7992_v20   ;;  %v1522_v60 = vsub.f32 %v10388_v2, %v7930_v58  ;;  %10391 = vst [vmem:[#allocation130_spill] sm:$0xff] %v8019_v14  ;;  %v5766_v61 = vpop.eup %5765  ;;  %v1764_v28 = vmul.f32 1.442695, %v1519_v13  ;;  %v10403_v13 = vld [vmem:[#allocation183_spill] sm:$0xff] }
 0x386   :  { %10394 = vst [vmem:[#allocation137_spill] sm:$0xff] %v8024_v9  ;;  %v8035_v10 = vmul.f32 %v5766_v61, %v10396_v1 }
 0x387   :  { %v1770_v32 = vmul.f32 1.442695, %v1522_v60  ;;  %v5768_v22 = vpop.eup %5767  ;;  %v10399_v60 = vld [vmem:[#allocation66_spill] sm:$0xff] }
 0x388   :  { %v8010_v40 = vpop.permute.xlu0 %2837  ;;  %v8014_v20 = vpop.permute.xlu1 %2852  ;;  %10397 = vst [vmem:[#allocation132_spill] sm:$0xff] %v8035_v10  ;;  %v8040_v56 = vmul.f32 %v5768_v22, %v10399_v60  ;;  %v1768_v22 = vmul.f32 1.442695, %v1521_v16  ;;  %v10410_v16 = vld [vmem:[#allocation51_spill] sm:$0xff] }
 0x389   :  { %10389 = vst [vmem:[#allocation135_spill] sm:$0xff] %v8014_v20  ;;  %3029 = vperm.xlu0 %5542, %v8003_v36   ;;  %3044 = vperm.xlu1 %5541, %v8008_v5   ;;  %v10395_v36 = vld [vmem:[#allocation145_spill] sm:$0xff]  ;;  %5779 = vpow2.f32 %v1770_v32  ;;  %v5770_v61 = vpop.eup %5769  ;;  %v1523_v32 = vsub.f32 %v10405_v30, %v7930_v58  ;;  %v10412_v30 = vld [vmem:[#allocation144_spill] sm:$0xff] }
 0x38a   :  { %v1524_v24 = vsub.f32 %v10395_v36, %v7930_v58  ;;  %10400 = vst [vmem:[#allocation139_spill] sm:$0xff] %v8040_v56  ;;  %v8051_v1 = vmul.f32 %v5770_v61, %v10403_v13  ;;  %5781 = vpow2.f32 %v1764_v28 }
 0x38b   :  { %v5772_v7 = vpop.eup %5771 }
 0x38c   :  { %v8026_v2 = vpop.permute.xlu0 %2843  ;;  %v8030_v5 = vpop.permute.xlu1 %2858  ;;  %v1774_v20 = vmul.f32 1.442695, %v1524_v24  ;;  %10404 = vst [vmem:[#allocation141_spill] sm:$0xff] %v8051_v1  ;;  %v10406_v24 = vld [vmem:[#allocation174_spill] sm:$0xff] }
 0x38d   :  { %3035 = vperm.xlu0 %5542, %v8019_v14   ;;  %3050 = vperm.xlu1 %5541, %v8024_v9   ;;  %v10402_v14 = vld [vmem:[#allocation147_spill] sm:$0xff]  ;;  %v8056_v60 = vmul.f32 %v5772_v7, %v10406_v24  ;;  %v5774_v61 = vpop.eup %5773  ;;  %v1772_v7 = vmul.f32 1.442695, %v1523_v32 }
 0x38e   :  { %v1526_v55 = vsub.f32 %v10402_v14, %v7930_v58  ;;  %5783 = vpow2.f32 %v1774_v20  ;;  %v5776_v28 = vpop.eup %5775  ;;  %v8067_v13 = vmul.f32 %v5774_v61, %v10410_v16  ;;  %v1525_v20 = vsub.f32 %v10412_v30, %v7930_v58 }
 0x38f   :  { %10407 = vst [vmem:[#allocation136_spill] sm:$0xff] %v8056_v60  ;;  %5785 = vpow2.f32 %v1768_v22  ;;  %v10414_v22 = vld [vmem:[#allocation157_spill] sm:$0xff] }
 0x390   :  { %v8042_v36 = vpop.permute.xlu0 %2849  ;;  %v8046_v9 = vpop.permute.xlu1 %2864  ;;  %v1778_v39 = vmul.f32 1.442695, %v1526_v55  ;;  %10411 = vst [vmem:[#allocation181_spill] sm:$0xff] %v8067_v13  ;;  %v8072_v55 = vmul.f32 %v5776_v28, %v7586_v26  ;;  %v1776_v16 = vmul.f32 1.442695, %v1525_v20  ;;  %v10416_v26 = vld [vmem:[#allocation146_spill] sm:$0xff] }
 0x391   :  { %10401 = vst [vmem:[#allocation134_spill] sm:$0xff] %v8042_v36  ;;  %3041 = vperm.xlu0 %5542, %v8035_v10   ;;  %3056 = vperm.xlu1 %5541, %v8040_v56   ;;  %v10409_v10 = vld [vmem:[#allocation149_spill] sm:$0xff]  ;;  %v1527_v28 = vsub.f32 %v10416_v26, %v7930_v58  ;;  %v10420_v26 = vld [vmem:[#allocation148_spill] sm:$0xff]  ;;  %v10480_v36 = vld [vmem:[#allocation102_spill] sm:$0xff] }
 0x392   :  { %v1528_v4 = vsub.f32 %v10409_v10, %v7930_v58  ;;  %10413 = vst [vmem:[#allocation138_spill] sm:$0xff] %v8072_v55  ;;  %5787 = vpow2.f32 %v1778_v39 }
 0x393   :  { %5789 = vpow2.f32 %v1772_v7  ;;  %v1780_v20 = vmul.f32 1.442695, %v1527_v28 }
 0x394   :  { %v8058_v14 = vpop.permute.xlu0 %2855  ;;  %v8062_v56 = vpop.permute.xlu1 %2870  ;;  %v1782_v24 = vmul.f32 1.442695, %v1528_v4 }
 0x395   :  { %10408 = vst [vmem:[#allocation143_spill] sm:$0xff] %v8058_v14  ;;  %3047 = vperm.xlu0 %5542, %v8051_v1   ;;  %3062 = vperm.xlu1 %5541, %v8056_v60   ;;  %v5778_v60 = vpop.eup %5777 }
 0x396   :  { %v5780_v61 = vpop.eup %5779  ;;  %v8081_v32 = vmul.f32 %v5778_v60, %v10414_v22  ;;  %5791 = vpow2.f32 %v1782_v24  ;;  %v10418_v22 = vld [vmem:[#allocation158_spill] sm:$0xff] }
 0x397   :  { %v8086_v30 = vmul.f32 %v5780_v61, %v7602_v29  ;;  %5793 = vpow2.f32 %v1776_v16  ;;  %v1529_v29 = vsub.f32 %v10420_v26, %v7930_v58 }
 0x398   :  { %v8074_v10 = vpop.permute.xlu0 %2861  ;;  %v8076_v1 = vpop.permute.xlu1 %2876  ;;  %10415 = vst [vmem:[#allocation64_spill] sm:$0xff] %v8081_v32  ;;  %5795 = vpow2.f32 %v1780_v20 }
 0x399   :  { %3053 = vperm.xlu0 %5542, %v8067_v13   ;;  %3068 = vperm.xlu1 %5541, %v8072_v55   ;;  %10417 = vst [vmem:[#allocation145_spill] sm:$0xff] %v8086_v30  ;;  %v5782_v13 = vpop.eup %5781  ;;  %v1784_v16 = vmul.f32 1.442695, %v1529_v29  ;;  %v10430_v29 = vld [vmem:[#allocation68_spill] sm:$0xff] }
 0x39a   :  { %v5784_v60 = vpop.eup %5783  ;;  %v8095_v7 = vmul.f32 %v5782_v13, %v10418_v22  ;;  %v10422_v13 = vld [vmem:[#allocation159_spill] sm:$0xff] }
 0x39b   :  { %v8100_v61 = vmul.f32 %v5784_v60, %v7616_v46  ;;  %5797 = vpow2.f32 %v1784_v16 }
 0x39c   :  { %v8088_v39 = vpop.permute.xlu0 %2867  ;;  %v8090_v4 = vpop.permute.xlu1 %2882  ;;  %10419 = vst [vmem:[#allocation182_spill] sm:$0xff] %v8095_v7 }
 0x39d   :  { %3059 = vperm.xlu0 %5542, %v8081_v32   ;;  %3074 = vperm.xlu1 %5541, %v8086_v30   ;;  %10421 = vst [vmem:[#allocation140_spill] sm:$0xff] %v8100_v61  ;;  %v5786_v32 = vpop.eup %5785 }
 0x39e   :  { %v5788_v30 = vpop.eup %5787  ;;  %v8109_v22 = vmul.f32 %v5786_v32, %v10422_v13 }
 0x39f   :  { %v8112_v58 = vmul.f32 %v5788_v30, %v7637_v18  ;;  %v5790_v60 = vpop.eup %5789 }
 0x3a0   :  { %v8102_v24 = vpop.permute.xlu0 %2873  ;;  %v8104_v55 = vpop.permute.xlu1 %2888  ;;  %10423 = vst [vmem:[#allocation66_spill] sm:$0xff] %v8109_v22 }
 0x3a1   :  { %3065 = vperm.xlu0 %5542, %v8095_v7   ;;  %3080 = vperm.xlu1 %5541, %v8100_v61   ;;  %10424 = vst [vmem:[#allocation147_spill] sm:$0xff] %v8112_v58  ;;  %v5792_v26 = vpop.eup %5791  ;;  %v10426_v61 = vld [vmem:[#allocation59_spill] sm:$0xff] }
 0x3a2   :  { %v8121_v7 = vmul.f32 %v5790_v60, %v10426_v61  ;;  %v8124_v32 = vmul.f32 %v5792_v26, %v7662_v6  ;;  %v5794_v30 = vpop.eup %5793 }
 0x3a3   :  { %v8133_v13 = vmul.f32 %v5794_v30, %v10430_v29  ;;  %v5796_v6 = vpop.eup %5795 }
 0x3a4   :  { %v8114_v46 = vpop.permute.xlu0 %2879  ;;  %v8116_v28 = vpop.permute.xlu1 %2894  ;;  %10427 = vst [vmem:[#allocation142_spill] sm:$0xff] %v8121_v7  ;;  %10428 = vst [vmem:[#allocation174_spill] sm:$0xff] %v8124_v32  ;;  %v8141_v16 = vmul.f32 %v5796_v6, %v7595_v35 }
 0x3a5   :  { %10425 = vst [vmem:[#allocation183_spill] sm:$0xff] %v8116_v28  ;;  %3071 = vperm.xlu0 %5542, %v8109_v22   ;;  %3086 = vperm.xlu1 %5541, %v8112_v58   ;;  %10431 = vst [vmem:[#allocation51_spill] sm:$0xff] %v8133_v13  ;;  %v10475_v28 = vld [vmem:[#allocation167_spill] sm:$0xff] }
 0x3a6   :  { %10433 = vst [vmem:[#allocation157_spill] sm:$0xff] %v8141_v16 }
 0x3a8   :  { %v8126_v20 = vpop.permute.xlu0 %2885  ;;  %v8128_v18 = vpop.permute.xlu1 %2900 }
 0x3a9   :  { %10429 = vst [vmem:[#allocation149_spill] sm:$0xff] %v8128_v18  ;;  %3077 = vperm.xlu0 %5542, %v8121_v7   ;;  %3092 = vperm.xlu1 %5541, %v8124_v32   ;;  %v5798_v32 = vpop.eup %5797  ;;  %v10436_v7 = vld [vmem:[#allocation18_spill] sm:$0xff] }
 0x3aa   :  { %v8149_v30 = vmul.f32 %v5798_v32, %v10436_v7 }
 0x3ac   :  { %v8135_v58 = vpop.permute.xlu0 %2891  ;;  %v8137_v61 = vpop.permute.xlu1 %2906  ;;  %10437 = vst [vmem:[#allocation148_spill] sm:$0xff] %v8149_v30 }
 0x3ad   :  { %10432 = vst [vmem:[#allocation144_spill] sm:$0xff] %v8137_v61  ;;  %3083 = vperm.xlu0 %5542, %v8133_v13  }
 0x3b0   :  { %v8143_v60 = vpop.permute.xlu0 %2897  ;;  %v8145_v26 = vpop.permute.xlu1 %2912 }
 0x3b1   :  { %10434 = vst [vmem:[#allocation146_spill] sm:$0xff] %v8143_v60  ;;  %10435 = vst [vmem:[#allocation158_spill] sm:$0xff] %v8145_v26  ;;  %3089 = vperm.xlu0 %5542, %v8141_v16  }
 0x3b4   :  { %v8151_v29 = vpop.permute.xlu0 %2903  ;;  %v8153_v22 = vpop.permute.xlu1 %2918 }
 0x3b5   :  { %10438 = vst [vmem:[#allocation159_spill] sm:$0xff] %v8151_v29  ;;  %10439 = vst [vmem:[#allocation59_spill] sm:$0xff] %v8153_v22  ;;  %3095 = vperm.xlu0 %5542, %v8149_v30  }
 0x3b8   :  { %v8156_v13 = vpop.permute.xlu0 %2909  ;;  %v8158_v35 = vpop.permute.xlu1 %2924 }
 0x3b9   :  { %10440 = vst [vmem:[#allocation68_spill] sm:$0xff] %v8156_v13  ;;  %10441 = vst [vmem:[#allocation18_spill] sm:$0xff] %v8158_v35  ;;  %v10470_v13 = vld [vmem:[#allocation67_spill] sm:$0xff] }
 0x3bc   :  { %v8160_v6 = vpop.permute.xlu0 %2915  ;;  %v8162_v18 = vpop.permute.xlu1 %2930 }
 0x3bd   :  { %10442 = vst [vmem:[#allocation184_spill] sm:$0xff] %v8160_v6  ;;  %10443 = vst [vmem:[#allocation185_spill] sm:$0xff] %v8162_v18 }
 0x3c0   :  { %v8164_v26 = vpop.permute.xlu0 %2921  ;;  %v8166_v16 = vpop.permute.xlu1 %2936 }
 0x3c1   :  { %10444 = vst [vmem:[#allocation186_spill] sm:$0xff] %v8164_v26  ;;  %10445 = vst [vmem:[#allocation187_spill] sm:$0xff] %v8166_v16 }
 0x3c4   :  { %v8168_v7 = vpop.permute.xlu0 %2927  ;;  %v8170_v32 = vpop.permute.xlu1 %2942 }
 0x3c5   :  { %10446 = vst [vmem:[#allocation188_spill] sm:$0xff] %v8168_v7  ;;  %10447 = vst [vmem:[#allocation189_spill] sm:$0xff] %v8170_v32 }
 0x3c8   :  { %v8172_v29 = vpop.permute.xlu0 %2933  ;;  %v8174_v22 = vpop.permute.xlu1 %2948 }
 0x3c9   :  { %10448 = vst [vmem:[#allocation190_spill] sm:$0xff] %v8172_v29  ;;  %10449 = vst [vmem:[#allocation191_spill] sm:$0xff] %v8174_v22 }
 0x3cc   :  { %v8176_v30 = vpop.permute.xlu0 %2939  ;;  %v8178_v61 = vpop.permute.xlu1 %2954 }
 0x3cd   :  { %10450 = vst [vmem:[#allocation192_spill] sm:$0xff] %v8176_v30  ;;  %10451 = vst [vmem:[#allocation193_spill] sm:$0xff] %v8178_v61 }
 0x3d0   :  { %v8180_v35 = vpop.permute.xlu0 %2945  ;;  %v8182_v6 = vpop.permute.xlu1 %2960 }
 0x3d1   :  { %10452 = vst [vmem:[#allocation194_spill] sm:$0xff] %v8180_v35  ;;  %10453 = vst [vmem:[#allocation195_spill] sm:$0xff] %v8182_v6 }
 0x3d4   :  { %v8184_v18 = vpop.permute.xlu0 %2951  ;;  %v8186_v26 = vpop.permute.xlu1 %2966 }
 0x3d5   :  { %10454 = vst [vmem:[#allocation196_spill] sm:$0xff] %v8184_v18  ;;  %10455 = vst [vmem:[#allocation197_spill] sm:$0xff] %v8186_v26 }
 0x3d8   :  { %v8188_v16 = vpop.permute.xlu0 %2957  ;;  %v8190_v7 = vpop.permute.xlu1 %2972 }
 0x3d9   :  { %10456 = vst [vmem:[#allocation198_spill] sm:$0xff] %v8188_v16  ;;  %10457 = vst [vmem:[#allocation199_spill] sm:$0xff] %v8190_v7  ;;  %v10468_v7 = vld [vmem:[#allocation97_spill] sm:$0xff] }
 0x3dc   :  { %v8192_v32 = vpop.permute.xlu0 %2963  ;;  %v8194_v29 = vpop.permute.xlu1 %2978 }
 0x3dd   :  { %10458 = vst [vmem:[#allocation200_spill] sm:$0xff] %v8192_v32  ;;  %10459 = vst [vmem:[#allocation201_spill] sm:$0xff] %v8194_v29  ;;  %v3100_v32 = vrot.slane %v7682_v45, %v10468_v7  ;;  %v10469_v29 = vld [vmem:[#allocation94_spill] sm:$0xff] }
 0x3de   :  { %v3183_v45 = vrot.slane %v7814_v43, %v10469_v29  ;;  %v3341_v43 = vrot.slane %v8074_v10, %v10469_v29  ;;  %v3337_v10 = vrot.slane %v8030_v5, %v10468_v7 }
 0x3e0   :  { %v8196_v22 = vpop.permute.xlu0 %2969  ;;  %v8198_v30 = vpop.permute.xlu1 %2984 }
 0x3e1   :  { %10460 = vst [vmem:[#allocation202_spill] sm:$0xff] %v8196_v22  ;;  %10461 = vst [vmem:[#allocation203_spill] sm:$0xff] %v8198_v30  ;;  %v3104_v22 = vrot.slane %v10470_v13, %v10469_v29 }
 0x3e4   :  { %v8200_v61 = vpop.permute.xlu0 %2975  ;;  %v8202_v35 = vpop.permute.xlu1 %2990 }
 0x3e5   :  { %10462 = vst [vmem:[#allocation204_spill] sm:$0xff] %v8200_v61  ;;  %10463 = vst [vmem:[#allocation205_spill] sm:$0xff] %v8202_v35  ;;  %v3105_v35 = vsel %vm691_vm0, %v3104_v22, %v3100_v32  ;;  %v10473_v61 = vld [vmem:[#allocation101_spill] sm:$0xff]  ;;  %v3262_v22 = vrot.slane %v7946_v48, %v10469_v29  ;;  %v10478_v32 = vld [vmem:[#allocation103_spill] sm:$0xff] }
 0x3e8   :  { %v8204_v6 = vpop.permute.xlu0 %2981  ;;  %v8206_v18 = vpop.permute.xlu1 %2996 }
 0x3e9   :  { %10464 = vst [vmem:[#allocation206_spill] sm:$0xff] %v8204_v6  ;;  %10465 = vst [vmem:[#allocation207_spill] sm:$0xff] %v8206_v18  ;;  %v3114_v6 = vrot.slane %v7698_v3, %v10473_v61  ;;  %v10474_v18 = vld [vmem:[#allocation98_spill] sm:$0xff] }
 0x3ec   :  { %v8208_v26 = vpop.permute.xlu0 %2987  ;;  %v8210_v16 = vpop.permute.xlu1 %3002 }
 0x3ed   :  { %10466 = vst [vmem:[#allocation208_spill] sm:$0xff] %v8208_v26  ;;  %10467 = vst [vmem:[#allocation209_spill] sm:$0xff] %v8210_v16  ;;  %v3109_v26 = vrot.slane %v10475_v28, %v10474_v18  ;;  %v3124_v28 = vrot.slane %v7714_v0, %v10480_v36  ;;  %v3188_v0 = vrot.slane %v7782_v37, %v10474_v18 }
 0x3ef   :  { %v3110_v16 = vsel %vm698_vm1, %v3109_v26, %v3105_v35  ;;  %v3258_v26 = vrot.slane %v7898_v49, %v10468_v7  ;;  %v3272_v49 = vrot.slane %v7962_v17, %v10473_v61  ;;  %v3351_v17 = vrot.slane %v8088_v39, %v10473_v61 }
 0x3f0   :  { %v8216_v14 = vpop.permute.xlu0 %2993  ;;  %v8218_v30 = vpop.permute.xlu1 %3008 }
 0x3f1   :  { %10471 = vst [vmem:[#allocation97_spill] sm:$0xff] %v8216_v14  ;;  %10472 = vst [vmem:[#allocation94_spill] sm:$0xff] %v8218_v30  ;;  %v3115_v14 = vsel %vm705_vm2, %v3114_v6, %v3110_v16  ;;  %v10479_v30 = vld [vmem:[#allocation169_spill] sm:$0xff] }
 0x3f2   :  { %v3119_v3 = vrot.slane %v10479_v30, %v10478_v32  ;;  %v3193_v30 = vrot.slane %v7830_v25, %v10473_v61  ;;  %v3267_v25 = vrot.slane %v7914_v50, %v10474_v18  ;;  %v3346_v50 = vrot.slane %v8046_v9, %v10474_v18 }
 0x3f3   :  { %v3277_v9 = vrot.slane %v7934_v27, %v10478_v32 }
 0x3f4   :  { %v8225_v60 = vpop.permute.xlu0 %2999  ;;  %v8230_v13 = vpop.permute.xlu1 %3014  ;;  %v3120_v16 = vsel %vm9873_vm3, %v3119_v3, %v3115_v14  ;;  %v10483_v3 = vld [vmem:[#allocation106_spill] sm:$0xff] }
 0x3f5   :  { %10476 = vst [vmem:[#allocation67_spill] sm:$0xff] %v8225_v60  ;;  %10477 = vst [vmem:[#allocation101_spill] sm:$0xff] %v8230_v13  ;;  %v3179_v60 = vrot.slane %v7766_v44, %v10468_v7  ;;  %v3263_v44 = vsel %vm691_vm0, %v3262_v22, %v3258_v26  ;;  %v3125_v14 = vsel %vm10482_vm15, %v3124_v28, %v3120_v16  ;;  %vm10486_vm15 = vcmask 458112  }
 0x3f6   :  { %v3342_v22 = vsel %vm691_vm0, %v3341_v43, %v3337_v10  ;;  %v3268_v28 = vsel %vm698_vm1, %v3267_v25, %v3263_v44  ;;  %v3198_v43 = vrot.slane %v7802_v21, %v10478_v32  ;;  %v10488_v10 = vld [vmem:[#allocation111_spill] sm:$0xff] }
 0x3f7   :  { %v3184_v48 = vsel %vm691_vm0, %v3183_v45, %v3179_v60  ;;  %v3134_v60 = vrot.slane %v7730_v47, %v10483_v3  ;;  %v10484_v45 = vld [vmem:[#allocation107_spill] sm:$0xff]  ;;  %v3203_v47 = vrot.slane %v7846_v62, %v10480_v36  ;;  %v3273_v39 = vsel %vm705_vm2, %v3272_v49, %v3268_v28  ;;  %v10487_v62 = vld [vmem:[#allocation110_spill] sm:$0xff] }
 0x3f8   :  { %v8245_v35 = vpop.permute.xlu0 %3005  ;;  %v8251_v6 = vpop.permute.xlu1 %3020  ;;  %v3189_v37 = vsel %vm698_vm1, %v3188_v0, %v3184_v48  ;;  %v3144_v0 = vrot.slane %v7746_v31, %v10487_v62  ;;  %v3347_v44 = vsel %vm698_vm1, %v3346_v50, %v3342_v22  ;;  %v3213_v31 = vrot.slane %v7862_v54, %v10483_v3  ;;  %v10494_v54 = vld [vmem:[#allocation113_spill] sm:$0xff] }
 0x3f9   :  { %10481 = vst [vmem:[#allocation98_spill] sm:$0xff] %v8251_v6  ;;  %v10485_v6 = vld [vmem:[#allocation171_spill] sm:$0xff]  ;;  %v3194_v5 = vsel %vm705_vm2, %v3193_v30, %v3189_v37  ;;  %v3282_v30 = vrot.slane %v7978_v52, %v10480_v36  ;;  %v3352_v49 = vsel %vm705_vm2, %v3351_v17, %v3347_v44  ;;  %v3361_v52 = vrot.slane %v8102_v24, %v10480_v36 }
 0x3fa   :  { %v3129_v13 = vrot.slane %v10485_v6, %v10484_v45  ;;  %v3199_v21 = vsel %vm9873_vm3, %v3198_v43, %v3194_v5  ;;  %v3278_v27 = vsel %vm9873_vm3, %v3277_v9, %v3273_v39  ;;  %v3356_v37 = vrot.slane %v8062_v56, %v10478_v32  ;;  %v10495_v43 = vld [vmem:[#allocation112_spill] sm:$0xff] }
 0x3fb   :  { %v3208_v17 = vrot.slane %v7818_v41, %v10484_v45  ;;  %v3154_v50 = vrot.slane %v7762_v8, %v10494_v54  ;;  %v3287_v56 = vrot.slane %v7950_v15, %v10484_v45  ;;  %v3149_v39 = vrot.slane %v7718_v12, %v10495_v43 }
 0x3fc   :  { %v8271_v26 = vpop.permute.xlu0 %3011  ;;  %v8279_v16 = vpop.permute.xlu1 %3026  ;;  %v3130_v48 = vsel %vm10486_vm15, %v3129_v13, %v3125_v14  ;;  %v10489_v13 = vld [vmem:[#allocation14_spill] sm:$0xff]  ;;  %vm10490_vm15 = vcmask 392512   ;;  %v3223_v8 = vrot.slane %v7878_v19, %v10487_v62  ;;  %v3366_v9 = vrot.slane %v8076_v1, %v10484_v45 }
 0x3fd   :  { %v3135_v6 = vsel %vm733_vm6, %v3134_v60, %v3130_v48  ;;  %v3139_v14 = vrot.slane %v10489_v13, %v10488_v10  ;;  %v3204_v60 = vsel %vm10490_vm15, %v3203_v47, %v3199_v21  ;;  %vm10492_vm7 = vmmov %vm10490_vm15  ;;  %v3292_v47 = vrot.slane %v7994_v59, %v10483_v3  ;;  %v10500_v21 = vld [vmem:[#allocation116_spill] sm:$0xff] }
 0x3fe   :  { %v3283_v24 = vsel %vm10492_vm7, %v3282_v30, %v3278_v27  ;;  %vm10493_vm15 = vcmask 654912   ;;  %v3357_v48 = vsel %vm9873_vm3, %v3356_v37, %v3352_v49  ;;  %vm10497_vm8 = vmmov %vm10492_vm7  ;;  %v3371_v59 = vrot.slane %v8114_v46, %v10483_v3 }
 0x3ff   :  { %v3140_v5 = vsel %vm10491_vm4, %v3139_v14, %v3135_v6  ;;  %vm10496_vm4 = vcmask 458112   ;;  %v3362_v30 = vsel %vm10497_vm8, %v3361_v52, %v3357_v48  ;;  %v3218_v13 = vrot.slane %v7834_v33, %v10488_v10 }
 0x400   :  { %v8299_v25 = vpop.permute.xlu0 %3017  ;;  %v8307_v22 = vpop.permute.xlu1 %3032  ;;  %v3145_v28 = vsel %vm10493_vm15, %v3144_v0, %v3140_v5  ;;  %v3209_v41 = vsel %vm10496_vm4, %v3208_v17, %v3204_v60  ;;  %vm10498_vm7 = vmmov %vm10496_vm4  ;;  %vm10499_vm15 = vcmask 720512   ;;  %v3302_v14 = vrot.slane %v8010_v40, %v10487_v62  ;;  %v10502_v60 = vld [vmem:[#allocation119_spill] sm:$0xff] }
 0x401   :  { %v3214_v0 = vsel %vm733_vm6, %v3213_v31, %v3209_v41  ;;  %v3288_v15 = vsel %vm10498_vm7, %v3287_v56, %v3283_v24  ;;  %v3150_v44 = vsel %vm10499_vm15, %v3149_v39, %v3145_v28  ;;  %v3159_v19 = vrot.slane %v7734_v42, %v10500_v21  ;;  %vm10501_vm8 = vmmov %vm10496_vm4 }
 0x402   :  { %v3293_v46 = vsel %vm733_vm6, %v3292_v47, %v3288_v15  ;;  %v3155_v49 = vsel %vm761_vm10, %v3154_v50, %v3150_v44  ;;  %v3297_v1 = vrot.slane %v7966_v11, %v10488_v10  ;;  %v3367_v52 = vsel %vm10501_vm8, %v3366_v9, %v3362_v30  ;;  %v10511_v9 = vld [vmem:[#allocation134_spill] sm:$0xff] }
 0x403   :  { %v3164_v31 = vrot.slane %v7778_v63, %v10502_v60  ;;  %vm10503_vm4 = vcmask 589312   ;;  %v3372_v27 = vsel %vm733_vm6, %v3371_v59, %v3367_v52  ;;  %v3381_v40 = vrot.slane %v8126_v20, %v10487_v62 }
 0x404   :  { %v8327_v6 = vpop.permute.xlu0 %3023  ;;  %v8335_v12 = vpop.permute.xlu1 %3038  ;;  %v3219_v33 = vsel %vm10503_vm4, %v3218_v13, %v3214_v0  ;;  %vm10504_vm7 = vcmask 654912   ;;  %v3233_v5 = vrot.slane %v7894_v23, %v10494_v54  ;;  %vm10505_vm15 = vmmov %vm10503_vm4  ;;  %v3376_v17 = vrot.slane %v8090_v4, %v10488_v10  ;;  %v10510_v0 = vld [vmem:[#allocation121_spill] sm:$0xff]  ;;  %v10512_v13 = vld [vmem:[#allocation120_spill] sm:$0xff] }
 0x405   :  { %v3224_v42 = vsel %vm10504_vm7, %v3223_v8, %v3219_v33  ;;  %v3298_v11 = vsel %vm10505_vm15, %v3297_v1, %v3293_v46  ;;  %v3228_v24 = vrot.slane %v7850_v34, %v10495_v43  ;;  %vm10506_vm8 = vmmov %vm10504_vm7  ;;  %v3312_v20 = vrot.slane %v8026_v2, %v10494_v54 }
 0x406   :  { %v3303_v47 = vsel %vm10506_vm8, %v3302_v14, %v3298_v11  ;;  %v3160_v28 = vsel %vm768_vm11, %v3159_v19, %v3155_v49  ;;  %v3307_v23 = vrot.slane %v7982_v57, %v10495_v43  ;;  %v3377_v50 = vsel %vm10503_vm4, %v3376_v17, %v3372_v27  ;;  %vm10508_vm15 = vmmov %vm10506_vm8  ;;  %v10514_v14 = vld [vmem:[#allocation126_spill] sm:$0xff]  ;;  %v10517_v27 = vld [vmem:[#allocation123_spill] sm:$0xff] }
 0x407   :  { %v3165_v56 = vsel %vm775_vm12, %v3164_v31, %v3160_v28  ;;  %vm10507_vm7 = vcmask 720512   ;;  %v3382_v48 = vsel %vm10508_vm15, %v3381_v40, %v3377_v50  ;;  %v3391_v34 = vrot.slane %v8135_v58, %v10494_v54  ;;  %v10520_v28 = vld [vmem:[#allocation143_spill] sm:$0xff]  ;;  %v10521_v50 = vld [vmem:[#allocation68_spill] sm:$0xff] }
 0x408   :  { %v8355_v37 = vpop.permute.xlu0 %3029  ;;  %v8363_v63 = vpop.permute.xlu1 %3044  ;;  %v3229_v4 = vsel %vm10507_vm7, %v3228_v24, %v3224_v42  ;;  %v3243_v41 = vrot.slane %v7910_v51, %v10502_v60  ;;  %vm10509_vm8 = vmmov %vm10507_vm7  ;;  %v3386_v30 = vrot.slane %v8104_v55, %v10495_v43  ;;  %v3169_v8 = vrot.slane %v7750_v38, %v10510_v0  ;;  %v10513_v51 = vld [vmem:[#allocation83_spill] sm:$0xff] }
 0x409   :  { %v3234_v2 = vsel %vm761_vm10, %v3233_v5, %v3229_v4  ;;  %v3308_v57 = vsel %vm10509_vm8, %v3307_v23, %v3303_v47  ;;  %v3238_v58 = vrot.slane %v7866_v53, %v10500_v21  ;;  %v3322_v44 = vrot.slane %v10511_v9, %v10502_v60  ;;  %vm10515_vm4 = vmmov %vm10507_vm7  ;;  %v10516_v53 = vld [vmem:[#allocation146_spill] sm:$0xff]  ;;  %v10518_v5 = vld [vmem:[#allocation183_spill] sm:$0xff] }
 0x40a   :  { %v3313_v15 = vsel %vm761_vm10, %v3312_v20, %v3308_v57  ;;  %v3174_v46 = vrot.slane %v10513_v51, %v10512_v13  ;;  %v3317_v19 = vrot.slane %v10514_v14, %v10500_v21  ;;  %v3387_v55 = vsel %vm10515_vm4, %v3386_v30, %v3382_v48  ;;  %v10519_v24 = vld [vmem:[#allocation95_spill] sm:$0xff]  ;;  %v10525_v14 = vld [vmem:[#allocation149_spill] sm:$0xff] }
 0x40b   :  { %v3170_v49 = vsel %vm782_vm13, %v3169_v8, %v3165_v56  ;;  %v3239_v38 = vsel %vm768_vm11, %v3238_v58, %v3234_v2  ;;  %v3392_v1 = vsel %vm761_vm10, %v3391_v34, %v3387_v55  ;;  %v3401_v52 = vrot.slane %v10516_v53, %v10502_v60  ;;  %v10522_v48 = vld [vmem:[#allocation135_spill] sm:$0xff]  ;;  %v10524_v8 = vld [vmem:[#allocation144_spill] sm:$0xff]  ;;  %v10526_v55 = vld [vmem:[#allocation193_spill] sm:$0xff] }
 0x40c   :  { %v8379_v39 = vpop.permute.xlu0 %3035  ;;  %v8387_v59 = vpop.permute.xlu1 %3050  ;;  %v3244_v33 = vsel %vm775_vm12, %v3243_v41, %v3239_v38  ;;  %v3253_v40 = vrot.slane %v10517_v27, %v10512_v13  ;;  %v3318_v42 = vsel %vm768_vm11, %v3317_v19, %v3313_v15  ;;  %v3396_v11 = vrot.slane %v10518_v5, %v10500_v21  ;;  %v10523_v41 = vld [vmem:[#allocation198_spill] sm:$0xff] }
 0x40d   :  { %v3248_v47 = vrot.slane %v10519_v24, %v10510_v0  ;;  %v3323_v20 = vsel %vm775_vm12, %v3322_v44, %v3318_v42  ;;  %v3332_v23 = vrot.slane %v10520_v28, %v10512_v13  ;;  %v3420_v56 = vrot.slane %v10521_v50, %v10469_v29  ;;  %v10530_v24 = vld [vmem:[#allocation200_spill] sm:$0xff] }
 0x40e   :  { %v8422_v4 = vsel %vm789_vm14, %v3174_v46, %v3170_v49  ;;  %v3327_v34 = vrot.slane %v10522_v48, %v10510_v0  ;;  %v3397_v2 = vsel %vm768_vm11, %v3396_v11, %v3392_v1  ;;  %v3499_v57 = vrot.slane %v10523_v41, %v10469_v29  ;;  %v10533_v41 = vld [vmem:[#allocation94_spill] sm:$0xff] }
 0x40f   :  { %v3249_v30 = vsel %vm782_vm13, %v3248_v47, %v3244_v33  ;;  %v3416_v58 = vrot.slane %v10524_v8, %v10468_v7  ;;  %v3402_v15 = vsel %vm775_vm12, %v3401_v52, %v3397_v2  ;;  %v3578_v9 = vrot.slane %v8245_v35, %v10469_v29  ;;  %v10527_v35 = vld [vmem:[#allocation184_spill] sm:$0xff]  ;;  %v10528_v33 = vld [vmem:[#allocation209_spill] sm:$0xff] }
 0x410   :  { %v8406_v31 = vpop.permute.xlu0 %3041  ;;  %v3057_v17 = vpop.permute.xlu1 %3056  ;;  %v8438_v51 = vsel %vm789_vm14, %v3253_v40, %v3249_v30  ;;  %v3328_v46 = vsel %vm782_vm13, %v3327_v34, %v3323_v20  ;;  %v3406_v19 = vrot.slane %v10525_v14, %v10510_v0  ;;  %v3495_v49 = vrot.slane %v10526_v55, %v10468_v7  ;;  %v10529_v40 = vld [vmem:[#allocation158_spill] sm:$0xff]  ;;  %v10531_v20 = vld [vmem:[#allocation159_spill] sm:$0xff] }
 0x411   :  { %v8446_v1 = vsel %vm789_vm14, %v3332_v23, %v3328_v46  ;;  %v3421_v53 = vsel %vm691_vm0, %v3420_v56, %v3416_v58  ;;  %v3430_v52 = vrot.slane %v10527_v35, %v10473_v61  ;;  %v3574_v27 = vrot.slane %v10528_v33, %v10468_v7  ;;  %v10532_v23 = vld [vmem:[#allocation195_spill] sm:$0xff]  ;;  %v10535_v14 = vld [vmem:[#allocation186_spill] sm:$0xff]  ;;  %v10537_v33 = vld [vmem:[#allocation197_spill] sm:$0xff] }
 0x412   :  { %v3425_v42 = vrot.slane %v10529_v40, %v10474_v18  ;;  %v8456_v5 = vsel %vm782_vm13, %v3406_v19, %v3402_v15  ;;  %v3500_v11 = vsel %vm691_vm0, %v3499_v57, %v3495_v49  ;;  %v3509_v47 = vrot.slane %v10530_v24, %v10473_v61  ;;  %v10534_v15 = vld [vmem:[#allocation59_spill] sm:$0xff]  ;;  %v10536_v49 = vld [vmem:[#allocation202_spill] sm:$0xff] }
 0x413   :  { %v3411_v28 = vrot.slane %v10531_v20, %v10512_v13  ;;  %v3504_v50 = vrot.slane %v10532_v23, %v10474_v18  ;;  %v3579_v56 = vsel %vm691_vm0, %v3578_v9, %v3574_v27  ;;  %v3588_v48 = vrot.slane %v8271_v26, %v10473_v61  ;;  %v10538_v24 = vld [vmem:[#allocation18_spill] sm:$0xff] }
 0x414   :  { %v8435_v44 = vpop.permute.xlu0 %3047  ;;  %v3063_v38 = vpop.permute.xlu1 %3062  ;;  %v3426_v2 = vsel %vm698_vm1, %v3425_v42, %v3421_v53  ;;  %v3583_v57 = vrot.slane %v10533_v41, %v10474_v18  ;;  %v3653_v30 = vrot.slane %v8387_v59, %v10468_v7  ;;  %v3435_v46 = vrot.slane %v10534_v15, %v10478_v32 }
 0x415   :  { %v3431_v9 = vsel %vm705_vm2, %v3430_v52, %v3426_v2  ;;  %v3440_v26 = vrot.slane %v10535_v14, %v10480_v36  ;;  %v3505_v19 = vsel %vm698_vm1, %v3504_v50, %v3500_v11  ;;  %v3519_v53 = vrot.slane %v10536_v49, %v10480_v36  ;;  %v10539_v50 = vld [vmem:[#allocation101_spill] sm:$0xff]  ;;  %v10544_v14 = vld [vmem:[#allocation199_spill] sm:$0xff] }
 0x416   :  { %v3510_v55 = vsel %vm705_vm2, %v3509_v47, %v3505_v19  ;;  %v3584_v59 = vsel %vm698_vm1, %v3583_v57, %v3579_v56  ;;  %v3514_v27 = vrot.slane %v10537_v33, %v10478_v32  ;;  %v3598_v52 = vrot.slane %v8299_v25, %v10480_v36 }
 0x417   :  { %v3589_v40 = vsel %vm705_vm2, %v3588_v48, %v3584_v59  ;;  %v3662_v42 = vrot.slane %v3057_v17, %v10474_v18  ;;  %v3445_v47 = vrot.slane %v10538_v24, %v10484_v45  ;;  %v3436_v23 = vsel %vm9873_vm3, %v3435_v46, %v3431_v9  ;;  %v10541_v48 = vld [vmem:[#allocation188_spill] sm:$0xff] }
 0x418   :  { %v3054_v34 = vpop.permute.xlu0 %3053  ;;  %v3069_v58 = vpop.permute.xlu1 %3068  ;;  %v3593_v56 = vrot.slane %v10539_v50, %v10478_v32  ;;  %vm10540_vm7 = vcmask 392512   ;;  %v3450_v41 = vrot.slane %v10541_v48, %v10483_v3  ;;  %v3515_v25 = vsel %vm9873_vm3, %v3514_v27, %v3510_v55  ;;  %v10548_v27 = vld [vmem:[#allocation98_spill] sm:$0xff] }
 0x419   :  { %v3657_v8 = vrot.slane %v3054_v34, %v10469_v29  ;;  %v3441_v2 = vsel %vm10540_vm7, %v3440_v26, %v3436_v23  ;;  %vm10542_vm15 = vmmov %vm10540_vm7  ;;  %v3524_v26 = vrot.slane %v10544_v14, %v10484_v45  ;;  %v3608_v55 = vrot.slane %v8327_v6, %v10483_v3  ;;  %v10551_v50 = vld [vmem:[#allocation206_spill] sm:$0xff] }
 0x41a   :  { %v3520_v57 = vsel %vm10542_vm15, %v3519_v53, %v3515_v25  ;;  %v3594_v15 = vsel %vm9873_vm3, %v3593_v56, %v3589_v40  ;;  %vm10545_vm8 = vmmov %vm10540_vm7  ;;  %v3672_v49 = vrot.slane %v3063_v38, %v10478_v32  ;;  %v10546_v53 = vld [vmem:[#allocation185_spill] sm:$0xff]  ;;  %vm10547_vm4 = vcmask 458112  }
 0x41b   :  { %v3658_v35 = vsel %vm691_vm0, %v3657_v8, %v3653_v30  ;;  %v10543_v30 = vld [vmem:[#allocation204_spill] sm:$0xff]  ;;  %v3599_v19 = vsel %vm10545_vm8, %v3598_v52, %v3594_v15  ;;  %v3446_v33 = vsel %vm10547_vm4, %v3445_v47, %v3441_v2  ;;  %v3603_v40 = vrot.slane %v10548_v27, %v10484_v45  ;;  %v10549_v52 = vld [vmem:[#allocation190_spill] sm:$0xff]  ;;  %vm10550_vm7 = vmmov %vm10547_vm4 }
 0x41c   :  { %v3060_v11 = vpop.permute.xlu0 %3059  ;;  %v3663_v17 = vsel %vm698_vm1, %v3662_v42, %v3658_v35  ;;  %v3529_v8 = vrot.slane %v10543_v30, %v10483_v3  ;;  %v3075_v9 = vpop.permute.xlu1 %3074  ;;  %v3455_v35 = vrot.slane %v10546_v53, %v10488_v10  ;;  %v3460_v24 = vrot.slane %v10549_v52, %v10487_v62  ;;  %vm10552_vm15 = vmmov %vm10547_vm4  ;;  %v10553_v2 = vld [vmem:[#allocation201_spill] sm:$0xff]  ;;  %v10554_v30 = vld [vmem:[#allocation187_spill] sm:$0xff] }
 0x41d   :  { %v3667_v34 = vrot.slane %v3060_v11, %v10473_v61  ;;  %v3451_v11 = vsel %vm733_vm6, %v3450_v41, %v3446_v33  ;;  %v3525_v6 = vsel %vm10550_vm7, %v3524_v26, %v3520_v57  ;;  %v3539_v56 = vrot.slane %v10551_v50, %v10487_v62  ;;  %v10561_v53 = vld [vmem:[#allocation208_spill] sm:$0xff]  ;;  %v10562_v27 = vld [vmem:[#allocation203_spill] sm:$0xff] }
 0x41e   :  { %v3530_v23 = vsel %vm733_vm6, %v3529_v8, %v3525_v6  ;;  %v3604_v47 = vsel %vm10552_vm15, %v3603_v40, %v3599_v19  ;;  %v3534_v48 = vrot.slane %v10553_v2, %v10488_v10  ;;  %v3618_v25 = vrot.slane %v8355_v37, %v10487_v62  ;;  %v10564_v6 = vld [vmem:[#allocation189_spill] sm:$0xff] }
 0x41f   :  { %v3668_v46 = vsel %vm705_vm2, %v3667_v34, %v3663_v17  ;;  %v3609_v41 = vsel %vm733_vm6, %v3608_v55, %v3604_v47  ;;  %v3682_v17 = vrot.slane %v3069_v58, %v10484_v45  ;;  %v3465_v8 = vrot.slane %v10554_v30, %v10495_v43  ;;  %v10557_v55 = vld [vmem:[#allocation192_spill] sm:$0xff]  ;;  %v10571_v30 = vld [vmem:[#allocation205_spill] sm:$0xff] }
 0x420   :  { %v3066_v59 = vpop.permute.xlu0 %3065  ;;  %v3673_v38 = vsel %vm9873_vm3, %v3672_v49, %v3668_v46  ;;  %vm10555_vm4 = vcmask 589312   ;;  %v3613_v46 = vrot.slane %v8279_v16, %v10488_v10  ;;  %v3081_v14 = vpop.permute.xlu1 %3080  ;;  %vm10556_vm7 = vcmask 654912  }
 0x421   :  { %v3677_v42 = vrot.slane %v3066_v59, %v10480_v36  ;;  %v3456_v15 = vsel %vm10555_vm4, %v3455_v35, %v3451_v11  ;;  %v3470_v49 = vrot.slane %v10557_v55, %v10494_v54  ;;  %vm10558_vm15 = vmmov %vm10555_vm4  ;;  %v3549_v35 = vrot.slane %v10561_v53, %v10494_v54  ;;  %v10572_v55 = vld [vmem:[#allocation191_spill] sm:$0xff] }
 0x422   :  { %v3461_v19 = vsel %vm10556_vm7, %v3460_v24, %v3456_v15  ;;  %v3535_v37 = vsel %vm10558_vm15, %v3534_v48, %v3530_v23  ;;  %vm10560_vm3 = vmmov %vm10556_vm7  ;;  %v3614_v33 = vsel %vm10555_vm4, %v3613_v46, %v3609_v41  ;;  %v3544_v40 = vrot.slane %v10562_v27, %v10495_v43  ;;  %v10569_v41 = vld [vmem:[#allocation97_spill] sm:$0xff]  ;;  %v10574_v27 = vld [vmem:[#allocation67_spill] sm:$0xff] }
 0x423   :  { %v3678_v34 = vsel %vm10545_vm8, %v3677_v42, %v3673_v38  ;;  %vm10559_vm8 = vcmask 458112   ;;  %v3540_v59 = vsel %vm10560_vm3, %v3539_v56, %v3535_v37  ;;  %vm10563_vm7 = vmmov %vm10560_vm3  ;;  %v3628_v11 = vrot.slane %v8379_v39, %v10494_v54 }
 0x424   :  { %v3072_v57 = vpop.permute.xlu0 %3071  ;;  %v3683_v58 = vsel %vm10559_vm8, %v3682_v17, %v3678_v34  ;;  %v3619_v42 = vsel %vm10563_vm7, %v3618_v25, %v3614_v33  ;;  %v3692_v52 = vrot.slane %v3075_v9, %v10488_v10  ;;  %v3475_v38 = vrot.slane %v10564_v6, %v10500_v21  ;;  %v10566_v34 = vld [vmem:[#allocation194_spill] sm:$0xff]  ;;  %vm10568_vm8 = vmmov %vm10555_vm4 }
 0x425   :  { %v3687_v26 = vrot.slane %v3072_v57, %v10483_v3  ;;  %vm10565_vm3 = vcmask 720512   ;;  %v3623_v50 = vrot.slane %v8307_v22, %v10495_v43  ;;  %v3480_v2 = vrot.slane %v10566_v34, %v10502_v60  ;;  %v3087_v57 = vpop.permute.xlu1 %3086 }
 0x426   :  { %v3466_v23 = vsel %vm10565_vm3, %v3465_v8, %v3461_v19  ;;  %vm10567_vm15 = vmmov %vm10565_vm3  ;;  %v3559_v25 = vrot.slane %v10569_v41, %v10502_v60  ;;  %v3554_v8 = vrot.slane %v10571_v30, %v10500_v21  ;;  %v3638_v46 = vrot.slane %v8406_v31, %v10502_v60 }
 0x427   :  { %v3688_v16 = vsel %vm733_vm6, %v3687_v26, %v3683_v58  ;;  %v3471_v47 = vsel %vm761_vm10, %v3470_v49, %v3466_v23  ;;  %v3545_v39 = vsel %vm10567_vm15, %v3544_v40, %v3540_v59  ;;  %vm10570_vm4 = vmmov %vm10565_vm3  ;;  %v3702_v26 = vrot.slane %v3081_v14, %v10495_v43 }
 0x428   :  { %v3078_v24 = vpop.permute.xlu0 %3077  ;;  %v3693_v9 = vsel %vm10568_vm8, %v3692_v52, %v3688_v16  ;;  %v3550_v48 = vsel %vm761_vm10, %v3549_v35, %v3545_v39  ;;  %v3624_v17 = vsel %vm10570_vm4, %v3623_v50, %v3619_v42  ;;  %v3485_v49 = vrot.slane %v10572_v55, %v10510_v0  ;;  %v10573_v35 = vld [vmem:[#allocation196_spill] sm:$0xff] }
 0x429   :  { %v3697_v56 = vrot.slane %v3078_v24, %v10487_v62  ;;  %v3629_v15 = vsel %vm761_vm10, %v3628_v11, %v3624_v17  ;;  %v3476_v37 = vsel %vm768_vm11, %v3475_v38, %v3471_v47  ;;  %v3633_v58 = vrot.slane %v8335_v12, %v10500_v21  ;;  %v10575_v11 = vld [vmem:[#allocation207_spill] sm:$0xff]  ;;  %v3093_v34 = vpop.permute.xlu1 %3092 }
 0x42a   :  { %v3481_v53 = vsel %vm775_vm12, %v3480_v2, %v3476_v37  ;;  %v3490_v33 = vrot.slane %v10573_v35, %v10512_v13  ;;  %v3555_v31 = vsel %vm768_vm11, %v3554_v8, %v3550_v48  ;;  %v3569_v40 = vrot.slane %v10574_v27, %v10512_v13  ;;  %v10587_v27 = vld [vmem:[#allocation36_spill] sm:$0xff] }
 0x42b   :  { %v3698_v22 = vsel %vm10563_vm7, %v3697_v56, %v3693_v9  ;;  %v3560_v16 = vsel %vm775_vm12, %v3559_v25, %v3555_v31  ;;  %v3634_v42 = vsel %vm768_vm11, %v3633_v58, %v3629_v15  ;;  %v3564_v52 = vrot.slane %v10575_v11, %v10510_v0  ;;  %v10583_v58 = vld [vmem:[#allocation179_spill] sm:$0xff]  ;;  %v10589_v11 = vld [vmem:[#allocation38_spill] sm:$0xff] }
 0x42c   :  { %v3084_v19 = vpop.permute.xlu0 %3083  ;;  %v3703_v14 = vsel %vm10565_vm3, %v3702_v26, %v3698_v22  ;;  %v3639_v24 = vsel %vm775_vm12, %v3638_v46, %v3634_v42  ;;  %v3648_v6 = vrot.slane %v8435_v44, %v10512_v13  ;;  %v3712_v38 = vrot.slane %v3087_v57, %v10500_v21  ;;  %v10588_v42 = vld [vmem:[#allocation17_spill] sm:$0xff] }
 0x42d   :  { %v3707_v59 = vrot.slane %v3084_v19, %v10494_v54  ;;  %v3412_v50 = vsel %vm789_vm14, %v3411_v28, %v8456_v5  ;;  %v3486_v56 = vsel %vm782_vm13, %v3485_v49, %v3481_v53  ;;  %v3643_v47 = vrot.slane %v8363_v63, %v10510_v0  ;;  %v10581_v19 = vld [vmem:[#allocation150_spill] sm:$0xff]  ;;  %v10582_v49 = vld [vmem:[#allocation28_spill] sm:$0xff] }
 0x42e   :  { %vm10576_vm15 = vcmask 1041409   ;;  %v3491_v39 = vsel %vm789_vm14, %v3490_v33, %v3486_v56  ;;  %v3565_v9 = vsel %vm782_vm13, %v3564_v52, %v3560_v16  ;;  %vm10577_vm8 = vcmask 1042434   ;;  %v10584_v53 = vld [vmem:[#allocation34_spill] sm:$0xff]  ;;  %v10585_v33 = vld [vmem:[#allocation177_spill] sm:$0xff] }
 0x42f   :  { %v3708_v12 = vsel %vm761_vm10, %v3707_v59, %v3703_v14  ;;  %v3729_v44 = vsel %vm10576_vm15, %v8438_v51, %v8422_v4  ;;  %v3570_v28 = vsel %vm789_vm14, %v3569_v40, %v3565_v9  ;;  %v3644_v48 = vsel %vm782_vm13, %v3643_v47, %v3639_v24  ;;  %v10586_v14 = vld [vmem:[#allocation91_spill] sm:$0xff]  ;;  %v10590_v24 = vld [vmem:[#allocation22_spill] sm:$0xff] }
 0x430   :  { %v3090_v23 = vpop.permute.xlu0 %3089  ;;  %v3713_v20 = vsel %vm768_vm11, %v3712_v38, %v3708_v12  ;;  %v3730_v5 = vsel %vm10577_vm8, %v8446_v1, %v3729_v44  ;;  %v3722_v25 = vrot.slane %v3093_v34, %v10510_v0  ;;  %v3649_v51 = vsel %vm789_vm14, %v3648_v6, %v3644_v48  ;;  %v10591_v38 = vld [vmem:[#allocation40_spill] sm:$0xff]  ;;  %v10593_v47 = vld [vmem:[#allocation42_spill] sm:$0xff] }
 0x431   :  { %v3717_v2 = vrot.slane %v3090_v23, %v10502_v60  ;;  %v3731_v41 = vsel %vm1348_vm5, %v3412_v50, %v3730_v5  ;;  %vm10578_vm4 = vcmask 1045509   ;;  %vm10579_vm7 = vcmask 1046534   ;;  %v10592_v50 = vld [vmem:[#allocation178_spill] sm:$0xff] }
 0x432   :  { %v3732_v57 = vsel %vm1350_vm9, %v3491_v39, %v3731_v41  ;;  %vm10580_vm3 = vcmask 1047559   ;;  %v10595_v39 = vld [vmem:[#allocation44_spill] sm:$0xff]  ;;  %v10598_v48 = vld [vmem:[#allocation26_spill] sm:$0xff]  ;;  %vm10692_vm15 = vcmask 326912   ;;  %vm10696_vm8 = vcmask 392512  }
 0x433   :  { %v3718_v63 = vsel %vm775_vm12, %v3717_v2, %v3713_v20  ;;  %v3733_v1 = vsel %vm10578_vm4, %v3570_v28, %v3732_v57  ;;  %v10594_v2 = vld [vmem:[#allocation24_spill] sm:$0xff]  ;;  %v10597_v28 = vld [vmem:[#allocation46_spill] sm:$0xff]  ;;  %vm10697_vm4 = vcmask 458112  }
 0x434   :  { %v3096_v4 = vpop.permute.xlu0 %3095  ;;  %v3723_v22 = vsel %vm782_vm13, %v3722_v25, %v3718_v63  ;;  %v3734_v8 = vsel %vm10579_vm7, %v3649_v51, %v3733_v1  ;;  %v10596_v20 = vld [vmem:[#allocation180_spill] sm:$0xff]  ;;  %v10600_v51 = vld [vmem:[#allocation19_spill] sm:$0xff]  ;;  %v10601_v57 = vld [vmem:[#allocation50_spill] sm:$0xff]  ;;  %vm10701_vm7 = vcmask 589312  }
 0x435   :  { %v3727_v17 = vrot.slane %v3096_v4, %v10512_v13  ;;  %v10599_v25 = vld [vmem:[#allocation48_spill] sm:$0xff] }
 0x436   :  { %v10602_v1 = vld [vmem:[#allocation20_spill] sm:$0xff] }
 0x437   :  { %v3728_v30 = vsel %vm789_vm14, %v3727_v17, %v3723_v22 }
 0x438   :  { %v3735_v15 = vsel %vm10580_vm3, %v3728_v30, %v3734_v8  ;;  %v10603_v8 = vld [vmem:[#allocation151_spill] sm:$0xff]  ;;  %vm10704_vm3 = vcmask 654912  }
 0x439   :  { %3737 = vadd.xlane.f32.xlu1 %v3735_v15 }
 0x4c6   :  { %v3738_v46 = vpop.xlane.xlu1 %3737 }
 0x4c7   :  { %5799 = vrcp.f32 %v3738_v46  ;;  %v10604_v46 = vld [vmem:[#allocation52_spill] sm:$0xff] }
 0x4d1   :  { %v8631_v26 = vpop.eup %5799 }
 0x4d2   :  { %v3744_v55 = vrot.slane %v8631_v26, %v10581_v19  ;;  %v8641_v16 = vrot.slane %v8631_v26, %v10586_v14  ;;  %v8669_v15 = vrot.slane %v8631_v26, %v10603_v8  ;;  %v10609_v14 = vld [vmem:[#allocation32_spill] sm:$0xff]  ;;  %v10626_v8 = vld [vmem:[#allocation37_spill] sm:$0xff] }
 0x4d4   :  { %v3790_v37 = vmul.f32 %v3744_v55, %v10582_v49  ;;  %v3781_v59 = vmul.f32 %v3744_v55, %v10583_v58  ;;  %v3796_v35 = vmul.f32 %v3744_v55, %v10584_v53  ;;  %v3782_v31 = vmul.f32 %v3744_v55, %v10585_v33  ;;  %v10605_v49 = vld [vmem:[#allocation30_spill] sm:$0xff]  ;;  %v10607_v53 = vld [vmem:[#allocation21_spill] sm:$0xff]  ;;  %v10608_v33 = vld [vmem:[#allocation56_spill] sm:$0xff] }
 0x4d5   :  { %v3798_v40 = vmul.f32 %v8641_v16, %v10587_v27  ;;  %v3783_v12 = vmul.f32 %v3744_v55, %v10588_v42  ;;  %v3800_v52 = vmul.f32 %v8641_v16, %v10589_v11  ;;  %v3784_v6 = vmul.f32 %v3744_v55, %v10590_v24  ;;  %v10606_v58 = vld [vmem:[#allocation54_spill] sm:$0xff] }
 0x4d6   :  { %4065 = vperm.xlu1 %5541, %v3790_v37   ;;  %4038 = vperm.xlu0 %5542, %v3781_v59   ;;  %v3802_v23 = vmul.f32 %v8641_v16, %v10591_v38  ;;  %v3785_v56 = vmul.f32 %v3744_v55, %v10592_v50  ;;  %v3804_v34 = vmul.f32 %v8641_v16, %v10593_v47 }
 0x4d7   :  { %v3786_v44 = vmul.f32 %v3744_v55, %v10594_v2  ;;  %v3806_v9 = vmul.f32 %v8641_v16, %v10595_v39  ;;  %v3787_v5 = vmul.f32 %v3744_v55, %v10596_v20  ;;  %v3808_v63 = vmul.f32 %v8641_v16, %v10597_v28  ;;  %v10617_v2 = vld [vmem:[#allocation29_spill] sm:$0xff]  ;;  %v10619_v20 = vld [vmem:[#allocation31_spill] sm:$0xff]  ;;  %v10620_v28 = vld [vmem:[#allocation152_spill] sm:$0xff] }
 0x4d8   :  { %v3788_v41 = vmul.f32 %v3744_v55, %v10598_v48  ;;  %v3810_v4 = vmul.f32 %v8641_v16, %v10599_v25  ;;  %v3789_v17 = vmul.f32 %v3744_v55, %v10600_v51  ;;  %v3812_v22 = vmul.f32 %v8641_v16, %v10601_v57  ;;  %v10618_v39 = vld [vmem:[#allocation57_spill] sm:$0xff]  ;;  %v10621_v48 = vld [vmem:[#allocation160_spill] sm:$0xff]  ;;  %v10624_v57 = vld [vmem:[#allocation35_spill] sm:$0xff] }
 0x4d9   :  { %v3791_v30 = vmul.f32 %v3744_v55, %v10602_v1  ;;  %v3814_v19 = vmul.f32 %v8669_v15, %v10604_v46  ;;  %v3792_v37 = vmul.f32 %v3744_v55, %v10605_v49  ;;  %v3816_v59 = vmul.f32 %v8669_v15, %v10606_v58  ;;  %v10622_v25 = vld [vmem:[#allocation33_spill] sm:$0xff]  ;;  %v10625_v1 = vld [vmem:[#allocation162_spill] sm:$0xff] }
 0x4da   :  { %4083 = vperm.xlu1 %5541, %v3796_v35   ;;  %4041 = vperm.xlu0 %5542, %v3782_v31   ;;  %v3793_v35 = vmul.f32 %v3744_v55, %v10607_v53  ;;  %v3818_v31 = vmul.f32 %v8669_v15, %v10608_v33  ;;  %v3794_v27 = vmul.f32 %v3744_v55, %v10609_v14  ;;  %v10623_v51 = vld [vmem:[#allocation161_spill] sm:$0xff] }
 0x4db   :  { %v3809_v46 = vmul.f32 %v8641_v16, %v10626_v8 }
 0x4de   :  { %4089 = vperm.xlu1 %5541, %v3798_v40   ;;  %4044 = vperm.xlu0 %5542, %v3783_v12   ;;  %v10610_v40 = vld [vmem:[#allocation166_spill] sm:$0xff]  ;;  %v10611_v12 = vld [vmem:[#allocation23_spill] sm:$0xff] }
 0x4df   :  { %v3820_v42 = vmul.f32 %v8669_v15, %v10610_v40  ;;  %v3795_v11 = vmul.f32 %v3744_v55, %v10611_v12  ;;  %v10634_v12 = vld [vmem:[#allocation45_spill] sm:$0xff] }
 0x4e2   :  { %4095 = vperm.xlu1 %5541, %v3800_v52   ;;  %4047 = vperm.xlu0 %5542, %v3784_v6   ;;  %v10612_v52 = vld [vmem:[#allocation53_spill] sm:$0xff] }
 0x4e3   :  { %v3822_v24 = vmul.f32 %v8669_v15, %v10612_v52  ;;  %v10613_v6 = vld [vmem:[#allocation25_spill] sm:$0xff] }
 0x4e4   :  { %v3797_v38 = vmul.f32 %v8641_v16, %v10613_v6  ;;  %v10635_v52 = vld [vmem:[#allocation69_spill] sm:$0xff]  ;;  %v10636_v6 = vld [vmem:[#allocation47_spill] sm:$0xff] }
 0x4e6   :  { %4101 = vperm.xlu1 %5541, %v3802_v23   ;;  %4050 = vperm.xlu0 %5542, %v3785_v56   ;;  %v10614_v23 = vld [vmem:[#allocation60_spill] sm:$0xff]  ;;  %v10615_v56 = vld [vmem:[#allocation27_spill] sm:$0xff] }
 0x4e7   :  { %v3824_v50 = vmul.f32 %v8669_v15, %v10614_v23  ;;  %v3799_v47 = vmul.f32 %v8641_v16, %v10615_v56  ;;  %v10637_v23 = vld [vmem:[#allocation153_spill] sm:$0xff]  ;;  %v10638_v56 = vld [vmem:[#allocation71_spill] sm:$0xff] }
 0x4ea   :  { %4107 = vperm.xlu1 %5541, %v3804_v34   ;;  %4053 = vperm.xlu0 %5542, %v3786_v44   ;;  %v10616_v34 = vld [vmem:[#allocation170_spill] sm:$0xff]  ;;  %v3801_v44 = vmul.f32 %v8641_v16, %v10617_v2  ;;  %v10640_v2 = vld [vmem:[#allocation73_spill] sm:$0xff] }
 0x4eb   :  { %v3826_v55 = vmul.f32 %v8669_v15, %v10616_v34  ;;  %v10639_v34 = vld [vmem:[#allocation49_spill] sm:$0xff] }
 0x4ee   :  { %4113 = vperm.xlu1 %5541, %v3806_v9   ;;  %4056 = vperm.xlu0 %5542, %v3787_v5   ;;  %v3828_v9 = vmul.f32 %v8669_v15, %v10618_v39  ;;  %v3803_v5 = vmul.f32 %v8641_v16, %v10619_v20  ;;  %v10641_v39 = vld [vmem:[#allocation156_spill] sm:$0xff]  ;;  %v10642_v20 = vld [vmem:[#allocation75_spill] sm:$0xff] }
 0x4f2   :  { %4119 = vperm.xlu1 %5541, %v3808_v63   ;;  %4059 = vperm.xlu0 %5542, %v3788_v41   ;;  %v8701_v63 = vrot.slane %v8631_v26, %v10620_v28  ;;  %v10643_v28 = vld [vmem:[#allocation58_spill] sm:$0xff] }
 0x4f4   :  { %v3830_v41 = vmul.f32 %v8701_v63, %v10621_v48  ;;  %v3825_v48 = vmul.f32 %v8669_v15, %v10643_v28 }
 0x4f6   :  { %4125 = vperm.xlu1 %5541, %v3810_v4   ;;  %4062 = vperm.xlu0 %5542, %v3789_v17   ;;  %v3805_v4 = vmul.f32 %v8641_v16, %v10622_v25  ;;  %v3832_v17 = vmul.f32 %v8701_v63, %v10623_v51 }
 0x4fa   :  { %4131 = vperm.xlu1 %5541, %v3812_v22   ;;  %4068 = vperm.xlu0 %5542, %v3791_v30   ;;  %v3807_v22 = vmul.f32 %v8641_v16, %v10624_v57  ;;  %v3834_v30 = vmul.f32 %v8701_v63, %v10625_v1 }
 0x4fe   :  { %4137 = vperm.xlu1 %5541, %v3814_v19   ;;  %4071 = vperm.xlu0 %5542, %v3792_v37   ;;  %v10627_v19 = vld [vmem:[#allocation175_spill] sm:$0xff] }
 0x4ff   :  { %v3836_v49 = vmul.f32 %v8701_v63, %v10627_v19  ;;  %v10628_v37 = vld [vmem:[#allocation39_spill] sm:$0xff] }
 0x500   :  { %v3811_v58 = vmul.f32 %v8641_v16, %v10628_v37 }
 0x502   :  { %4143 = vperm.xlu1 %5541, %v3816_v59   ;;  %4074 = vperm.xlu0 %5542, %v3793_v35   ;;  %v10629_v59 = vld [vmem:[#allocation163_spill] sm:$0xff]  ;;  %v10630_v35 = vld [vmem:[#allocation41_spill] sm:$0xff] }
 0x503   :  { %v3838_v53 = vmul.f32 %v8701_v63, %v10629_v59  ;;  %v3813_v33 = vmul.f32 %v8669_v15, %v10630_v35  ;;  %v10651_v59 = vld [vmem:[#allocation172_spill] sm:$0xff] }
 0x504   :  { %v10652_v35 = vld [vmem:[#allocation88_spill] sm:$0xff] }
 0x506   :  { %4149 = vperm.xlu1 %5541, %v3818_v31   ;;  %4077 = vperm.xlu0 %5542, %v3794_v27   ;;  %v10631_v31 = vld [vmem:[#allocation72_spill] sm:$0xff]  ;;  %v10632_v27 = vld [vmem:[#allocation43_spill] sm:$0xff] }
 0x507   :  { %v3840_v14 = vmul.f32 %v8701_v63, %v10631_v31  ;;  %v3815_v40 = vmul.f32 %v8669_v15, %v10632_v27  ;;  %v10653_v31 = vld [vmem:[#allocation154_spill] sm:$0xff] }
 0x50a   :  { %4155 = vperm.xlu1 %5541, %v3820_v42   ;;  %4080 = vperm.xlu0 %5542, %v3795_v11   ;;  %v10633_v42 = vld [vmem:[#allocation176_spill] sm:$0xff]  ;;  %v3817_v11 = vmul.f32 %v8669_v15, %v10634_v12  ;;  %v10656_v12 = vld [vmem:[#allocation90_spill] sm:$0xff] }
 0x50b   :  { %v3842_v16 = vmul.f32 %v8701_v63, %v10633_v42  ;;  %v10655_v42 = vld [vmem:[#allocation173_spill] sm:$0xff] }
 0x50e   :  { %4161 = vperm.xlu1 %5541, %v3822_v24   ;;  %4086 = vperm.xlu0 %5542, %v3797_v38   ;;  %v3844_v24 = vmul.f32 %v8701_v63, %v10635_v52  ;;  %v3819_v38 = vmul.f32 %v8669_v15, %v10636_v6  ;;  %v10657_v6 = vld [vmem:[#allocation61_spill] sm:$0xff] }
 0x512   :  { %4167 = vperm.xlu1 %5541, %v3824_v50   ;;  %4092 = vperm.xlu0 %5542, %v3799_v47   ;;  %v8737_v50 = vrot.slane %v8631_v26, %v10637_v23  ;;  %v10658_v23 = vld [vmem:[#allocation85_spill] sm:$0xff] }
 0x514   :  { %v3846_v47 = vmul.f32 %v8737_v50, %v10638_v56 }
 0x516   :  { %4173 = vperm.xlu1 %5541, %v3826_v55   ;;  %4098 = vperm.xlu0 %5542, %v3801_v44   ;;  %v3821_v55 = vmul.f32 %v8669_v15, %v10639_v34  ;;  %v3848_v44 = vmul.f32 %v8737_v50, %v10640_v2 }
 0x51a   :  { %4179 = vperm.xlu1 %5541, %v3828_v9   ;;  %4104 = vperm.xlu0 %5542, %v3803_v5   ;;  %v3823_v9 = vmul.f32 %v8669_v15, %v10641_v39  ;;  %v3850_v5 = vmul.f32 %v8737_v50, %v10642_v20 }
 0x51e   :  { %4185 = vperm.xlu1 %5541, %v3830_v41   ;;  %4110 = vperm.xlu0 %5542, %v3805_v4   ;;  %v10644_v41 = vld [vmem:[#allocation11_spill] sm:$0xff]  ;;  %v10645_v4 = vld [vmem:[#allocation168_spill] sm:$0xff] }
 0x51f   :  { %v3852_v25 = vmul.f32 %v8737_v50, %v10644_v41  ;;  %v3827_v51 = vmul.f32 %v8669_v15, %v10645_v4 }
 0x522   :  { %4191 = vperm.xlu1 %5541, %v3832_v17   ;;  %4116 = vperm.xlu0 %5542, %v3807_v22   ;;  %v10646_v17 = vld [vmem:[#allocation84_spill] sm:$0xff]  ;;  %v10647_v22 = vld [vmem:[#allocation55_spill] sm:$0xff] }
 0x523   :  { %v3854_v57 = vmul.f32 %v8737_v50, %v10646_v17  ;;  %v3829_v1 = vmul.f32 %v8701_v63, %v10647_v22 }
 0x526   :  { %4197 = vperm.xlu1 %5541, %v3834_v30   ;;  %4122 = vperm.xlu0 %5542, %v3809_v46   ;;  %v10648_v30 = vld [vmem:[#allocation79_spill] sm:$0xff]  ;;  %v10649_v46 = vld [vmem:[#allocation62_spill] sm:$0xff] }
 0x527   :  { %v3856_v8 = vmul.f32 %v8737_v50, %v10648_v30  ;;  %v3831_v19 = vmul.f32 %v8701_v63, %v10649_v46 }
 0x52a   :  { %4203 = vperm.xlu1 %5541, %v3836_v49   ;;  %4128 = vperm.xlu0 %5542, %v3811_v58   ;;  %v10650_v49 = vld [vmem:[#allocation12_spill] sm:$0xff] }
 0x52b   :  { %v3858_v15 = vmul.f32 %v8737_v50, %v10650_v49 }
 0x52e   :  { %4209 = vperm.xlu1 %5541, %v3838_v53   ;;  %4134 = vperm.xlu0 %5542, %v3813_v33   ;;  %v3833_v53 = vmul.f32 %v8701_v63, %v10651_v59  ;;  %v3860_v33 = vmul.f32 %v8737_v50, %v10652_v35  ;;  %v10667_v59 = vld [vmem:[#allocation74_spill] sm:$0xff]  ;;  %v10668_v35 = vld [vmem:[#allocation115_spill] sm:$0xff] }
 0x532   :  { %4215 = vperm.xlu1 %5541, %v3840_v14   ;;  %4140 = vperm.xlu0 %5542, %v3815_v40   ;;  %v8775_v14 = vrot.slane %v8631_v26, %v10653_v31 }
 0x534   :  { %v3864_v56 = vmul.f32 %v8775_v14, %v10658_v23 }
 0x536   :  { %4221 = vperm.xlu1 %5541, %v3842_v16   ;;  %4146 = vperm.xlu0 %5542, %v3817_v11   ;;  %v3835_v16 = vmul.f32 %v8701_v63, %v10655_v42  ;;  %v3862_v11 = vmul.f32 %v8775_v14, %v10656_v12 }
 0x53a   :  { %4227 = vperm.xlu1 %5541, %v3844_v24   ;;  %4152 = vperm.xlu0 %5542, %v3819_v38   ;;  %v3837_v38 = vmul.f32 %v8701_v63, %v10657_v6 }
 0x53e   :  { %4233 = vperm.xlu1 %5541, %v3846_v47   ;;  %4158 = vperm.xlu0 %5542, %v3821_v55   ;;  %v10659_v55 = vld [vmem:[#allocation63_spill] sm:$0xff] }
 0x53f   :  { %v3839_v2 = vmul.f32 %v8701_v63, %v10659_v55 }
 0x542   :  { %4239 = vperm.xlu1 %5541, %v3848_v44   ;;  %4164 = vperm.xlu0 %5542, %v3823_v9   ;;  %v10660_v44 = vld [vmem:[#allocation87_spill] sm:$0xff] }
 0x543   :  { %v3866_v39 = vmul.f32 %v8775_v14, %v10660_v44 }
 0x546   :  { %4245 = vperm.xlu1 %5541, %v3850_v5   ;;  %4170 = vperm.xlu0 %5542, %v3825_v48   ;;  %v10661_v5 = vld [vmem:[#allocation70_spill] sm:$0xff]  ;;  %v10662_v48 = vld [vmem:[#allocation89_spill] sm:$0xff] }
 0x547   :  { %v3841_v28 = vmul.f32 %v8701_v63, %v10661_v5  ;;  %v3868_v41 = vmul.f32 %v8775_v14, %v10662_v48 }
 0x54a   :  { %4251 = vperm.xlu1 %5541, %v3852_v25   ;;  %4176 = vperm.xlu0 %5542, %v3827_v51   ;;  %v10663_v51 = vld [vmem:[#allocation65_spill] sm:$0xff] }
 0x54b   :  { %v3843_v17 = vmul.f32 %v8701_v63, %v10663_v51 }
 0x54e   :  { %4257 = vperm.xlu1 %5541, %v3854_v57   ;;  %4182 = vperm.xlu0 %5542, %v3829_v1   ;;  %v10664_v57 = vld [vmem:[#allocation92_spill] sm:$0xff] }
 0x54f   :  { %v3870_v22 = vmul.f32 %v8775_v14, %v10664_v57 }
 0x552   :  { %4263 = vperm.xlu1 %5541, %v3856_v8   ;;  %4188 = vperm.xlu0 %5542, %v3831_v19   ;;  %v10665_v8 = vld [vmem:[#allocation165_spill] sm:$0xff] }
 0x553   :  { %v3845_v46 = vmul.f32 %v8737_v50, %v10665_v8  ;;  %v10666_v19 = vld [vmem:[#allocation109_spill] sm:$0xff] }
 0x554   :  { %v3872_v49 = vmul.f32 %v8775_v14, %v10666_v19 }
 0x555   :  { %v8765_v37 = vpop.permute.xlu1 %4065  ;;  %v8767_v58 = vpop.permute.xlu0 %4038 }
 0x556   :  { %4269 = vperm.xlu1 %5541, %v3858_v15   ;;  %4194 = vperm.xlu0 %5542, %v3833_v53   ;;  %v3847_v53 = vmul.f32 %v8737_v50, %v10667_v59 }
 0x559   :  { %v8777_v27 = vpop.permute.xlu1 %4083  ;;  %v8779_v40 = vpop.permute.xlu0 %4041 }
 0x55a   :  { %10654 = vst [vmem:[#allocation167_spill] sm:$0xff] %v8777_v27  ;;  %4275 = vperm.xlu1 %5541, %v3860_v33   ;;  %4200 = vperm.xlu0 %5542, %v3835_v16   ;;  %v3874_v33 = vmul.f32 %v8775_v14, %v10668_v35  ;;  %v10669_v16 = vld [vmem:[#allocation76_spill] sm:$0xff]  ;;  %v10689_v27 = vld [vmem:[#allocation138_spill] sm:$0xff] }
 0x55b   :  { %v3849_v12 = vmul.f32 %v8737_v50, %v10669_v16 }
 0x55d   :  { %v8785_v52 = vpop.permute.xlu1 %4089  ;;  %v8787_v24 = vpop.permute.xlu0 %4044 }
 0x55e   :  { %4281 = vperm.xlu1 %5541, %v3862_v11   ;;  %4206 = vperm.xlu0 %5542, %v3837_v38   ;;  %v10670_v11 = vld [vmem:[#allocation118_spill] sm:$0xff]  ;;  %v10671_v38 = vld [vmem:[#allocation155_spill] sm:$0xff] }
 0x55f   :  { %v3876_v6 = vmul.f32 %v8775_v14, %v10670_v11  ;;  %v8843_v23 = vrot.slane %v8631_v26, %v10671_v38  ;;  %v10680_v11 = vld [vmem:[#allocation139_spill] sm:$0xff] }
 0x561   :  { %v8793_v47 = vpop.permute.xlu1 %4095  ;;  %v8795_v34 = vpop.permute.xlu0 %4047 }
 0x562   :  { %4287 = vperm.xlu1 %5541, %v3864_v56   ;;  %4212 = vperm.xlu0 %5542, %v3839_v2   ;;  %v10672_v2 = vld [vmem:[#allocation78_spill] sm:$0xff] }
 0x563   :  { %v3851_v44 = vmul.f32 %v8737_v50, %v10672_v2 }
 0x565   :  { %v8801_v9 = vpop.permute.xlu1 %4101  ;;  %v8803_v20 = vpop.permute.xlu0 %4050 }
 0x566   :  { %4293 = vperm.xlu1 %5541, %v3866_v39   ;;  %4218 = vperm.xlu0 %5542, %v3841_v28   ;;  %v10673_v39 = vld [vmem:[#allocation114_spill] sm:$0xff] }
 0x567   :  { %v3878_v5 = vmul.f32 %v8843_v23, %v10673_v39 }
 0x569   :  { %v8809_v25 = vpop.permute.xlu1 %4107  ;;  %v8811_v4 = vpop.permute.xlu0 %4053 }
 0x56a   :  { %4299 = vperm.xlu1 %5541, %v3868_v41   ;;  %4224 = vperm.xlu0 %5542, %v3843_v17   ;;  %v10674_v41 = vld [vmem:[#allocation80_spill] sm:$0xff]  ;;  %v10675_v17 = vld [vmem:[#allocation117_spill] sm:$0xff] }
 0x56b   :  { %v3853_v51 = vmul.f32 %v8737_v50, %v10674_v41  ;;  %v3880_v57 = vmul.f32 %v8843_v23, %v10675_v17 }
 0x56d   :  { %v8817_v1 = vpop.permute.xlu1 %4113  ;;  %v8819_v30 = vpop.permute.xlu0 %4056 }
 0x56e   :  { %4305 = vperm.xlu1 %5541, %v3870_v22   ;;  %4230 = vperm.xlu0 %5542, %v3845_v46   ;;  %v10676_v22 = vld [vmem:[#allocation164_spill] sm:$0xff] }
 0x56f   :  { %v8863_v8 = vrot.slane %v8631_v26, %v10676_v22 }
 0x571   :  { %v8825_v15 = vpop.permute.xlu1 %4119  ;;  %v8827_v63 = vpop.permute.xlu0 %4059 }
 0x572   :  { %4311 = vperm.xlu1 %5541, %v3872_v49   ;;  %4236 = vperm.xlu0 %5542, %v3847_v53   ;;  %v10677_v49 = vld [vmem:[#allocation82_spill] sm:$0xff]  ;;  %v10678_v53 = vld [vmem:[#allocation137_spill] sm:$0xff] }
 0x573   :  { %v3855_v59 = vmul.f32 %v8737_v50, %v10677_v49  ;;  %v3893_v35 = vmul.f32 %v8863_v8, %v10678_v53 }
 0x575   :  { %v8833_v31 = vpop.permute.xlu1 %4125  ;;  %v8835_v42 = vpop.permute.xlu0 %4062 }
 0x576   :  { %4317 = vperm.xlu1 %5541, %v3874_v33   ;;  %4242 = vperm.xlu0 %5542, %v3849_v12   ;;  %v10679_v12 = vld [vmem:[#allocation77_spill] sm:$0xff] }
 0x577   :  { %v3857_v26 = vmul.f32 %v8737_v50, %v10679_v12  ;;  %v4507_v12 = vrot.slane %v8785_v52, %v10469_v29 }
 0x579   :  { %v8845_v56 = vpop.permute.xlu1 %4131  ;;  %v8847_v55 = vpop.permute.xlu0 %4068 }
 0x57a   :  { %4323 = vperm.xlu1 %5541, %v3876_v6   ;;  %4248 = vperm.xlu0 %5542, %v3851_v44   ;;  %v3895_v6 = vmul.f32 %v8863_v8, %v10680_v11  ;;  %v10682_v44 = vld [vmem:[#allocation16_spill] sm:$0xff] }
 0x57b   :  { %v3859_v39 = vmul.f32 %v8737_v50, %v10682_v44 }
 0x57d   :  { %v8853_v28 = vpop.permute.xlu1 %4137  ;;  %v8855_v48 = vpop.permute.xlu0 %4071 }
 0x57e   :  { %4329 = vperm.xlu1 %5541, %v3878_v5   ;;  %4254 = vperm.xlu0 %5542, %v3853_v51   ;;  %v10683_v5 = vld [vmem:[#allocation136_spill] sm:$0xff] }
 0x57f   :  { %v3897_v41 = vmul.f32 %v8863_v8, %v10683_v5 }
 0x581   :  { %v8865_v46 = vpop.permute.xlu1 %4143  ;;  %v8867_v19 = vpop.permute.xlu0 %4074 }
 0x582   :  { %4335 = vperm.xlu1 %5541, %v3880_v57   ;;  %4260 = vperm.xlu0 %5542, %v3855_v59   ;;  %v10685_v57 = vld [vmem:[#allocation86_spill] sm:$0xff]  ;;  %v5801_v59 = vld [vmem:[#allocation2 + $0x80] sm:$0xff] }
 0x583   :  { %v3861_v22 = vmul.f32 %v8775_v14, %v10685_v57 }
 0x585   :  { %v8873_v33 = vpop.permute.xlu1 %4149  ;;  %v8875_v16 = vpop.permute.xlu0 %4077 }
 0x586   :  { %4374 = vperm.xlu1 %5541, %v3893_v35   ;;  %4266 = vperm.xlu0 %5542, %v3857_v26   ;;  %v10686_v35 = vld [vmem:[#allocation182_spill] sm:$0xff] }
 0x587   :  { %v3898_v50 = vmul.f32 %v8863_v8, %v10686_v35  ;;  %v5802_v26 = vld [vmem:[#allocation2 + $0x88] sm:$0xff] }
 0x588   :  { %v5207_v11 = vmul.f32 %v5802_v26, %v8785_v52  ;;  %v3899_v52 = vmul.f32 %v8863_v8, %v10689_v27  ;;  %v4517_v26 = vrot.slane %v8793_v47, %v10473_v61  ;;  %v5805_v27 = vld [vmem:[#allocation2 + $0xa0] sm:$0xff] }
 0x589   :  { %v8881_v38 = vpop.permute.xlu1 %4155  ;;  %v8883_v2 = vpop.permute.xlu0 %4080 }
 0x58a   :  { %10681 = vst [vmem:[#allocation103_spill] sm:$0xff] %v8881_v38  ;;  %4380 = vperm.xlu1 %5541, %v3895_v6   ;;  %4272 = vperm.xlu0 %5542, %v3859_v39   ;;  %v10688_v39 = vld [vmem:[#allocation81_spill] sm:$0xff] }
 0x58b   :  { %v3863_v5 = vmul.f32 %v8775_v14, %v10688_v39 }
 0x58d   :  { %v8889_v51 = vpop.permute.xlu1 %4161  ;;  %v4087_v17 = vpop.permute.xlu0 %4086 }
 0x58e   :  { %10684 = vst [vmem:[#allocation169_spill] sm:$0xff] %v8889_v51  ;;  %4386 = vperm.xlu1 %5541, %v3897_v41   ;;  %v4503_v49 = vrot.slane %v4087_v17, %v10468_v7  ;;  %v5206_v53 = vmul.f32 %v5801_v59, %v4087_v17  ;;  %4278 = vperm.xlu0 %5542, %v3861_v22   ;;  %v5803_v22 = vld [vmem:[#allocation2 + $0x90] sm:$0xff] }
 0x590   :  { %v4508_v17 = vsel %vm691_vm0, %v4507_v12, %v4503_v49  ;;  %v5339_v57 = vadd.f32 %v5207_v11, %v5206_v53  ;;  %v10691_v49 = vld [vmem:[#allocation13_spill] sm:$0xff] }
 0x591   :  { %v8899_v6 = vpop.permute.xlu1 %4167  ;;  %v4093_v44 = vpop.permute.xlu0 %4092  ;;  %v3865_v53 = vmul.f32 %v8775_v14, %v10691_v49 }
 0x592   :  { %10687 = vst [vmem:[#allocation102_spill] sm:$0xff] %v8899_v6  ;;  %v4512_v41 = vrot.slane %v4093_v44, %v10474_v18  ;;  %4389 = vperm.xlu1 %5541, %v3898_v50   ;;  %v5208_v59 = vmul.f32 %v5803_v22, %v4093_v44  ;;  %4284 = vperm.xlu0 %5542, %v3863_v5   ;;  %v5804_v6 = vld [vmem:[#allocation2 + $0x98] sm:$0xff] }
 0x593   :  { %v5209_v39 = vmul.f32 %v5804_v6, %v8793_v47  ;;  %v4527_v6 = vrot.slane %v8801_v9, %v10480_v36 }
 0x594   :  { %v4513_v35 = vsel %vm698_vm1, %v4512_v41, %v4508_v17  ;;  %v5340_v51 = vadd.f32 %v5339_v57, %v5208_v59  ;;  %v10693_v17 = vld [vmem:[#allocation66_spill] sm:$0xff] }
 0x595   :  { %v8911_v38 = vpop.permute.xlu1 %4173  ;;  %v4099_v50 = vpop.permute.xlu0 %4098  ;;  %v4518_v11 = vsel %vm705_vm2, %v4517_v26, %v4513_v35  ;;  %v3900_v47 = vmul.f32 %v8863_v8, %v10693_v17  ;;  %v5806_v57 = vld [vmem:[#allocation2 + $0xa8] sm:$0xff]  ;;  %v10695_v35 = vld [vmem:[#allocation15_spill] sm:$0xff]  ;;  %v4537_v17 = vrot.slane %v8809_v25, %v10483_v3 }
 0x596   :  { %10690 = vst [vmem:[#allocation106_spill] sm:$0xff] %v8911_v38  ;;  %v4522_v12 = vrot.slane %v4099_v50, %v10478_v32  ;;  %4392 = vperm.xlu1 %5541, %v3899_v52   ;;  %v5341_v44 = vadd.f32 %v5340_v51, %v5209_v39  ;;  %v5210_v5 = vmul.f32 %v5805_v27, %v4099_v50  ;;  %v5814_v38 = vld [vmem:[#allocation2 + $0xc8] sm:$0xff] }
 0x597   :  { %4290 = vperm.xlu0 %5542, %v3865_v53   ;;  %v5211_v22 = vmul.f32 %v5806_v57, %v8801_v9  ;;  %v3867_v51 = vmul.f32 %v8775_v14, %v10695_v35  ;;  %v5807_v53 = vld [vmem:[#allocation2 + $0xb0] sm:$0xff]  ;;  %v5809_v57 = vld [vmem:[#allocation2 + $0xb8] sm:$0xff] }
 0x598   :  { %v4523_v41 = vsel %vm10692_vm15, %v4522_v12, %v4518_v11  ;;  %v5342_v59 = vadd.f32 %v5341_v44, %v5210_v5  ;;  %v5808_v11 = vld [vmem:[#allocation2 + $0x8] sm:$0xff]  ;;  %v10698_v44 = vld [vmem:[#allocation145_spill] sm:$0xff]  ;;  %vm10705_vm15 = vcmask 720512  }
 0x599   :  { %v8923_v49 = vpop.permute.xlu1 %4179  ;;  %v4105_v52 = vpop.permute.xlu0 %4104  ;;  %v4528_v39 = vsel %vm10696_vm8, %v4527_v6, %v4523_v41  ;;  %v5191_v27 = vmul.f32 %v5808_v11, %v8779_v40  ;;  %v3901_v5 = vmul.f32 %v8863_v8, %v10698_v44  ;;  %v5812_v11 = vld [vmem:[#allocation2 + $0xc0] sm:$0xff]  ;;  %vm10723_vm8 = vcmask 326912  }
 0x59a   :  { %10694 = vst [vmem:[#allocation107_spill] sm:$0xff] %v8923_v49  ;;  %v4532_v26 = vrot.slane %v4105_v52, %v10484_v45  ;;  %4395 = vperm.xlu1 %5541, %v3900_v47   ;;  %v5343_v50 = vadd.f32 %v5342_v59, %v5211_v22  ;;  %v5212_v12 = vmul.f32 %v5807_v53, %v4105_v52  ;;  %v10700_v22 = vld [vmem:[#allocation93_spill] sm:$0xff]  ;;  %v10702_v49 = vld [vmem:[#allocation142_spill] sm:$0xff] }
 0x59b   :  { %4296 = vperm.xlu0 %5542, %v3867_v51   ;;  %v5213_v47 = vmul.f32 %v5809_v57, %v8809_v25  ;;  %v3869_v59 = vmul.f32 %v8775_v14, %v10700_v22  ;;  %v5810_v52 = vld [vmem:[#allocation2] sm:$0xff]  ;;  %v5813_v57 = vld [vmem:[#allocation2 + $0x18] sm:$0xff] }
 0x59c   :  { %v4533_v9 = vsel %vm10697_vm4, %v4532_v26, %v4528_v39  ;;  %v5344_v35 = vadd.f32 %v5343_v50, %v5212_v12  ;;  %v5190_v51 = vmul.f32 %v5810_v52, %v8767_v58  ;;  %v5811_v26 = vld [vmem:[#allocation2 + $0x10] sm:$0xff]  ;;  %v3902_v52 = vmul.f32 %v8863_v8, %v10702_v49 }
 0x59d   :  { %v8936_v41 = vpop.permute.xlu1 %4185  ;;  %v4111_v6 = vpop.permute.xlu0 %4110  ;;  %v5192_v39 = vmul.f32 %v5811_v26, %v8787_v24  ;;  %v4538_v25 = vsel %vm733_vm6, %v4537_v17, %v4533_v9  ;;  %v4547_v26 = vrot.slane %v8817_v1, %v10487_v62  ;;  %v10703_v17 = vld [vmem:[#allocation96_spill] sm:$0xff]  ;;  %v5816_v49 = vld [vmem:[#allocation2 + $0xd0] sm:$0xff]  ;;  %vm10724_vm4 = vcmask 392512  }
 0x59e   :  { %10699 = vst [vmem:[#allocation171_spill] sm:$0xff] %v8936_v41  ;;  %v4542_v53 = vrot.slane %v4111_v6, %v10488_v10  ;;  %v5214_v44 = vmul.f32 %v5812_v11, %v4111_v6  ;;  %4398 = vperm.xlu1 %5541, %v3901_v5   ;;  %v5345_v50 = vadd.f32 %v5344_v35, %v5213_v47  ;;  %v5815_v35 = vld [vmem:[#allocation2 + $0x20] sm:$0xff] }
 0x59f   :  { %4302 = vperm.xlu0 %5542, %v3869_v59   ;;  %v5318_v12 = vadd.f32 %v5191_v27, %v5190_v51  ;;  %v5193_v41 = vmul.f32 %v5813_v57, %v8795_v34  ;;  %v5215_v6 = vmul.f32 %v5814_v38, %v8817_v1  ;;  %v3871_v27 = vmul.f32 %v8775_v14, %v10703_v17  ;;  %v5817_v38 = vld [vmem:[#allocation2 + $0x28] sm:$0xff]  ;;  %v10706_v17 = vld [vmem:[#allocation140_spill] sm:$0xff] }
 0x5a0   :  { %v4543_v22 = vsel %vm10701_vm7, %v4542_v53, %v4538_v25  ;;  %v5346_v5 = vadd.f32 %v5345_v50, %v5214_v44  ;;  %v5194_v59 = vmul.f32 %v5815_v35, %v8803_v20  ;;  %v5195_v44 = vmul.f32 %v5817_v38, %v8811_v4  ;;  %v5818_v35 = vld [vmem:[#allocation2 + $0xd8] sm:$0xff]  ;;  %vm10726_vm7 = vmmov %vm10723_vm8 }
 0x5a1   :  { %v8951_v11 = vpop.permute.xlu1 %4191  ;;  %v4117_v9 = vpop.permute.xlu0 %4116  ;;  %v5319_v47 = vadd.f32 %v5318_v12, %v5192_v39  ;;  %v4548_v25 = vsel %vm10704_vm3, %v4547_v26, %v4543_v22  ;;  %v3903_v39 = vmul.f32 %v8863_v8, %v10706_v17  ;;  %v4557_v12 = vrot.slane %v8825_v15, %v10494_v54  ;;  %v10707_v26 = vld [vmem:[#allocation100_spill] sm:$0xff] }
 0x5a2   :  { %v4552_v51 = vrot.slane %v4117_v9, %v10495_v43  ;;  %v5216_v53 = vmul.f32 %v5816_v49, %v4117_v9  ;;  %4401 = vperm.xlu1 %5541, %v3902_v52   ;;  %v5347_v57 = vadd.f32 %v5346_v5, %v5215_v6  ;;  %v5217_v9 = vmul.f32 %v5818_v35, %v8825_v15  ;;  %v5819_v5 = vld [vmem:[#allocation2 + $0x30] sm:$0xff] }
 0x5a3   :  { %4308 = vperm.xlu0 %5542, %v3871_v27   ;;  %v5320_v1 = vadd.f32 %v5319_v47, %v5193_v41  ;;  %v3873_v41 = vmul.f32 %v8775_v14, %v10707_v26  ;;  %v5196_v27 = vmul.f32 %v5819_v5, %v8819_v30  ;;  %v10708_v26 = vld [vmem:[#allocation51_spill] sm:$0xff]  ;;  %v5822_v5 = vld [vmem:[#allocation2 + $0xe8] sm:$0xff]  ;;  %vm10727_vm3 = vcmask 458112  }
 0x5a4   :  { %v4553_v50 = vsel %vm10705_vm15, %v4552_v51, %v4548_v25  ;;  %v5348_v52 = vadd.f32 %v5347_v57, %v5216_v53  ;;  %v5820_v51 = vld [vmem:[#allocation2 + $0xe0] sm:$0xff]  ;;  %v5821_v53 = vld [vmem:[#allocation2 + $0x38] sm:$0xff]  ;;  %vm10728_vm15 = vmmov %vm10724_vm4 }
 0x5a5   :  { %v8965_v49 = vpop.permute.xlu1 %4197  ;;  %v4123_v22 = vpop.permute.xlu0 %4122  ;;  %v5321_v6 = vadd.f32 %v5320_v1, %v5194_v59  ;;  %v4558_v38 = vsel %vm761_vm10, %v4557_v12, %v4553_v50  ;;  %v5197_v57 = vmul.f32 %v5821_v53, %v8827_v63  ;;  %v3904_v59 = vmul.f32 %v8863_v8, %v10708_v26  ;;  %v10710_v12 = vld [vmem:[#allocation105_spill] sm:$0xff] }
 0x5a6   :  { %v4562_v47 = vrot.slane %v4123_v22, %v10500_v21  ;;  %v5218_v25 = vmul.f32 %v5820_v51, %v4123_v22  ;;  %4404 = vperm.xlu1 %5541, %v3903_v39   ;;  %v5349_v17 = vadd.f32 %v5348_v52, %v5217_v9  ;;  %v4567_v1 = vrot.slane %v8833_v31, %v10502_v60  ;;  %v5823_v52 = vld [vmem:[#allocation2 + $0x40] sm:$0xff] }
 0x5a7   :  { %4314 = vperm.xlu0 %5542, %v3873_v41   ;;  %v5322_v15 = vadd.f32 %v5321_v6, %v5195_v44  ;;  %v5219_v22 = vmul.f32 %v5822_v5, %v8833_v31  ;;  %v3875_v44 = vmul.f32 %v8775_v14, %v10710_v12  ;;  %v5198_v41 = vmul.f32 %v5823_v52, %v8835_v42  ;;  %v10711_v14 = vld [vmem:[#allocation147_spill] sm:$0xff] }
 0x5a8   :  { %v4563_v35 = vsel %vm768_vm11, %v4562_v47, %v4558_v38  ;;  %v5350_v39 = vadd.f32 %v5349_v17, %v5218_v25  ;;  %v5824_v47 = vld [vmem:[#allocation2 + $0xf0] sm:$0xff]  ;;  %v4577_v53 = vrot.slane %v8845_v56, %v10512_v13 }
 0x5a9   :  { %v8979_v51 = vpop.permute.xlu1 %4203  ;;  %v4129_v50 = vpop.permute.xlu0 %4128  ;;  %v5323_v9 = vadd.f32 %v5322_v15, %v5196_v27  ;;  %v4568_v31 = vsel %vm775_vm12, %v4567_v1, %v4563_v35  ;;  %v3905_v27 = vmul.f32 %v8863_v8, %v10711_v14  ;;  %v5825_v15 = vld [vmem:[#allocation2 + $0xf8] sm:$0xff] }
 0x5aa   :  { %10709 = vst [vmem:[#allocation110_spill] sm:$0xff] %v8979_v51  ;;  %v4572_v6 = vrot.slane %v4129_v50, %v10510_v0  ;;  %v5220_v38 = vmul.f32 %v5824_v47, %v4129_v50  ;;  %4407 = vperm.xlu1 %5541, %v3904_v59   ;;  %v5351_v25 = vadd.f32 %v5350_v39, %v5219_v22  ;;  %v10713_v47 = vld [vmem:[#allocation99_spill] sm:$0xff]  ;;  %v10714_v39 = vld [vmem:[#allocation157_spill] sm:$0xff] }
 0x5ab   :  { %4320 = vperm.xlu0 %5542, %v3875_v44   ;;  %v5324_v17 = vadd.f32 %v5323_v9, %v5197_v57  ;;  %v5221_v5 = vmul.f32 %v5825_v15, %v8845_v56  ;;  %v3877_v35 = vmul.f32 %v8843_v23, %v10713_v47  ;;  %v4586_v57 = vrot.slane %v8853_v28, %v10469_v29  ;;  %v5826_v9 = vld [vmem:[#allocation2 + $0x108] sm:$0xff]  ;;  %v10718_v47 = vld [vmem:[#allocation108_spill] sm:$0xff]  ;;  %v5833_v51 = vld [vmem:[#allocation2 + $0x60] sm:$0xff] }
 0x5ac   :  { %v4573_v26 = vsel %vm782_vm13, %v4572_v6, %v4568_v31  ;;  %v5352_v59 = vadd.f32 %v5351_v25, %v5220_v38  ;;  %v3906_v56 = vmul.f32 %v8863_v8, %v10714_v39  ;;  %v4428_v44 = vrot.slane %v8779_v40, %v10469_v29 }
 0x5ad   :  { %v8993_v12 = vsel %vm789_vm14, %v4577_v53, %v4573_v26  ;;  %v8995_v50 = vpop.permute.xlu1 %4209  ;;  %v4135_v52 = vpop.permute.xlu0 %4134  ;;  %v5325_v1 = vadd.f32 %v5324_v17, %v5198_v41  ;;  %v5223_v6 = vmul.f32 %v5826_v9, %v8853_v28  ;;  %v5827_v53 = vld [vmem:[#allocation2 + $0x100] sm:$0xff]  ;;  %v5828_v41 = vld [vmem:[#allocation2 + $0x48] sm:$0xff]  ;;  %v10715_v26 = vld [vmem:[#allocation104_spill] sm:$0xff]  ;;  %v4424_v40 = vrot.slane %v8767_v58, %v10468_v7 }
 0x5ae   :  { %10712 = vst [vmem:[#allocation111_spill] sm:$0xff] %v8995_v50  ;;  %v4582_v22 = vrot.slane %v4135_v52, %v10468_v7  ;;  %4410 = vperm.xlu1 %5541, %v3905_v27   ;;  %v9007_v38 = vadd.f32 %v5352_v59, %v5221_v5  ;;  %v5222_v31 = vmul.f32 %v5827_v53, %v4135_v52  ;;  %v10716_v27 = vld [vmem:[#allocation174_spill] sm:$0xff]  ;;  %v5830_v53 = vld [vmem:[#allocation2 + $0x110] sm:$0xff] }
 0x5af   :  { %4326 = vperm.xlu0 %5542, %v3877_v35   ;;  %v5199_v25 = vmul.f32 %v5828_v41, %v8765_v37  ;;  %v3879_v14 = vmul.f32 %v8843_v23, %v10715_v26  ;;  %v3907_v15 = vmul.f32 %v8863_v8, %v10716_v27  ;;  %v4433_v28 = vrot.slane %v8787_v24, %v10474_v18  ;;  %v10720_v26 = vld [vmem:[#allocation181_spill] sm:$0xff] }
 0x5b0   :  { %v4587_v17 = vsel %vm691_vm0, %v4586_v57, %v4582_v22  ;;  %v5360_v5 = vadd.f32 %v5223_v6, %v5222_v31  ;;  %v3881_v35 = vmul.f32 %v8843_v23, %v10718_v47  ;;  %v5829_v22 = vld [vmem:[#allocation2 + $0x50] sm:$0xff]  ;;  %v4429_v58 = vsel %vm691_vm0, %v4428_v44, %v4424_v40  ;;  %v10719_v6 = vld [vmem:[#allocation148_spill] sm:$0xff] }
 0x5b1   :  { %v9019_v59 = vpop.permute.xlu1 %4215  ;;  %v4141_v52 = vpop.permute.xlu0 %4140  ;;  %v5326_v57 = vadd.f32 %v5325_v1, %v5199_v25  ;;  %v5200_v39 = vmul.f32 %v5829_v22, %v8847_v55  ;;  %v4596_v24 = vrot.slane %v8865_v46, %v10473_v61  ;;  %v3908_v31 = vmul.f32 %v8863_v8, %v10719_v6  ;;  %v5831_v25 = vld [vmem:[#allocation2 + $0x58] sm:$0xff] }
 0x5b2   :  { %10717 = vst [vmem:[#allocation14_spill] sm:$0xff] %v9019_v59  ;;  %v4591_v9 = vrot.slane %v4141_v52, %v10474_v18  ;;  %v5224_v41 = vmul.f32 %v5830_v53, %v4141_v52  ;;  %4413 = vperm.xlu1 %5541, %v3906_v56   ;;  %v3894_v1 = vmul.f32 %v8863_v8, %v10720_v26  ;;  %v5832_v47 = vld [vmem:[#allocation2 + $0x118] sm:$0xff]  ;;  %v10722_v26 = vld [vmem:[#allocation122_spill] sm:$0xff] }
 0x5b3   :  { %4332 = vperm.xlu0 %5542, %v3879_v14   ;;  %v5201_v27 = vmul.f32 %v5831_v25, %v8855_v48  ;;  %v5225_v22 = vmul.f32 %v5832_v47, %v8865_v46  ;;  %v4434_v44 = vsel %vm698_vm1, %v4433_v28, %v4429_v58  ;;  %v10721_v6 = vld [vmem:[#allocation64_spill] sm:$0xff]  ;;  %v9043_v50 = vmul.f32 %v8843_v23, %v10722_v26  ;;  %v5836_v47 = vld [vmem:[#allocation2 + $0x128] sm:$0xff]  ;;  %v5838_v26 = vld [vmem:[#allocation2 + $0x130] sm:$0xff] }
 0x5b4   :  { %v4592_v56 = vsel %vm698_vm1, %v4591_v9, %v4587_v17  ;;  %v5361_v52 = vadd.f32 %v5360_v5, %v5224_v41  ;;  %v3896_v59 = vmul.f32 %v8863_v8, %v10721_v6  ;;  %v5327_v25 = vadd.f32 %v5326_v57, %v5200_v39  ;;  %v5834_v41 = vld [vmem:[#allocation2 + $0x120] sm:$0xff]  ;;  %v5835_v39 = vld [vmem:[#allocation2 + $0x68] sm:$0xff] }
 0x5b5   :  { %v9036_v40 = vpop.permute.xlu1 %4221  ;;  %v4597_v14 = vsel %vm705_vm2, %v4596_v24, %v4592_v56  ;;  %v4147_v53 = vpop.permute.xlu0 %4146  ;;  %v5202_v46 = vmul.f32 %v5833_v51, %v8867_v19  ;;  %v4438_v28 = vrot.slane %v8795_v34, %v10473_v61  ;;  %v4443_v9 = vrot.slane %v8803_v20, %v10478_v32 }
 0x5b6   :  { %v5362_v17 = vadd.f32 %v5361_v52, %v5225_v22  ;;  %v4601_v5 = vrot.slane %v4147_v53, %v10478_v32  ;;  %4416 = vperm.xlu1 %5541, %v3907_v15   ;;  %v4606_v8 = vrot.slane %v8873_v33, %v10480_v36  ;;  %v5226_v58 = vmul.f32 %v5834_v41, %v4147_v53 }
 0x5b7   :  { %4338 = vperm.xlu0 %5542, %v3881_v35   ;;  %v4448_v57 = vrot.slane %v8811_v4, %v10480_v36  ;;  %v5328_v51 = vadd.f32 %v5327_v25, %v5201_v27  ;;  %v5203_v24 = vmul.f32 %v5835_v39, %v8875_v16  ;;  %v4453_v34 = vrot.slane %v8819_v30, %v10484_v45  ;;  %v5837_v4 = vld [vmem:[#allocation2 + $0x70] sm:$0xff] }
 0x5b8   :  { %v4602_v15 = vsel %vm10723_vm8, %v4601_v5, %v4597_v14  ;;  %v5227_v20 = vmul.f32 %v5836_v47, %v8873_v33  ;;  %v5363_v22 = vadd.f32 %v5362_v17, %v5226_v58  ;;  %v5204_v27 = vmul.f32 %v5837_v4, %v8883_v2  ;;  %v10725_v25 = vld [vmem:[#allocation103_spill] sm:$0xff]  ;;  %vm10729_vm8 = vmmov %vm10727_vm3  ;;  %v5841_v4 = vld [vmem:[#allocation2 + $0x78] sm:$0xff] }
 0x5b9   :  { %v9060_v56 = vpop.permute.xlu1 %4227  ;;  %v4607_v35 = vsel %vm10724_vm4, %v4606_v8, %v4602_v15  ;;  %v4153_v52 = vpop.permute.xlu0 %4152  ;;  %v5329_v53 = vadd.f32 %v5328_v51, %v5202_v46  ;;  %v4439_v30 = vsel %vm705_vm2, %v4438_v28, %v4434_v44  ;;  %v4458_v33 = vrot.slane %v8827_v63, %v10483_v3  ;;  %v5839_v51 = vld [vmem:[#allocation2 + $0x138] sm:$0xff] }
 0x5ba   :  { %v4611_v6 = vrot.slane %v4153_v52, %v10484_v45  ;;  %v5228_v14 = vmul.f32 %v5838_v26, %v4153_v52  ;;  %4419 = vperm.xlu1 %5541, %v3908_v31   ;;  %v4616_v17 = vrot.slane %v10725_v25, %v10483_v3  ;;  %v5364_v5 = vadd.f32 %v5363_v22, %v5227_v20  ;;  %v10731_v52 = vld [vmem:[#allocation125_spill] sm:$0xff] }
 0x5bb   :  { %4377 = vperm.xlu0 %5542, %v3894_v1   ;;  %v4444_v46 = vsel %vm10726_vm7, %v4443_v9, %v4439_v30  ;;  %v4463_v8 = vrot.slane %v8835_v42, %v10488_v10  ;;  %v5330_v41 = vadd.f32 %v5329_v53, %v5203_v24  ;;  %v5229_v44 = vmul.f32 %v5839_v51, %v10725_v25  ;;  %v5840_v42 = vld [vmem:[#allocation2 + $0x140] sm:$0xff] }
 0x5bc   :  { %v4612_v58 = vsel %vm10727_vm3, %v4611_v6, %v4607_v35  ;;  %v4449_v31 = vsel %vm10728_vm15, %v4448_v57, %v4444_v46  ;;  %v5365_v28 = vadd.f32 %v5364_v5, %v5228_v14  ;;  %v10730_v57 = vld [vmem:[#allocation169_spill] sm:$0xff]  ;;  %v3883_v53 = vmul.f32 %v8843_v23, %v10731_v52  ;;  %v10732_v6 = vld [vmem:[#allocation167_spill] sm:$0xff] }
 0x5bd   :  { %v9076_v63 = vpop.permute.xlu1 %4233  ;;  %v4617_v39 = vsel %vm733_vm6, %v4616_v17, %v4612_v58  ;;  %v4159_v15 = vpop.permute.xlu0 %4158  ;;  %v4454_v1 = vsel %vm10729_vm8, %v4453_v34, %v4449_v31  ;;  %v5331_v9 = vadd.f32 %v5330_v41, %v5204_v27  ;;  %v4626_v22 = vrot.slane %v10730_v57, %v10487_v62  ;;  %v5843_v58 = vld [vmem:[#allocation2 + $0x150] sm:$0xff]  ;;  %v5845_v52 = vld [vmem:[#allocation2 + $0x160] sm:$0xff] }
 0x5be   :  { %v4621_v47 = vrot.slane %v4159_v15, %v10488_v10  ;;  %v5230_v24 = vmul.f32 %v5840_v42, %v4159_v15  ;;  %v4459_v20 = vsel %vm733_vm6, %v4458_v33, %v4454_v1  ;;  %v5366_v35 = vadd.f32 %v5365_v28, %v5229_v44  ;;  %v5842_v33 = vld [vmem:[#allocation2 + $0x148] sm:$0xff]  ;;  %v5844_v42 = vld [vmem:[#allocation2 + $0x158] sm:$0xff] }
 0x5bf   :  { %4383 = vperm.xlu0 %5542, %v3896_v59   ;;  %v5205_v26 = vmul.f32 %v5841_v4, %v10732_v6  ;;  %vm10733_vm4 = vcmask 589312   ;;  %v4473_v27 = vrot.slane %v8847_v55, %v10495_v43  ;;  %v4468_v30 = vrot.slane %v8765_v37, %v10487_v62  ;;  %v10737_v44 = vld [vmem:[#allocation102_spill] sm:$0xff] }
 0x5c0   :  { %v4464_v34 = vsel %vm10733_vm4, %v4463_v8, %v4459_v20  ;;  %vm10734_vm7 = vmmov %vm10733_vm4  ;;  %v5231_v25 = vmul.f32 %v5842_v33, %v10730_v57  ;;  %v5367_v59 = vadd.f32 %v5366_v35, %v5230_v24  ;;  %vm10735_vm3 = vcmask 654912  }
 0x5c1   :  { %v4622_v14 = vsel %vm10734_vm7, %v4621_v47, %v4617_v39  ;;  %v9094_v17 = vpop.permute.xlu1 %4239  ;;  %v4165_v46 = vpop.permute.xlu0 %4164  ;;  %v4478_v8 = vrot.slane %v8855_v48, %v10494_v54  ;;  %v5332_v41 = vadd.f32 %v5331_v9, %v5205_v26  ;;  %vm10736_vm15 = vmmov %vm10735_vm3  ;;  %v4483_v37 = vrot.slane %v8867_v19, %v10500_v21 }
 0x5c2   :  { %v4627_v5 = vsel %vm10735_vm3, %v4626_v22, %v4622_v14  ;;  %v4631_v55 = vrot.slane %v4165_v46, %v10495_v43  ;;  %v5232_v31 = vmul.f32 %v5843_v58, %v4165_v46  ;;  %v4469_v51 = vsel %vm10736_vm15, %v4468_v30, %v4464_v34  ;;  %v5846_v46 = vld [vmem:[#allocation2 + $0x168] sm:$0xff] }
 0x5c3   :  { %v4636_v28 = vrot.slane %v10737_v44, %v10494_v54  ;;  %v5368_v39 = vadd.f32 %v5367_v59, %v5231_v25  ;;  %4341 = vperm.xlu0 %5542, %v9043_v50   ;;  %vm10738_vm8 = vcmask 720512   ;;  %v4488_v48 = vrot.slane %v8875_v16, %v10502_v60  ;;  %v10741_v25 = vld [vmem:[#allocation124_spill] sm:$0xff] }
 0x5c4   :  { %v4474_v15 = vsel %vm10738_vm8, %v4473_v27, %v4469_v51  ;;  %v5354_v1 = vrot.slane %v9007_v38, 4  ;;  %vm10739_vm4 = vmmov %vm10738_vm8  ;;  %v4493_v47 = vrot.slane %v8883_v2, %v10510_v0  ;;  %v5233_v19 = vmul.f32 %v5844_v42, %v10737_v44  ;;  %v10740_v2 = vld [vmem:[#allocation106_spill] sm:$0xff]  ;;  %v5847_v44 = vld [vmem:[#allocation2 + $0x170] sm:$0xff] }
 0x5c5   :  { %v4632_v9 = vsel %vm10739_vm4, %v4631_v55, %v4627_v5  ;;  %v5369_v24 = vadd.f32 %v5368_v39, %v5232_v31  ;;  %v9114_v20 = vpop.permute.xlu1 %4245  ;;  %v4171_v57 = vpop.permute.xlu0 %4170  ;;  %v4479_v22 = vsel %vm761_vm10, %v4478_v8, %v4474_v15  ;;  %v5333_v35 = vrot.slane %v5332_v41, 4  ;;  %v10742_v39 = vld [vmem:[#allocation107_spill] sm:$0xff] }
 0x5c6   :  { %v4637_v50 = vsel %vm761_vm10, %v4636_v28, %v4632_v9  ;;  %v4641_v16 = vrot.slane %v4171_v57, %v10500_v21  ;;  %v5234_v4 = vmul.f32 %v5845_v52, %v4171_v57  ;;  %v4484_v26 = vsel %vm768_vm11, %v4483_v37, %v4479_v22  ;;  %v10743_v42 = vld [vmem:[#allocation127_spill] sm:$0xff] }
 0x5c7   :  { %v4646_v34 = vrot.slane %v10740_v2, %v10502_v60  ;;  %v5370_v27 = vadd.f32 %v5369_v24, %v5233_v19  ;;  %4344 = vperm.xlu0 %5542, %v3883_v53   ;;  %v4489_v14 = vsel %vm775_vm12, %v4488_v48, %v4484_v26  ;;  %v5355_v30 = vadd.f32 %v5354_v1, %v9007_v38  ;;  %v5848_v24 = vld [vmem:[#allocation2 + $0x178] sm:$0xff]  ;;  %v10745_v52 = vld [vmem:[#allocation171_spill] sm:$0xff] }
 0x5c8   :  { %v4642_v33 = vsel %vm768_vm11, %v4641_v16, %v4637_v50  ;;  %v3884_v59 = vmul.f32 %v8843_v23, %v10741_v25  ;;  %v4494_v5 = vsel %vm782_vm13, %v4493_v47, %v4489_v14  ;;  %v5235_v8 = vmul.f32 %v5846_v46, %v10740_v2 }
 0x5c9   :  { %v5371_v55 = vadd.f32 %v5370_v27, %v5234_v4  ;;  %v9129_v58 = vpop.permute.xlu1 %4251  ;;  %v4647_v31 = vsel %vm775_vm12, %v4646_v34, %v4642_v33  ;;  %v4177_v53 = vpop.permute.xlu0 %4176  ;;  %v4498_v51 = vrot.slane %v10732_v6, %v10512_v13  ;;  %v5334_v38 = vadd.f32 %v5333_v35, %v5332_v41  ;;  %v5849_v34 = vld [vmem:[#allocation2 + $0x188] sm:$0xff] }
 0x5ca   :  { %v4651_v37 = vrot.slane %v4177_v53, %v10510_v0  ;;  %v5236_v28 = vmul.f32 %v5847_v44, %v4177_v53  ;;  %v4656_v15 = vrot.slane %v10742_v39, %v10512_v13  ;;  %v5356_v9 = vrot.slane %v5355_v30, 2  ;;  %v5851_v44 = vld [vmem:[#allocation2 + $0x190] sm:$0xff] }
 0x5cb   :  { %v5372_v48 = vadd.f32 %v5371_v55, %v5235_v8  ;;  %4347 = vperm.xlu0 %5542, %v3884_v59   ;;  %v4499_v1 = vsel %vm789_vm14, %v4498_v51, %v4494_v5  ;;  %v3885_v19 = vmul.f32 %v8843_v23, %v10743_v42  ;;  %v5237_v6 = vmul.f32 %v5848_v24, %v10742_v39  ;;  %v10748_v24 = vld [vmem:[#allocation129_spill] sm:$0xff] }
 0x5cc   :  { %v4652_v47 = vsel %vm782_vm13, %v4651_v37, %v4647_v31  ;;  %vm10744_vm7 = vcmask 1041409   ;;  %v5335_v16 = vrot.slane %v5334_v38, 2  ;;  %v4665_v4 = vrot.slane %v10745_v52, %v10469_v29  ;;  %v10747_v31 = vld [vmem:[#allocation133_spill] sm:$0xff] }
 0x5cd   :  { %v5053_v41 = vsel %vm10744_vm7, %v8993_v12, %v4499_v1  ;;  %v4657_v50 = vsel %vm789_vm14, %v4656_v15, %v4652_v47  ;;  %v5373_v57 = vadd.f32 %v5372_v48, %v5236_v28  ;;  %v9145_v22 = vpop.permute.xlu1 %4257  ;;  %v4183_v35 = vpop.permute.xlu0 %4182  ;;  %vm10746_vm3 = vcmask 1042434   ;;  %v5850_v12 = vld [vmem:[#allocation2 + $0x180] sm:$0xff]  ;;  %vm10754_vm4 = vmmov %vm10744_vm7 }
 0x5ce   :  { %v9150_v26 = vsel %vm10746_vm3, %v4657_v50, %v5053_v41  ;;  %v4661_v2 = vrot.slane %v4183_v35, %v10468_v7  ;;  %v5239_v27 = vmul.f32 %v5849_v34, %v10745_v52  ;;  %v5238_v33 = vmul.f32 %v5850_v12, %v4183_v35  ;;  %v5853_v52 = vld [vmem:[#allocation2 + $0x1a0] sm:$0xff]  ;;  %v10749_v34 = vld [vmem:[#allocation130_spill] sm:$0xff] }
 0x5cf   :  { %v5374_v14 = vadd.f32 %v5373_v57, %v5237_v6  ;;  %4350 = vperm.xlu0 %5542, %v3885_v19   ;;  %v5357_v25 = vadd.f32 %v5356_v9, %v5355_v30  ;;  %v3886_v53 = vmul.f32 %v8843_v23, %v10747_v31  ;;  %v5336_v51 = vadd.f32 %v5335_v16, %v5334_v38  ;;  %v5852_v30 = vld [vmem:[#allocation2 + $0x198] sm:$0xff] }
 0x5d0   :  { %v4666_v59 = vsel %vm691_vm0, %v4665_v4, %v4661_v2  ;;  %v5381_v46 = vadd.f32 %v5239_v27, %v5238_v33  ;;  %v4675_v39 = vrot.slane %v8951_v11, %v10473_v61  ;;  %v5241_v48 = vmul.f32 %v5852_v30, %v8951_v11  ;;  %v10753_v30 = vld [vmem:[#allocation131_spill] sm:$0xff] }
 0x5d1   :  { %v5375_v5 = vrot.slane %v5374_v14, 4  ;;  %v9155_v8 = vpop.permute.xlu1 %4263  ;;  %v4189_v55 = vpop.permute.xlu0 %4188  ;;  %v5358_v1 = vrot.slane %v5357_v25, 1  ;;  %v3887_v6 = vmul.f32 %v8843_v23, %v10748_v24  ;;  %v5337_v41 = vrot.slane %v5336_v51, 1 }
 0x5d2   :  { %v4670_v37 = vrot.slane %v4189_v55, %v10474_v18  ;;  %v5240_v28 = vmul.f32 %v5851_v44, %v4189_v55  ;;  %v4685_v4 = vrot.slane %v8965_v49, %v10480_v36  ;;  %v3888_v27 = vmul.f32 %v8843_v23, %v10749_v34 }
 0x5d3   :  { %v5376_v15 = vadd.f32 %v5375_v5, %v5374_v14  ;;  %4353 = vperm.xlu0 %5542, %v3886_v53   ;;  %v5359_v2 = vadd.f32 %v5358_v1, %v5357_v25  ;;  %v5854_v14 = vld [vmem:[#allocation2 + $0x1a8] sm:$0xff]  ;;  %vm10750_vm15 = vcmask 326912   ;;  %v5338_v55 = vadd.f32 %v5337_v41, %v5336_v51 }
 0x5d4   :  { %v4671_v9 = vsel %vm698_vm1, %v4670_v37, %v4666_v59  ;;  %v5382_v47 = vadd.f32 %v5381_v46, %v5240_v28  ;;  %v5243_v12 = vmul.f32 %v5854_v14, %v8965_v49  ;;  %vm10751_vm8 = vcmask 392512   ;;  %v5855_v28 = vld [vmem:[#allocation2 + $0x1b0] sm:$0xff] }
 0x5d5   :  { %v5377_v42 = vrot.slane %v5376_v15, 2  ;;  %v9164_v19 = vpop.permute.xlu1 %4269  ;;  %v4676_v38 = vsel %vm705_vm2, %v4675_v39, %v4671_v9  ;;  %v4195_v57 = vpop.permute.xlu0 %4194  ;;  %v5494_v1 = vsel %vm10754_vm4, %v5359_v2, %v5338_v55  ;;  %v5856_v9 = vld [vmem:[#allocation2 + $0x1b8] sm:$0xff]  ;;  %vm10755_vm7 = vcmask 458112  }
 0x5d6   :  { %v5383_v50 = vadd.f32 %v5382_v47, %v5241_v48  ;;  %v4680_v16 = vrot.slane %v4195_v57, %v10478_v32  ;;  %v5242_v11 = vmul.f32 %v5853_v52, %v4195_v57  ;;  %v3889_v48 = vmul.f32 %v8843_v23, %v10753_v30  ;;  %v10756_v52 = vld [vmem:[#allocation111_spill] sm:$0xff] }
 0x5d7   :  { %v5378_v35 = vadd.f32 %v5377_v42, %v5376_v15  ;;  %4356 = vperm.xlu0 %5542, %v3887_v6   ;;  %v10752_v15 = vld [vmem:[#allocation110_spill] sm:$0xff]  ;;  %vm10761_vm4 = vcmask 720512  }
 0x5d8   :  { %v4681_v59 = vsel %vm10750_vm15, %v4680_v16, %v4676_v38  ;;  %v5384_v5 = vadd.f32 %v5383_v50, %v5242_v11  ;;  %v4695_v49 = vrot.slane %v10752_v15, %v10483_v3  ;;  %v5245_v51 = vmul.f32 %v5856_v9, %v10752_v15 }
 0x5d9   :  { %v5379_v33 = vrot.slane %v5378_v35, 1  ;;  %v9176_v46 = vpop.permute.xlu1 %4275  ;;  %v4686_v31 = vsel %vm10751_vm8, %v4685_v4, %v4681_v59  ;;  %v4201_v53 = vpop.permute.xlu0 %4200  ;;  %v4705_v11 = vrot.slane %v10756_v52, %v10487_v62  ;;  %v5858_v4 = vld [vmem:[#allocation2 + $0x1c8] sm:$0xff]  ;;  %vm10757_vm15 = vcmask 589312  }
 0x5da   :  { %v5385_v44 = vadd.f32 %v5384_v5, %v5243_v12  ;;  %v4690_v25 = vrot.slane %v4201_v53, %v10484_v45  ;;  %v5244_v39 = vmul.f32 %v5855_v28, %v4201_v53  ;;  %v5247_v2 = vmul.f32 %v5858_v4, %v10756_v52  ;;  %v10758_v12 = vld [vmem:[#allocation132_spill] sm:$0xff]  ;;  %v5859_v53 = vld [vmem:[#allocation2 + $0x1d0] sm:$0xff]  ;;  %v10763_v4 = vld [vmem:[#allocation141_spill] sm:$0xff] }
 0x5db   :  { %v5380_v37 = vadd.f32 %v5379_v33, %v5378_v35  ;;  %4359 = vperm.xlu0 %5542, %v3888_v27   ;;  %v5857_v35 = vld [vmem:[#allocation2 + $0x1c0] sm:$0xff]  ;;  %v3890_v33 = vmul.f32 %v8843_v23, %v10758_v12  ;;  %vm10759_vm8 = vcmask 654912   ;;  %v5860_v28 = vld [vmem:[#allocation2 + $0x1d8] sm:$0xff] }
 0x5dc   :  { %v4691_v47 = vsel %vm10755_vm7, %v4690_v25, %v4686_v31  ;;  %v5386_v42 = vadd.f32 %v5385_v44, %v5244_v39  ;;  %v10760_v44 = vld [vmem:[#allocation14_spill] sm:$0xff]  ;;  %vm10764_vm7 = vcmask 326912  }
 0x5dd   :  { %v9187_v38 = vpop.permute.xlu1 %4281  ;;  %v9190_v24 = vsel %vm10746_vm3, %v5380_v37, %v5494_v1  ;;  %v4696_v6 = vsel %vm733_vm6, %v4695_v49, %v4691_v47  ;;  %v4207_v41 = vpop.permute.xlu0 %4206  ;;  %v4715_v25 = vrot.slane %v10760_v44, %v10494_v54  ;;  %v5249_v39 = vmul.f32 %v5860_v28, %v10760_v44 }
 0x5de   :  { %v5387_v50 = vadd.f32 %v5386_v42, %v5245_v51  ;;  %v4700_v57 = vrot.slane %v4207_v41, %v10488_v10  ;;  %v5246_v16 = vmul.f32 %v5857_v35, %v4207_v41  ;;  %vm10765_vm3 = vcmask 392512  }
 0x5df   :  { %4362 = vperm.xlu0 %5542, %v3889_v48   ;;  %v10762_v48 = vld [vmem:[#allocation128_spill] sm:$0xff] }
 0x5e0   :  { %v4701_v34 = vsel %vm10757_vm15, %v4700_v57, %v4696_v6  ;;  %v5388_v27 = vadd.f32 %v5387_v50, %v5246_v16  ;;  %v3891_v1 = vmul.f32 %v8843_v23, %v10762_v48  ;;  %v5861_v6 = vld [vmem:[#allocation2 + $0x1e0] sm:$0xff]  ;;  %v4725_v50 = vrot.slane %v9036_v40, %v10502_v60  ;;  %v5862_v57 = vld [vmem:[#allocation2 + $0x1e8] sm:$0xff] }
 0x5e1   :  { %v9198_v14 = vpop.permute.xlu1 %4287  ;;  %v4706_v59 = vsel %vm10759_vm8, %v4705_v11, %v4701_v34  ;;  %v4213_v5 = vpop.permute.xlu0 %4212  ;;  %v5251_v35 = vmul.f32 %v5862_v57, %v9036_v40  ;;  %v4735_v40 = vrot.slane %v9060_v56, %v10512_v13  ;;  %v5867_v57 = vld [vmem:[#allocation2 + $0x210] sm:$0xff]  ;;  %vm10766_vm15 = vcmask 458112  }
 0x5e2   :  { %v5389_v55 = vadd.f32 %v5388_v27, %v5247_v2  ;;  %v4710_v31 = vrot.slane %v4213_v5, %v10495_v43  ;;  %v5248_v37 = vmul.f32 %v5859_v53, %v4213_v5  ;;  %v3892_v2 = vmul.f32 %v8843_v23, %v10763_v4 }
 0x5e3   :  { %4365 = vperm.xlu0 %5542, %v3890_v33   ;;  %v4744_v23 = vrot.slane %v9076_v63, %v10469_v29  ;;  %vm10767_vm8 = vcmask 589312  }
 0x5e4   :  { %v4711_v15 = vsel %vm10761_vm4, %v4710_v31, %v4706_v59  ;;  %v5390_v49 = vadd.f32 %v5389_v55, %v5248_v37  ;;  %v5863_v59 = vld [vmem:[#allocation2 + $0x1f0] sm:$0xff]  ;;  %v5864_v55 = vld [vmem:[#allocation2 + $0x1f8] sm:$0xff]  ;;  %vm10768_vm4 = vcmask 654912  }
 0x5e5   :  { %v9208_v30 = vpop.permute.xlu1 %4293  ;;  %v4716_v9 = vsel %vm761_vm10, %v4715_v25, %v4711_v15  ;;  %v4219_v51 = vpop.permute.xlu0 %4218  ;;  %v5253_v31 = vmul.f32 %v5864_v55, %v9060_v56  ;;  %v5865_v25 = vld [vmem:[#allocation2 + $0x208] sm:$0xff]  ;;  %v5869_v55 = vld [vmem:[#allocation2 + $0x220] sm:$0xff] }
 0x5e6   :  { %v5391_v47 = vadd.f32 %v5390_v49, %v5249_v39  ;;  %v4720_v42 = vrot.slane %v4219_v51, %v10500_v21  ;;  %v5250_v41 = vmul.f32 %v5861_v6, %v4219_v51  ;;  %v5255_v28 = vmul.f32 %v5865_v25, %v9076_v63 }
 0x5e7   :  { %4368 = vperm.xlu0 %5542, %v3891_v1   ;;  %v5866_v1 = vld [vmem:[#allocation2 + $0x200] sm:$0xff] }
 0x5e8   :  { %v4721_v16 = vsel %vm768_vm11, %v4720_v42, %v4716_v9  ;;  %v5392_v52 = vadd.f32 %v5391_v47, %v5250_v41 }
 0x5e9   :  { %v9218_v11 = vpop.permute.xlu1 %4299  ;;  %v4726_v34 = vsel %vm775_vm12, %v4725_v50, %v4721_v16  ;;  %v4225_v27 = vpop.permute.xlu0 %4224  ;;  %v5868_v16 = vld [vmem:[#allocation2 + $0x218] sm:$0xff] }
 0x5ea   :  { %v5393_v12 = vadd.f32 %v5392_v52, %v5251_v35  ;;  %v4730_v33 = vrot.slane %v4225_v27, %v10510_v0  ;;  %v5252_v5 = vmul.f32 %v5863_v59, %v4225_v27  ;;  %v5257_v52 = vmul.f32 %v5868_v16, %v9094_v17 }
 0x5eb   :  { %4371 = vperm.xlu0 %5542, %v3892_v2  }
 0x5ec   :  { %v4731_v53 = vsel %vm782_vm13, %v4730_v33, %v4726_v34  ;;  %v5394_v37 = vadd.f32 %v5393_v12, %v5252_v5 }
 0x5ed   :  { %v9228_v44 = vpop.permute.xlu1 %4305  ;;  %v4736_v39 = vsel %vm789_vm14, %v4735_v40, %v4731_v53  ;;  %v4231_v15 = vpop.permute.xlu0 %4230  ;;  %v4764_v53 = vrot.slane %v9114_v20, %v10480_v36 }
 0x5ee   :  { %v9236_v49 = vsel %vm1348_vm5, %v4736_v39, %v9150_v26  ;;  %v5395_v48 = vadd.f32 %v5394_v37, %v5253_v31  ;;  %v4740_v56 = vrot.slane %v4231_v15, %v10468_v7  ;;  %v5254_v9 = vmul.f32 %v5866_v1, %v4231_v15  ;;  %v5870_v37 = vld [vmem:[#allocation2 + $0x228] sm:$0xff] }
 0x5ef   :  { %v4754_v26 = vrot.slane %v9094_v17, %v10473_v61  ;;  %v5259_v17 = vmul.f32 %v5870_v37, %v9114_v20 }
 0x5f0   :  { %v5396_v51 = vrot.slane %v5395_v48, 4  ;;  %v4745_v47 = vsel %vm691_vm0, %v4744_v23, %v4740_v56  ;;  %v5402_v42 = vadd.f32 %v5255_v28, %v5254_v9  ;;  %v5871_v9 = vld [vmem:[#allocation2 + $0x230] sm:$0xff] }
 0x5f1   :  { %v9240_v6 = vpop.permute.xlu1 %4311  ;;  %v4237_v41 = vpop.permute.xlu0 %4236 }
 0x5f2   :  { %v5397_v63 = vadd.f32 %v5396_v51, %v5395_v48  ;;  %v4749_v50 = vrot.slane %v4237_v41, %v10474_v18  ;;  %v5256_v35 = vmul.f32 %v5867_v57, %v4237_v41 }
 0x5f4   :  { %v5398_v4 = vrot.slane %v5397_v63, 2  ;;  %v4750_v2 = vsel %vm698_vm1, %v4749_v50, %v4745_v47  ;;  %v5403_v34 = vadd.f32 %v5402_v42, %v5256_v35  ;;  %v4774_v47 = vrot.slane %v9129_v58, %v10483_v3  ;;  %v5872_v42 = vld [vmem:[#allocation2 + $0x238] sm:$0xff] }
 0x5f5   :  { %v4755_v27 = vsel %vm705_vm2, %v4754_v26, %v4750_v2  ;;  %v4243_v12 = vpop.permute.xlu0 %4242  ;;  %v9248_v59 = vpop.permute.xlu1 %4317  ;;  %v5261_v41 = vmul.f32 %v5872_v42, %v9129_v58  ;;  %v4784_v58 = vrot.slane %v9145_v22, %v10487_v62 }
 0x5f6   :  { %v5399_v33 = vadd.f32 %v5398_v4, %v5397_v63  ;;  %v5404_v5 = vadd.f32 %v5403_v34, %v5257_v52  ;;  %v4759_v40 = vrot.slane %v4243_v12, %v10478_v32  ;;  %v5258_v31 = vmul.f32 %v5869_v55, %v4243_v12  ;;  %v5873_v4 = vld [vmem:[#allocation2 + $0x240] sm:$0xff]  ;;  %v5874_v34 = vld [vmem:[#allocation2 + $0x248] sm:$0xff] }
 0x5f8   :  { %v5400_v23 = vrot.slane %v5399_v33, 1  ;;  %v4760_v25 = vsel %vm10764_vm7, %v4759_v40, %v4755_v27  ;;  %v5405_v28 = vadd.f32 %v5404_v5, %v5258_v31  ;;  %v5263_v27 = vmul.f32 %v5874_v34, %v9145_v22 }
 0x5f9   :  { %v4765_v39 = vsel %vm10765_vm3, %v4764_v53, %v4760_v25  ;;  %v4249_v15 = vpop.permute.xlu0 %4248  ;;  %v9260_v20 = vpop.permute.xlu1 %4323  ;;  %v5875_v53 = vld [vmem:[#allocation2 + $0x250] sm:$0xff] }
 0x5fa   :  { %v5401_v48 = vadd.f32 %v5400_v23, %v5399_v33  ;;  %v5406_v56 = vadd.f32 %v5405_v28, %v5259_v17  ;;  %v4769_v1 = vrot.slane %v4249_v15, %v10484_v45  ;;  %v5260_v51 = vmul.f32 %v5871_v9, %v4249_v15  ;;  %v5876_v23 = vld [vmem:[#allocation2 + $0x258] sm:$0xff] }
 0x5fb   :  { %v4794_v17 = vrot.slane %v9155_v8, %v10494_v54  ;;  %v5265_v25 = vmul.f32 %v5876_v23, %v9155_v8 }
 0x5fc   :  { %v4770_v63 = vsel %vm10766_vm15, %v4769_v1, %v4765_v39  ;;  %v5407_v50 = vadd.f32 %v5406_v56, %v5260_v51  ;;  %v9265_v57 = vsel %vm1348_vm5, %v5401_v48, %v9190_v24  ;;  %vm10769_vm5 = vcmask 720512   ;;  %v5877_v1 = vld [vmem:[#allocation2 + $0x260] sm:$0xff] }
 0x5fd   :  { %v4775_v35 = vsel %vm733_vm6, %v4774_v47, %v4770_v63  ;;  %v4255_v26 = vpop.permute.xlu0 %4254  ;;  %v9274_v40 = vpop.permute.xlu1 %4329  ;;  %v4804_v51 = vrot.slane %v9164_v19, %v10502_v60  ;;  %v5878_v47 = vld [vmem:[#allocation2 + $0x268] sm:$0xff] }
 0x5fe   :  { %v5408_v16 = vadd.f32 %v5407_v50, %v5261_v41  ;;  %v4779_v52 = vrot.slane %v4255_v26, %v10488_v10  ;;  %v5262_v2 = vmul.f32 %v5873_v4, %v4255_v26  ;;  %v5267_v42 = vmul.f32 %v5878_v47, %v9164_v19 }
 0x600   :  { %v4780_v12 = vsel %vm10767_vm8, %v4779_v52, %v4775_v35  ;;  %v5409_v33 = vadd.f32 %v5408_v16, %v5262_v2  ;;  %v5879_v52 = vld [vmem:[#allocation2 + $0x270] sm:$0xff]  ;;  %v4814_v2 = vrot.slane %v9176_v46, %v10512_v13 }
 0x601   :  { %v4785_v24 = vsel %vm10768_vm4, %v4784_v58, %v4780_v12  ;;  %v4261_v5 = vpop.permute.xlu0 %4260  ;;  %v9286_v41 = vpop.permute.xlu1 %4335  ;;  %v5880_v58 = vld [vmem:[#allocation2 + $0x278] sm:$0xff] }
 0x602   :  { %v5410_v55 = vadd.f32 %v5409_v33, %v5263_v27  ;;  %v4789_v31 = vrot.slane %v4261_v5, %v10495_v43  ;;  %v5264_v37 = vmul.f32 %v5875_v53, %v4261_v5  ;;  %v5269_v34 = vmul.f32 %v5880_v58, %v9176_v46 }
 0x604   :  { %v4790_v22 = vsel %vm10769_vm5, %v4789_v31, %v4785_v24  ;;  %v5411_v28 = vadd.f32 %v5410_v55, %v5264_v37  ;;  %v4823_v24 = vrot.slane %v9187_v38, %v10469_v29 }
 0x605   :  { %v4795_v39 = vsel %vm761_vm10, %v4794_v17, %v4790_v22  ;;  %v4267_v15 = vpop.permute.xlu0 %4266  ;;  %v9298_v5 = vpop.permute.xlu1 %4374  ;;  %v4833_v22 = vrot.slane %v9198_v14, %v10473_v61 }
 0x606   :  { %v5412_v48 = vadd.f32 %v5411_v28, %v5265_v25  ;;  %v4799_v56 = vrot.slane %v4267_v15, %v10500_v21  ;;  %v5266_v9 = vmul.f32 %v5877_v1, %v4267_v15 }
 0x608   :  { %v4800_v8 = vsel %vm768_vm11, %v4799_v56, %v4795_v39  ;;  %v5413_v63 = vadd.f32 %v5412_v48, %v5266_v9  ;;  %v4843_v9 = vrot.slane %v9208_v30, %v10480_v36 }
 0x609   :  { %v4805_v50 = vsel %vm775_vm12, %v4804_v51, %v4800_v8  ;;  %v4273_v35 = vpop.permute.xlu0 %4272  ;;  %v9309_v28 = vpop.permute.xlu1 %4380 }
 0x60a   :  { %v5414_v26 = vadd.f32 %v5413_v63, %v5267_v42  ;;  %v4809_v16 = vrot.slane %v4273_v35, %v10510_v0  ;;  %v5268_v4 = vmul.f32 %v5879_v52, %v4273_v35 }
 0x60c   :  { %v4810_v19 = vsel %vm782_vm13, %v4809_v16, %v4805_v50  ;;  %v5415_v27 = vadd.f32 %v5414_v26, %v5268_v4  ;;  %v4853_v26 = vrot.slane %v9218_v11, %v10483_v3 }
 0x60d   :  { %v4815_v12 = vsel %vm789_vm14, %v4814_v2, %v4810_v19  ;;  %v4279_v33 = vpop.permute.xlu0 %4278  ;;  %v9318_v50 = vpop.permute.xlu1 %4386  ;;  %v5881_v19 = vld [vmem:[#allocation2 + $0x280] sm:$0xff] }
 0x60e   :  { %v5416_v55 = vadd.f32 %v5415_v27, %v5269_v34  ;;  %v4819_v31 = vrot.slane %v4279_v33, %v10468_v7  ;;  %v9303_v53 = vsel %vm1350_vm9, %v4815_v12, %v9236_v49  ;;  %v4863_v34 = vrot.slane %v9228_v44, %v10487_v62 }
 0x60f   :  { %v5270_v27 = vmul.f32 %v5881_v19, %v4279_v33 }
 0x610   :  { %v5417_v37 = vrot.slane %v5416_v55, 4  ;;  %v4824_v46 = vsel %vm691_vm0, %v4823_v24, %v4819_v31 }
 0x611   :  { %v4285_v17 = vpop.permute.xlu0 %4284  ;;  %v9332_v12 = vpop.permute.xlu1 %4389 }
 0x612   :  { %v5418_v23 = vadd.f32 %v5417_v37, %v5416_v55  ;;  %v4828_v25 = vrot.slane %v4285_v17, %v10474_v18  ;;  %v5882_v55 = vld [vmem:[#allocation2 + $0x288] sm:$0xff]  ;;  %v5883_v37 = vld [vmem:[#allocation2 + $0x290] sm:$0xff] }
 0x613   :  { %v5271_v31 = vmul.f32 %v5882_v55, %v9187_v38  ;;  %v5886_v55 = vld [vmem:[#allocation2 + $0x2a8] sm:$0xff] }
 0x614   :  { %v5419_v39 = vrot.slane %v5418_v23, 2  ;;  %v4829_v15 = vsel %vm698_vm1, %v4828_v25, %v4824_v46 }
 0x615   :  { %v4834_v48 = vsel %vm705_vm2, %v4833_v22, %v4829_v15  ;;  %v4873_v22 = vrot.slane %v9240_v6, %v10494_v54  ;;  %v5423_v33 = vadd.f32 %v5271_v31, %v5270_v27  ;;  %v9347_v38 = vpop.permute.xlu1 %4392  ;;  %v5275_v31 = vmul.f32 %v5886_v55, %v9208_v30  ;;  %v5890_v30 = vld [vmem:[#allocation2 + $0x380] sm:$0xff]  ;;  %v5894_v55 = vld [vmem:[#allocation2 + $0x2c8] sm:$0xff] }
 0x616   :  { %v4291_v56 = vpop.permute.xlu0 %4290  ;;  %v5420_v49 = vadd.f32 %v5419_v39, %v5418_v23 }
 0x617   :  { %v4838_v1 = vrot.slane %v4291_v56, %v10478_v32 }
 0x618   :  { %v5421_v51 = vrot.slane %v5420_v49, 1 }
 0x619   :  { %v4839_v47 = vsel %vm10764_vm7, %v4838_v1, %v4834_v48  ;;  %v5884_v1 = vld [vmem:[#allocation2 + $0x298] sm:$0xff] }
 0x61a   :  { %v4844_v42 = vsel %vm10765_vm3, %v4843_v9, %v4839_v47  ;;  %v4297_v8 = vpop.permute.xlu0 %4296  ;;  %v5422_v63 = vadd.f32 %v5421_v51, %v5420_v49  ;;  %v5273_v9 = vmul.f32 %v5884_v1, %v9198_v14  ;;  %v4883_v51 = vrot.slane %v9248_v59, %v10502_v60  ;;  %v5889_v1 = vld [vmem:[#allocation2 + $0x2c0] sm:$0xff] }
 0x61b   :  { %v4848_v35 = vrot.slane %v4297_v8, %v10484_v45 }
 0x61c   :  { %v9326_v52 = vsel %vm1350_vm9, %v5422_v63, %v9265_v57  ;;  %v5272_v57 = vmul.f32 %v5883_v37, %v4285_v17  ;;  %vm10770_vm9 = vmmov %vm10768_vm4  ;;  %v5885_v63 = vld [vmem:[#allocation2 + $0x2a0] sm:$0xff] }
 0x61d   :  { %v4849_v16 = vsel %vm10766_vm15, %v4848_v35, %v4844_v42  ;;  %vm10771_vm4 = vmmov %vm10769_vm5  ;;  %v5274_v35 = vmul.f32 %v5885_v63, %v4291_v56  ;;  %vm10772_vm5 = vcmask 1045509   ;;  %v5892_v63 = vld [vmem:[#allocation2 + $0x390] sm:$0xff] }
 0x61e   :  { %v4854_v4 = vsel %vm733_vm6, %v4853_v26, %v4849_v16  ;;  %v4303_v2 = vpop.permute.xlu0 %4302  ;;  %v5424_v15 = vadd.f32 %v5423_v33, %v5272_v57  ;;  %v5887_v57 = vld [vmem:[#allocation2 + $0x2b0] sm:$0xff] }
 0x61f   :  { %v4858_v58 = vrot.slane %v4303_v2, %v10488_v10 }
 0x620   :  { %v5425_v42 = vadd.f32 %v5424_v15, %v5273_v9  ;;  %v5888_v15 = vld [vmem:[#allocation2 + $0x2b8] sm:$0xff]  ;;  %v5278_v9 = vmul.f32 %v5889_v1, %v4303_v2  ;;  %v5279_v2 = vmul.f32 %v5894_v55, %v9228_v44 }
 0x621   :  { %v4859_v24 = vsel %vm10767_vm8, %v4858_v58, %v4854_v4  ;;  %v4893_v58 = vrot.slane %v9260_v20, %v10512_v13  ;;  %v5900_v55 = vld [vmem:[#allocation2 + $0x2d8] sm:$0xff] }
 0x622   :  { %v4864_v46 = vsel %vm10770_vm9, %v4863_v34, %v4859_v24  ;;  %v9337_v23 = vpop.permute.xlu0 %4308  ;;  %v9362_v34 = vpop.permute.xlu1 %4395  ;;  %v5426_v19 = vadd.f32 %v5425_v42, %v5274_v35  ;;  %v5304_v35 = vmul.f32 %v5892_v63, %v9309_v28 }
 0x623   :  { %v4868_v25 = vrot.slane %v9337_v23, %v10495_v43 }
 0x624   :  { %v5427_v37 = vadd.f32 %v5426_v19, %v5275_v31  ;;  %v5893_v19 = vld [vmem:[#allocation2 + $0x398] sm:$0xff] }
 0x625   :  { %v4869_v39 = vsel %vm10771_vm4, %v4868_v25, %v4864_v46  ;;  %v5276_v46 = vmul.f32 %v5887_v57, %v4297_v8  ;;  %v5891_v8 = vld [vmem:[#allocation2 + $0x388] sm:$0xff] }
 0x626   :  { %v4874_v48 = vsel %vm761_vm10, %v4873_v22, %v4869_v39  ;;  %v9345_v49 = vpop.permute.xlu0 %4314  ;;  %v9375_v22 = vpop.permute.xlu1 %4398 }
 0x627   :  { %v4878_v17 = vrot.slane %v9345_v49, %v10500_v21  ;;  %v5428_v33 = vadd.f32 %v5427_v37, %v5276_v46  ;;  %v5895_v37 = vld [vmem:[#allocation2 + $0x3a0] sm:$0xff] }
 0x628   :  { %v5306_v57 = vmul.f32 %v5895_v37, %v9318_v50 }
 0x629   :  { %v4879_v47 = vsel %vm768_vm11, %v4878_v17, %v4874_v48  ;;  %v5277_v48 = vmul.f32 %v5888_v15, %v9218_v11 }
 0x62a   :  { %v4884_v26 = vsel %vm775_vm12, %v4883_v51, %v4879_v47  ;;  %v9356_v16 = vpop.permute.xlu0 %4320  ;;  %v9380_v17 = vpop.permute.xlu1 %4401  ;;  %v5302_v47 = vmul.f32 %v5890_v30, %v9298_v5 }
 0x62b   :  { %v4888_v4 = vrot.slane %v9356_v16, %v10510_v0 }
 0x62d   :  { %v4889_v14 = vsel %vm782_vm13, %v4888_v4, %v4884_v26 }
 0x62e   :  { %v4894_v27 = vsel %vm789_vm14, %v4893_v58, %v4889_v14  ;;  %v9366_v24 = vpop.permute.xlu0 %4326  ;;  %v9384_v14 = vpop.permute.xlu1 %4404 }
 0x62f   :  { %v9370_v56 = vsel %vm10772_vm5, %v4894_v27, %v9303_v53  ;;  %v5429_v53 = vadd.f32 %v5428_v33, %v5277_v48  ;;  %v4977_v33 = vrot.slane %v9298_v5, %v10468_v7  ;;  %v5896_v48 = vld [vmem:[#allocation2 + $0x2d0] sm:$0xff]  ;;  %vm10776_vm5 = vmmov %vm10767_vm8 }
 0x631   :  { %v5430_v4 = vadd.f32 %v5429_v53, %v5278_v9  ;;  %v5280_v53 = vmul.f32 %v5896_v48, %v9337_v23  ;;  %v5897_v9 = vld [vmem:[#allocation2 + $0x3a8] sm:$0xff] }
 0x632   :  { %v9373_v25 = vpop.permute.xlu0 %4332  ;;  %v5307_v30 = vmul.f32 %v5897_v9, %v9332_v12  ;;  %v9400_v63 = vpop.permute.xlu1 %4407  ;;  %v5904_v9 = vld [vmem:[#allocation2 + $0x2e0] sm:$0xff] }
 0x633   :  { %v5431_v15 = vadd.f32 %v5430_v4, %v5279_v2  ;;  %v5899_v4 = vld [vmem:[#allocation2 + $0x3b8] sm:$0xff]  ;;  %v4996_v2 = vrot.slane %v9318_v50, %v10478_v32 }
 0x635   :  { %v5432_v23 = vadd.f32 %v5431_v15, %v5280_v53  ;;  %v5903_v15 = vld [vmem:[#allocation2 + $0x308] sm:$0xff] }
 0x636   :  { %v9377_v39 = vpop.permute.xlu0 %4338  ;;  %v5287_v48 = vmul.f32 %v5903_v15, %v9274_v40  ;;  %v9417_v50 = vpop.permute.xlu1 %4410 }
 0x63a   :  { %v4378_v51 = vpop.permute.xlu0 %4377  ;;  %v9432_v15 = vpop.permute.xlu1 %4413 }
 0x63b   :  { %v5303_v42 = vmul.f32 %v5891_v8, %v4378_v51  ;;  %v4981_v31 = vrot.slane %v4378_v51, %v10469_v29  ;;  %v4986_v8 = vrot.slane %v9309_v28, %v10474_v18 }
 0x63d   :  { %v5465_v26 = vadd.f32 %v5303_v42, %v5302_v47  ;;  %v4982_v44 = vsel %vm691_vm0, %v4981_v31, %v4977_v33  ;;  %v5898_v42 = vld [vmem:[#allocation2 + $0x3b0] sm:$0xff]  ;;  %v5901_v31 = vld [vmem:[#allocation2 + $0x3c0] sm:$0xff] }
 0x63e   :  { %v4384_v58 = vpop.permute.xlu0 %4383  ;;  %v5308_v5 = vmul.f32 %v5898_v42, %v9347_v38  ;;  %v5310_v37 = vmul.f32 %v5901_v31, %v9375_v22 }
 0x63f   :  { %v5466_v11 = vadd.f32 %v5465_v26, %v5304_v35  ;;  %v5305_v27 = vmul.f32 %v5893_v19, %v4384_v58  ;;  %v4991_v51 = vrot.slane %v4384_v58, %v10473_v61  ;;  %v4987_v19 = vsel %vm698_vm1, %v4986_v8, %v4982_v44 }
 0x640   :  { %v5281_v58 = vmul.f32 %v5900_v55, %v9240_v6 }
 0x641   :  { %v5467_v46 = vadd.f32 %v5466_v11, %v5305_v27  ;;  %v5309_v11 = vmul.f32 %v5899_v4, %v9362_v34  ;;  %v4992_v28 = vsel %vm705_vm2, %v4991_v51, %v4987_v19  ;;  %v5906_v51 = vld [vmem:[#allocation2 + $0x310] sm:$0xff] }
 0x642   :  { %v9392_v1 = vpop.permute.xlu0 %4341  ;;  %v5433_v53 = vadd.f32 %v5432_v23, %v5281_v58  ;;  %v5288_v8 = vmul.f32 %v5906_v51, %v9373_v25  ;;  %v4997_v42 = vsel %vm10764_vm7, %v4996_v2, %v4992_v28  ;;  %v5907_v23 = vld [vmem:[#allocation2 + $0x3d0] sm:$0xff]  ;;  %v5006_v58 = vrot.slane %v9347_v38, %v10484_v45  ;;  %v5908_v28 = vld [vmem:[#allocation2 + $0x2e8] sm:$0xff]  ;;  %v5912_v51 = vld [vmem:[#allocation2 + $0x320] sm:$0xff] }
 0x643   :  { %v5468_v47 = vadd.f32 %v5467_v46, %v5306_v57  ;;  %v5902_v57 = vld [vmem:[#allocation2 + $0x300] sm:$0xff]  ;;  %v5312_v4 = vmul.f32 %v5907_v23, %v9384_v14  ;;  %v5283_v2 = vmul.f32 %v5908_v28, %v9248_v59  ;;  %v5911_v38 = vld [vmem:[#allocation2 + $0x2f0] sm:$0xff]  ;;  %v5016_v23 = vrot.slane %v9375_v22, %v10488_v10 }
 0x644   :  { %v5286_v46 = vmul.f32 %v5902_v57, %v9366_v24  ;;  %v5021_v22 = vrot.slane %v9380_v17, %v10487_v62 }
 0x645   :  { %v5469_v35 = vadd.f32 %v5468_v47, %v5307_v30  ;;  %v5282_v30 = vmul.f32 %v5904_v9, %v9345_v49  ;;  %v5905_v47 = vld [vmem:[#allocation2 + $0x3c8] sm:$0xff] }
 0x646   :  { %v9402_v26 = vpop.permute.xlu0 %4344  ;;  %v5311_v44 = vmul.f32 %v5905_v47, %v9380_v17  ;;  %v5444_v49 = vadd.f32 %v5287_v48, %v5286_v46 }
 0x647   :  { %v5470_v27 = vadd.f32 %v5469_v35, %v5308_v5  ;;  %v5001_v35 = vrot.slane %v9332_v12, %v10480_v36  ;;  %v5434_v19 = vadd.f32 %v5433_v53, %v5282_v30  ;;  %v5011_v53 = vrot.slane %v9362_v34, %v10483_v3  ;;  %v5914_v34 = vld [vmem:[#allocation2 + $0x328] sm:$0xff] }
 0x648   :  { %v5445_v31 = vadd.f32 %v5444_v49, %v5288_v8  ;;  %v5284_v30 = vmul.f32 %v5911_v38, %v9356_v16  ;;  %v5290_v8 = vmul.f32 %v5912_v51, %v9377_v39 }
 0x649   :  { %v5471_v33 = vadd.f32 %v5470_v27, %v5309_v11  ;;  %v5002_v27 = vsel %vm10765_vm3, %v5001_v35, %v4997_v42  ;;  %v5435_v9 = vadd.f32 %v5434_v19, %v5283_v2  ;;  %v5913_v42 = vld [vmem:[#allocation2 + $0x3e0] sm:$0xff]  ;;  %v4898_v19 = vrot.slane %v9366_v24, %v10468_v7  ;;  %v5916_v2 = vld [vmem:[#allocation2 + $0x3e8] sm:$0xff] }
 0x64a   :  { %v9414_v6 = vpop.permute.xlu0 %4347  ;;  %v5007_v48 = vsel %vm10766_vm15, %v5006_v58, %v5002_v27  ;;  %v9450_v27 = vpop.permute.xlu1 %4416  ;;  %v4902_v24 = vrot.slane %v9274_v40, %v10469_v29  ;;  %v5920_v40 = vld [vmem:[#allocation2 + $0x3f0] sm:$0xff] }
 0x64b   :  { %v5472_v5 = vadd.f32 %v5471_v33, %v5310_v37  ;;  %v5909_v37 = vld [vmem:[#allocation2 + $0x3d8] sm:$0xff]  ;;  %v5012_v35 = vsel %vm733_vm6, %v5011_v53, %v5007_v48  ;;  %v5436_v49 = vadd.f32 %v5435_v9, %v5284_v30  ;;  %v5026_v9 = vrot.slane %v9384_v14, %v10495_v43 }
 0x64c   :  { %v5313_v12 = vmul.f32 %v5909_v37, %v9400_v63  ;;  %v5910_v33 = vld [vmem:[#allocation2 + $0x318] sm:$0xff]  ;;  %v5315_v37 = vmul.f32 %v5916_v2, %v9432_v15  ;;  %v5316_v51 = vmul.f32 %v5920_v40, %v9450_v27  ;;  %v4917_v14 = vrot.slane %v9377_v39, %v10478_v32 }
 0x64d   :  { %v5473_v11 = vadd.f32 %v5472_v5, %v5311_v44  ;;  %v5289_v46 = vmul.f32 %v5910_v33, %v9286_v41  ;;  %v5314_v5 = vmul.f32 %v5913_v42, %v9417_v50  ;;  %v5917_v33 = vld [vmem:[#allocation2 + $0x2f8] sm:$0xff]  ;;  %v5036_v39 = vrot.slane %v9417_v50, %v10500_v21 }
 0x64e   :  { %v9425_v55 = vpop.permute.xlu0 %4350  ;;  %v5285_v7 = vmul.f32 %v5917_v33, %v9260_v20  ;;  %v5918_v48 = vld [vmem:[#allocation2 + $0x338] sm:$0xff]  ;;  %v5919_v20 = vld [vmem:[#allocation2 + $0x340] sm:$0xff] }
 0x64f   :  { %v5474_v57 = vadd.f32 %v5473_v11, %v5312_v4  ;;  %v5446_v59 = vadd.f32 %v5445_v31, %v5289_v46  ;;  %v5291_v4 = vmul.f32 %v5914_v34, %v9392_v1  ;;  %v5017_v31 = vsel %vm10767_vm8, %v5016_v23, %v5012_v35  ;;  %v5924_v2 = vld [vmem:[#allocation2 + $0x358] sm:$0xff] }
 0x650   :  { %v5293_v53 = vmul.f32 %v5918_v48, %v9414_v6  ;;  %v5022_v30 = vsel %vm10770_vm9, %v5021_v22, %v5017_v31  ;;  %v4912_v34 = vrot.slane %v9286_v41, %v10473_v61  ;;  %v5922_v31 = vld [vmem:[#allocation2 + $0x350] sm:$0xff]  ;;  %v5923_v22 = vld [vmem:[#allocation2 + $0x3f8] sm:$0xff]  ;;  %v4927_v41 = vrot.slane %v9402_v26, %v10484_v45 }
 0x651   :  { %v5475_v47 = vadd.f32 %v5474_v57, %v5313_v12  ;;  %v5447_v58 = vadd.f32 %v5446_v59, %v5290_v8  ;;  %v5915_v57 = vld [vmem:[#allocation2 + $0x330] sm:$0xff]  ;;  %v4907_v12 = vrot.slane %v9373_v25, %v10474_v18  ;;  %v4903_v18 = vsel %vm691_vm0, %v4902_v24, %v4898_v19  ;;  %v9474_v8 = vpop.permute.xlu1 %4419  ;;  %vm10773_vm0 = vmmov %vm10764_vm7 }
 0x652   :  { %v9438_v44 = vpop.permute.xlu0 %4353  ;;  %v5292_v28 = vmul.f32 %v5915_v57, %v9402_v26  ;;  %v5294_v59 = vmul.f32 %v5919_v20, %v9425_v55  ;;  %v5027_v23 = vsel %vm10771_vm4, %v5026_v9, %v5022_v30  ;;  %v5317_v61 = vmul.f32 %v5923_v22, %v9474_v8  ;;  %vm10777_vm7 = vmmov %vm10770_vm9 }
 0x653   :  { %v5476_v11 = vadd.f32 %v5475_v47, %v5314_v5  ;;  %v5448_v46 = vadd.f32 %v5447_v58, %v5291_v4  ;;  %v5437_v47 = vadd.f32 %v5436_v49, %v5285_v7  ;;  %v4908_v29 = vsel %vm698_vm1, %v4907_v12, %v4903_v18  ;;  %v5921_v5 = vld [vmem:[#allocation2 + $0x348] sm:$0xff]  ;;  %vm10774_vm1 = vmmov %vm10765_vm3 }
 0x654   :  { %v5295_v35 = vmul.f32 %v5921_v5, %v9438_v44  ;;  %v5031_v4 = vrot.slane %v9400_v63, %v10494_v54  ;;  %v4922_v49 = vrot.slane %v9392_v1, %v10480_v36  ;;  %v4932_v63 = vrot.slane %v9414_v6, %v10483_v3 }
 0x655   :  { %v5477_v38 = vadd.f32 %v5476_v11, %v5315_v37  ;;  %v5449_v25 = vadd.f32 %v5448_v46, %v5292_v28  ;;  %v5438_v32 = vrot.slane %v5437_v47, 4  ;;  %v4913_v28 = vsel %vm705_vm2, %v4912_v34, %v4908_v29  ;;  %v5925_v46 = vld [vmem:[#allocation2 + $0x360] sm:$0xff]  ;;  %vm10775_vm2 = vmmov %vm10766_vm15 }
 0x656   :  { %v9446_v16 = vpop.permute.xlu0 %4356  ;;  %v5032_v36 = vsel %vm761_vm10, %v5031_v4, %v5027_v23  ;;  %v4918_v1 = vsel %vm10773_vm0, %v4917_v14, %v4913_v28  ;;  %v4937_v33 = vrot.slane %v9425_v55, %v10488_v10  ;;  %v4942_v45 = vrot.slane %v9438_v44, %v10487_v62  ;;  %v5926_v44 = vld [vmem:[#allocation2 + $0x368] sm:$0xff] }
 0x657   :  { %v5450_v42 = vadd.f32 %v5449_v25, %v5293_v53  ;;  %v5478_v19 = vadd.f32 %v5477_v38, %v5316_v51  ;;  %v5296_v57 = vmul.f32 %v5922_v31, %v9446_v16  ;;  %v4923_v12 = vsel %vm10774_vm1, %v4922_v49, %v4918_v1 }
 0x658   :  { %v5037_v53 = vsel %vm768_vm11, %v5036_v39, %v5032_v36  ;;  %v5439_v3 = vadd.f32 %v5438_v32, %v5437_v47  ;;  %v5041_v6 = vrot.slane %v9432_v15, %v10502_v60  ;;  %v4928_v9 = vsel %vm10775_vm2, %v4927_v41, %v4923_v12 }
 0x659   :  { %v5451_v58 = vadd.f32 %v5450_v42, %v5294_v59  ;;  %v5479_v24 = vadd.f32 %v5478_v19, %v5317_v61  ;;  %v4947_v38 = vrot.slane %v9446_v16, %v10495_v43  ;;  %v4933_v10 = vsel %vm733_vm6, %v4932_v63, %v4928_v9  ;;  %v5927_v16 = vld [vmem:[#allocation2 + $0x370] sm:$0xff]  ;;  %vm10778_vm6 = vmmov %vm10771_vm4 }
 0x65a   :  { %v9465_v17 = vpop.permute.xlu0 %4359  ;;  %v4938_v18 = vsel %vm10776_vm5, %v4937_v33, %v4933_v10  ;;  %v5042_v15 = vsel %vm775_vm12, %v5041_v6, %v5037_v53  ;;  %v5440_v42 = vrot.slane %v5439_v3, 2 }
 0x65b   :  { %v5452_v50 = vadd.f32 %v5451_v58, %v5295_v35  ;;  %v5297_v37 = vmul.f32 %v5924_v2, %v9465_v17  ;;  %v4952_v55 = vrot.slane %v9465_v17, %v10494_v54  ;;  %v5480_v20 = vrot.slane %v5479_v24, 4 }
 0x65c   :  { %v4943_v59 = vsel %vm10777_vm7, %v4942_v45, %v4938_v18  ;;  %v5046_v54 = vrot.slane %v9450_v27, %v10510_v0  ;;  %v5928_v27 = vld [vmem:[#allocation2 + $0x378] sm:$0xff]  ;;  %v5441_v58 = vadd.f32 %v5440_v42, %v5439_v3 }
 0x65d   :  { %v5453_v26 = vadd.f32 %v5452_v50, %v5296_v57  ;;  %v4948_v17 = vsel %vm10778_vm6, %v4947_v38, %v4943_v59  ;;  %v5481_v23 = vadd.f32 %v5480_v20, %v5479_v24 }
 0x65e   :  { %v4363_v11 = vpop.permute.xlu0 %4362  ;;  %v5047_v34 = vsel %vm782_vm13, %v5046_v54, %v5042_v15 }
 0x65f   :  { %v5298_v48 = vmul.f32 %v5925_v46, %v4363_v11  ;;  %v5454_v62 = vadd.f32 %v5453_v26, %v5297_v37  ;;  %v4957_v47 = vrot.slane %v4363_v11, %v10500_v21  ;;  %v4953_v21 = vsel %vm761_vm10, %v4952_v55, %v4948_v17 }
 0x660   :  { %v5482_v31 = vrot.slane %v5481_v23, 2  ;;  %vm10779_vm10 = vcmask 1046534  }
 0x661   :  { %v5455_v29 = vadd.f32 %v5454_v62, %v5298_v48  ;;  %v4958_v5 = vsel %vm768_vm11, %v4957_v47, %v4953_v21  ;;  %vm10780_vm11 = vcmask 1047559  }
 0x662   :  { %v4366_v7 = vpop.permute.xlu0 %4365 }
 0x663   :  { %v5299_v30 = vmul.f32 %v5926_v44, %v4366_v7  ;;  %v4962_v43 = vrot.slane %v4366_v7, %v10502_v60 }
 0x665   :  { %v5456_v14 = vadd.f32 %v5455_v29, %v5299_v30  ;;  %v4963_v60 = vsel %vm775_vm12, %v4962_v43, %v4958_v5 }
 0x666   :  { %v4369_v25 = vpop.permute.xlu0 %4368 }
 0x667   :  { %v5300_v40 = vmul.f32 %v5927_v16, %v4369_v25  ;;  %v4967_v51 = vrot.slane %v4369_v25, %v10510_v0  ;;  %v5051_v0 = vrot.slane %v9474_v8, %v10512_v13 }
 0x669   :  { %v5457_v4 = vadd.f32 %v5456_v14, %v5300_v40  ;;  %v4968_v19 = vsel %vm782_vm13, %v4967_v51, %v4963_v60  ;;  %v5052_v57 = vsel %vm789_vm14, %v5051_v0, %v5047_v34 }
 0x66a   :  { %v4372_v35 = vpop.permute.xlu0 %4371 }
 0x66b   :  { %v4972_v49 = vrot.slane %v4372_v35, %v10512_v13  ;;  %v5301_v11 = vmul.f32 %v5928_v27, %v4372_v35 }
 0x66d   :  { %v4973_v32 = vsel %vm789_vm14, %v4972_v49, %v4968_v19  ;;  %v5458_v39 = vadd.f32 %v5457_v4, %v5301_v11 }
 0x66e   :  { %v5058_v28 = vsel %vm10779_vm10, %v4973_v32, %v9370_v56 }
 0x66f   :  { %v5459_v22 = vrot.slane %v5458_v39, 4  ;;  %v5059_v61 = vsel %vm10780_vm11, %v5052_v57, %v5058_v28 }
 0x670   :  { %5061 = vst [vmem:[#allocation6] sm:$0xff] %v5059_v61 }
 0x671   :  { %v5460_v41 = vadd.f32 %v5459_v22, %v5458_v39 }
 0x672   :  { %5962 = shalt.err (!%p5959_p12)
}
 0x673   :  { %s5963_s9 = scalar_lea.hbm %s9564_s4, 128 }
 0x674   :  { %p5964_p13 = scmp.ne.s32.totalorder %s9564_s4, %s5963_s9  ;;  %p5967_p0 = scmp.lt.u32.totalorder %s5963_s9, %s9564_s4 }
 0x676   :  { %p5969_p1 = pnand %p5967_p0, %p5964_p13 }
 0x678   :  { %5972 = shalt.err (!%p5969_p1)
}
 0x679   :  { %5522 = dma.vmem_to_hbm [thread:$0]  %s5520_s5, 128, %s9564_s4, [#allocation7]   ;;  %v5442_v13 = vrot.slane %v5441_v58, 1  ;;  %v5483_v56 = vadd.f32 %v5482_v31, %v5481_v23  ;;  %v5461_v8 = vrot.slane %v5460_v41, 2  ;;  %vm10781_vm12 = vcmask 1045509   ;;  %vm10782_vm13 = vmmov %vm10779_vm10 }
 0x67a   :  { %s6007_s16 = smov [#allocation5]   ;;  %vm10783_vm14 = vmmov %vm10780_vm11 }
 0x67b   :  { %v5462_v36 = vadd.f32 %v5461_v8, %v5460_v41  ;;  %v5443_v1 = vadd.f32 %v5442_v13, %v5441_v58  ;;  %v5484_v63 = vrot.slane %v5483_v56, 1  ;;  %s5509_s17 = sshll.u32 %s6007_s16, 4  ;;  %s5510_s17 = int_to_ptr.vmem [resolvable:$true] %s5509_s17 }
 0x67c   :  { %s5973_s4 = scalar_lea.vmem %s5510_s17, 128  ;;  %p5978_p3 = scmp.lt.s32.totalorder %s5510_s17, %s5510_s17 }
 0x67d   :  { %v5463_v50 = vrot.slane %v5462_v36, 1  ;;  %v5485_v37 = vadd.f32 %v5484_v63, %v5483_v56  ;;  %v5498_v12 = vsel %vm10781_vm12, %v5443_v1, %v9326_v52  ;;  %p5974_p2 = scmp.ne.s32.totalorder %s5510_s17, %s5973_s4  ;;  %p5979_p4 = scmp.lt.s32.totalorder %s5973_s4, %s5973_s4 }
 0x67f   :  { %v5464_v2 = vadd.f32 %v5463_v50, %v5462_v36  ;;  %p5980_p5 = por %p5979_p4, %p5978_p3 }
 0x681   :  { %v5499_v33 = vsel %vm10782_vm13, %v5464_v2, %v5498_v12  ;;  %p5981_p6 = pnand %p5980_p5, %p5974_p2 }
 0x682   :  { %v5500_v7 = vsel %vm10783_vm14, %v5485_v37, %v5499_v33 }
 0x683   :  { %5502 = vst [vmem:[#allocation5] sm:$0xff] %v5500_v7 }
 0x684   :  { %5984 = shalt.err (!%p5981_p6)
}
 0x685   :  { %s5985_s20 = scalar_lea.hbm %s9563_s3, 128 }
 0x686   :  { %p5986_p7 = scmp.ne.s32.totalorder %s9563_s3, %s5985_s20  ;;  %p5989_p8 = scmp.lt.u32.totalorder %s5985_s20, %s9563_s3 }
 0x688   :  { %p5991_p9 = pnand %p5989_p8, %p5986_p7 }
 0x68a   :  { %5994 = shalt.err (!%p5991_p9)
}
 0x68b   :  { %5512 = dma.vmem_to_hbm [thread:$0]  %s5510_s17, 128, %s9563_s3, [#allocation4]  }
 0x68c   :  { %5997 = dma.done.wait [#allocation4], 128  }
 0x68d   :  { %5998 = vsyncadd [#allocation4], 4294967168 }
 0x68e   :  { %5999 = dma.done.wait [#allocation7], 128  }
 0x68f   :  { %6000 = vsyncadd [#allocation7], 4294967168 }
 0x690   :  { %5529 = vsyncpa [#allocation3], 1 }
 0x691   :  { %5530 = vsyncpa [#allocation4], 1 }
 0x692   :  { %5531 = vsyncpa [#allocation7], 1 }

</bundles_post_ra>
